<compile_context>
chip_gen: v6e
topology: v6e:2x2x1
jax: 0.10.0
libtpu: 0.0.40
codegen_flags: <defaults>
</compile_context>

<pallas_src>
import functools
import numpy as np
import jax
import jax.numpy as jnp
from jax.experimental import pallas as pl
from jax.experimental.pallas import tpu as pltpu


def _round_up(x: int, m: int) -> int:
    return ((x + m - 1) // m) * m


def _cdiv(a: int, b: int) -> int:
    return -(-a // b)


# Cap on the per-grid-step batch-row tile.  The kernel statically unrolls the
# (row, shift) double loop; both trip counts are small by construction
# (r_tile <= 16, n_shifts ~ n_fft/hop + 1), so a fori_loop is unnecessary --
# the O(t) overlap-add loop of the previous version no longer exists.
_MAX_R_TILE = 16


def _istft_kernel(x_ref, b_ref, env_ref, o_ref, *, n_shifts, t, off0):
    """Direct block synthesis: the overlap-add is folded into a handful of
    shifted MXU matmuls, so each output hop-block is written exactly once.

    x_ref  : [1, r_tile, t_pad, kc]   spectra, interleaved (re,im) lanes,
                                      zero-padded with pad_lo/pad_hi frames
    b_ref  : [n_shifts, kc, hop_pad]  per-shift windowed-irfft bases
    env_ref: [t, hop_pad]             1 / squared-window OA envelope (f32)
    o_ref  : [1, r_tile, t, hop_pad]  f32
    """
    r_tile = x_ref.shape[1]
    env = env_ref[...]                              # [t, hop_pad] f32
    for r in range(r_tile):                         # small static loop
        acc = None
        for j in range(n_shifts):                   # ~n_fft/hop + 1 shifts
            start = off0 - j                        # static sublane offset
            lhs = x_ref[0, r, start:start + t, :]   # [t, kc]
            term = jnp.dot(lhs, b_ref[j, :, :],
                           preferred_element_type=jnp.float32)
            acc = term if acc is None else acc + term
        # One store per batch row: lane-dense (hop_pad % 128 == 0), no RMW,
        # no accumulator zero-init pass.
        o_ref[0, r, :, :] = acc * env


class Istft:
    """Pallas-TPU equivalent of the PyTorch `Istft` module."""

    def __init__(self, n_fft_inv: int, hop_inv: int, window_inv,
                 compute_dtype=jnp.bfloat16):
        w = np.asarray(window_inv, np.float64)
        assert w.shape[0] == n_fft_inv
        self.n_fft = int(n_fft_inv)
        self.hop = int(hop_inv)
        self.w = w
        self.compute_dtype = compute_dtype

        N, hop = self.n_fft, self.hop
        F = N // 2 + 1
        trim = N // 2

        # Windowed inverse-rFFT synthesis basis, scaled for normalized=True
        # (irfft backward 1/N norm times sqrt(N)).  Rows are interleaved
        # (re_0, im_0, re_1, im_1, ...) so the kernel LHS is just the input
        # spectrum with its trailing (..., F, 2) dims flattened -- no host-side
        # real/imag concat or frame-major transpose is needed.
        n = np.arange(N)
        fr = np.arange(F)
        ang = 2.0 * np.pi * np.outer(fr, n) / N
        c = np.full((F, 1), 2.0)
        c[0, 0] = 1.0
        if N % 2 == 0:
            c[-1, 0] = 1.0                          # Nyquist bin counted once
        scale = 1.0 / np.sqrt(N)
        br = (c * np.cos(ang)) * scale * w[None, :]
        bi = (-c * np.sin(ang)) * scale * w[None, :]
        B = np.zeros((2 * F, N), np.float64)
        B[0::2] = br
        B[1::2] = bi

        # Shift range of the folded overlap-add:
        #   out[b*hop + p] = sum_d  x[b - d, :] . B[:, d*hop + p + trim]
        self.d_min = -((trim + hop - 1) // hop)
        self.d_max = (N - 1 - trim) // hop
        self.n_shifts = self.d_max - self.d_min + 1
        self.pad_lo = max(self.d_max, 0)            # zero frames prepended
        self.pad_hi = max(-self.d_min, 0)           # zero frames appended

        # Lane-dense layouts: pad hop and the contraction dim up to 128 lanes.
        self.hop_pad = _round_up(hop, 128)
        self.kc = _round_up(2 * F, 128)

        bd = np.zeros((self.n_shifts, self.kc, self.hop_pad), np.float64)
        cols = np.arange(hop)
        for j in range(self.n_shifts):
            d = self.d_min + j
            src = d * hop + trim + cols
            valid = (src >= 0) & (src < N)
            bd[j, :2 * F, :hop][:, valid] = B[:, src[valid]]
        self.bd = jnp.asarray(bd, compute_dtype)    # built & uploaded once

        self._env_cache = {}
        self._single_buffer_ok = True               # pl.Buffered(1) supported?

    def _inv_env_block(self, t: int):
        if t not in self._env_cache:
            N, hop, w = self.n_fft, self.hop, self.w
            n_frames = t + 1                 # torch pads one zero frame: it adds
            full = N + hop * (n_frames - 1)  # no signal but enters the envelope
            env = np.zeros((full,), np.float64)
            for tau in range(n_frames):
                env[tau * hop:tau * hop + N] += w * w
            trim = N // 2
            out_len = hop * t
            env = env[trim:trim + out_len]
            # TODO(synk): torch.istft raises if the window envelope has
            # (near-)zeros in the output range; we zero those samples instead.
            inv = np.zeros_like(env)
            mask = env > 1e-11
            inv[mask] = 1.0 / env[mask]
            blk = np.zeros((t, self.hop_pad), np.float64)
            blk[:, :hop] = inv.reshape(t, hop)
            self._env_cache[t] = jnp.asarray(blk, jnp.float32)
        return self._env_cache[t]

    def _tiling(self, R: int, t: int):
        """VMEM-aware, generation-aware batch-row tiling."""
        t_pad = t + self.pad_lo + self.pad_hi
        elt = jnp.dtype(self.compute_dtype).itemsize
        # per batch row & grid step: double-buffered input tile + output tile
        per_r = 2 * (t_pad * self.kc * elt) + 2 * (t * self.hop_pad * 4)
        # grid-invariant operands (counted double-buffered in case the
        # single-buffer request is not honoured) + slack
        fixed = (2 * (self.n_shifts * self.kc * self.hop_pad * elt)
                 + 2 * (t * self.hop_pad * 4) + (2 << 20))
        try:
            cap = int(pltpu.get_tpu_info().vmem_capacity_bytes)
        except Exception:
            cap = 64 << 20                   # conservative: v7x per-core VMEM
        budget = int(cap * 0.45)             # headroom for compiler scratch
        r_tile = max(1, min(_MAX_R_TILE, R, (budget - fixed) // max(per_r, 1)))
        # TODO(synk): if even r_tile == 1 exceeds the budget (enormous t), a
        # second "arbitrary" grid axis over frame chunks would be needed.
        # v7x has two TensorCores: keep >= 2 steps on the "parallel" grid axis
        # whenever there is more than one batch row (free on v5e/v6e).
        if R >= 2 and _cdiv(R, r_tile) < 2:
            r_tile = max(1, _cdiv(R, 2))
        G = _cdiv(R, r_tile)
        R_pad = G * r_tile
        need = fixed + per_r * r_tile
        vmem_limit = int(min(cap * 0.9, max(need + (8 << 20), 48 << 20)))
        return r_tile, G, R_pad, vmem_limit

    def __call__(self, x):
        # as_complex: complex input, or real tensor with trailing (re, im) dim
        if jnp.iscomplexobj(x):
            x2 = jnp.stack([jnp.real(x), jnp.imag(x)], axis=-1)
        else:
            assert x.shape[-1] == 2, "expected trailing (real, imag) dim of size 2"
            x2 = x
        t, f = x2.shape[-3:-1]
        assert f == self.n_fft // 2 + 1, "freq bins must be n_fft//2 + 1"
        sh = x2.shape[:-3]
        R = int(np.prod(sh)) if len(sh) else 1
        hop, kc, hop_pad = self.hop, self.kc, self.hop_pad
        t_pad = t + self.pad_lo + self.pad_hi

        r_tile, G, R_pad, vmem_limit = self._tiling(R, t)

        # Host prep is a single fused pad + cast: the trailing (F, 2) dims
        # flatten for free into the interleaved contraction layout the basis
        # expects; no frame-major transpose is materialized.
        x2 = x2.reshape(R, t, 2 * f).astype(self.compute_dtype)
        x2 = jnp.pad(x2, ((0, R_pad - R),
                          (self.pad_lo, self.pad_hi),
                          (0, kc - 2 * f)))
        x2 = x2.reshape(G, r_tile, t_pad, kc)

        env = self._inv_env_block(t)            # [t, hop_pad] f32, cached per t

        kernel = functools.partial(_istft_kernel, n_shifts=self.n_shifts, t=t,
                                   off0=self.pad_lo - self.d_min)
        out_shape = jax.ShapeDtypeStruct((G, r_tile, t, hop_pad), jnp.float32)

        def run(single_buffer: bool):
            # Grid-invariant operands (basis, envelope) do not need double
            # buffering; request a single buffer to save VMEM.
            pm = {"pipeline_mode": pl.Buffered(1)} if single_buffer else {}
            return pl.pallas_call(
                kernel,
                out_shape=out_shape,
                grid=(G,),
                in_specs=[
                    pl.BlockSpec((1, r_tile, t_pad, kc),
                                 lambda i: (i, 0, 0, 0)),
                    pl.BlockSpec((self.n_shifts, kc, hop_pad),
                                 lambda i: (0, 0, 0), **pm),
                    pl.BlockSpec((t, hop_pad), lambda i: (0, 0), **pm),
                ],
                out_specs=pl.BlockSpec((1, r_tile, t, hop_pad),
                                       lambda i: (i, 0, 0, 0)),
                compiler_params=pltpu.CompilerParams(
                    dimension_semantics=("parallel",),
                    vmem_limit_bytes=vmem_limit),
            )(x2, self.bd, env)

        if self._single_buffer_ok:
            try:
                out = run(True)
            except Exception:
                # Older Pallas versions may reject buffer_count=1; fall back
                # to default double buffering (correctness unaffected).
                self._single_buffer_ok = False
                out = run(False)
        else:
            out = run(False)

        out = out.reshape(R_pad, t, hop_pad)[:R, :, :hop].reshape(R, t * hop)
        return out.reshape(*sh, t * hop)


def _istft_ref(x, n_fft, hop, window):
    """Pure-JAX f32 reference (irfft + overlap-add), same semantics as torch.istft."""
    xr, xi = x[..., 0], x[..., 1]
    t, f = xr.shape[-2:]
    sh = xr.shape[:-2]
    R = int(np.prod(sh)) if len(sh) else 1
    X = (xr + 1j * xi).reshape(R, t, f)
    X = jnp.pad(X, ((0, 0), (0, 1), (0, 0)))
    frames = jnp.fft.irfft(X, n=n_fft, axis=-1) * jnp.sqrt(jnp.float32(n_fft))
    frames = frames.astype(jnp.float32) * window[None, None, :]
    T = t + 1
    full = n_fft + hop * (T - 1)
    y = jnp.zeros((R, full), jnp.float32)
    env = jnp.zeros((full,), jnp.float32)
    for tau in range(T):
        y = y.at[:, tau * hop:tau * hop + n_fft].add(frames[:, tau])
        env = env.at[tau * hop:tau * hop + n_fft].add(window * window)
    trim = n_fft // 2
    out_len = hop * (T - 1)
    y = y[:, trim:trim + out_len] / env[trim:trim + out_len]
    return y.reshape(*sh, out_len) if len(sh) else y.reshape(out_len)


if __name__ == "__main__":
    n_fft, hop = 32, 8
    t_frames, f_bins = 16, n_fft // 2 + 1
    B, C = 2, 4

    # deterministic "parameter": sqrt-Hann (periodic) synthesis window
    n = jnp.arange(n_fft, dtype=jnp.float32)
    window_inv = jnp.sqrt(0.5 * (1.0 - jnp.cos(2.0 * jnp.pi * n / n_fft)))

    key = jax.random.PRNGKey(0)
    x = jax.random.normal(key, (B, C, t_frames, f_bins, 2), dtype=jnp.float32)

    istft = Istft(n_fft, hop, window_inv)
    out = jax.block_until_ready(istft(x))
    assert out.shape == (B, C, t_frames * hop), out.shape

    ref = jax.block_until_ready(_istft_ref(x, n_fft, hop, window_inv))
    err = float(jnp.max(jnp.abs(out - ref)))
    scale = float(jnp.max(jnp.abs(ref))) + 1e-9
    # bf16 matmul operands (f32 accumulate) -> allow ~bf16-level relative error.
    assert err / scale < 2e-2, f"mismatch: max|diff|={err}, scale={scale}"

    print("KERNEL_OK")
</pallas_src>

<mosaic_0001>
module attributes {stable_mosaic.version = 11 : i64} {
  func.func @_istft_kernel(%arg0: i32, %arg1: memref<1x4x19x128xbf16, #tpu.memory_space<vmem>>, %arg2: memref<4x128x128xbf16, #tpu.memory_space<vmem>>, %arg3: memref<16x128xf32, #tpu.memory_space<vmem>>, %arg4: memref<1x4x16x128xf32, #tpu.memory_space<vmem>>) attributes {dimension_semantics = [#tpu.dimension_semantics<parallel>], iteration_bounds = array<i64: 2>, scalar_prefetch = 0 : i64, scratch_operands = 0 : i64, tpu.core_type = #tpu.core_type<tc>, window_params = [{transform_indices = @transform_0, window_bounds = array<i64: 1, 4, 19, 128>}, {pipeline_mode = #tpu.pipeline_mode<synchronous>, transform_indices = @transform_1, window_bounds = array<i64: 4, 128, 128>}, {pipeline_mode = #tpu.pipeline_mode<synchronous>, transform_indices = @transform_2, window_bounds = array<i64: 16, 128>}, {transform_indices = @transform_3, window_bounds = array<i64: 1, 4, 16, 128>}]} {
    %c0 = arith.constant 0 : index
    %c0_0 = arith.constant 0 : index
    %0 = vector.load %arg3[%c0, %c0_0] : memref<16x128xf32, #tpu.memory_space<vmem>>, vector<16x128xf32>
    %c0_1 = arith.constant 0 : index
    %c0_2 = arith.constant 0 : index
    %c3 = arith.constant 3 : index
    %c0_3 = arith.constant 0 : index
    %1 = vector.load %arg1[%c0_1, %c0_2, %c3, %c0_3] : memref<1x4x19x128xbf16, #tpu.memory_space<vmem>>, vector<1x1x16x128xbf16>
    %2 = vector.shape_cast %1 : vector<1x1x16x128xbf16> to vector<16x128xbf16>
    %c0_4 = arith.constant 0 : index
    %c0_5 = arith.constant 0 : index
    %c0_6 = arith.constant 0 : index
    %3 = vector.load %arg2[%c0_4, %c0_5, %c0_6] : memref<4x128x128xbf16, #tpu.memory_space<vmem>>, vector<1x128x128xbf16>
    %4 = vector.shape_cast %3 : vector<1x128x128xbf16> to vector<128x128xbf16>
    %cst = arith.constant dense<0.000000e+00> : vector<16x128xf32>
    %5 = tpu.matmul %2, %4, %cst {dimension_numbers = #tpu.dot_dimension_numbers<[1], [0], [0], [1], [0, 0, 1, 1], [], []>} : vector<16x128xbf16>, vector<128x128xbf16>, vector<16x128xf32> -> vector<16x128xf32>
    %c0_7 = arith.constant 0 : index
    %c0_8 = arith.constant 0 : index
    %c2 = arith.constant 2 : index
    %c0_9 = arith.constant 0 : index
    %6 = vector.load %arg1[%c0_7, %c0_8, %c2, %c0_9] : memref<1x4x19x128xbf16, #tpu.memory_space<vmem>>, vector<1x1x16x128xbf16>
    %7 = vector.shape_cast %6 : vector<1x1x16x128xbf16> to vector<16x128xbf16>
    %c1 = arith.constant 1 : index
    %c0_10 = arith.constant 0 : index
    %c0_11 = arith.constant 0 : index
    %8 = vector.load %arg2[%c1, %c0_10, %c0_11] : memref<4x128x128xbf16, #tpu.memory_space<vmem>>, vector<1x128x128xbf16>
    %9 = vector.shape_cast %8 : vector<1x128x128xbf16> to vector<128x128xbf16>
    %cst_12 = arith.constant dense<0.000000e+00> : vector<16x128xf32>
    %10 = tpu.matmul %7, %9, %cst_12 {dimension_numbers = #tpu.dot_dimension_numbers<[1], [0], [0], [1], [0, 0, 1, 1], [], []>} : vector<16x128xbf16>, vector<128x128xbf16>, vector<16x128xf32> -> vector<16x128xf32>
    %11 = arith.addf %5, %10 : vector<16x128xf32>
    %c0_13 = arith.constant 0 : index
    %c0_14 = arith.constant 0 : index
    %c1_15 = arith.constant 1 : index
    %c0_16 = arith.constant 0 : index
    %12 = vector.load %arg1[%c0_13, %c0_14, %c1_15, %c0_16] : memref<1x4x19x128xbf16, #tpu.memory_space<vmem>>, vector<1x1x16x128xbf16>
    %13 = vector.shape_cast %12 : vector<1x1x16x128xbf16> to vector<16x128xbf16>
    %c2_17 = arith.constant 2 : index
    %c0_18 = arith.constant 0 : index
    %c0_19 = arith.constant 0 : index
    %14 = vector.load %arg2[%c2_17, %c0_18, %c0_19] : memref<4x128x128xbf16, #tpu.memory_space<vmem>>, vector<1x128x128xbf16>
    %15 = vector.shape_cast %14 : vector<1x128x128xbf16> to vector<128x128xbf16>
    %cst_20 = arith.constant dense<0.000000e+00> : vector<16x128xf32>
    %16 = tpu.matmul %13, %15, %cst_20 {dimension_numbers = #tpu.dot_dimension_numbers<[1], [0], [0], [1], [0, 0, 1, 1], [], []>} : vector<16x128xbf16>, vector<128x128xbf16>, vector<16x128xf32> -> vector<16x128xf32>
    %17 = arith.addf %11, %16 : vector<16x128xf32>
    %c0_21 = arith.constant 0 : index
    %c0_22 = arith.constant 0 : index
    %c0_23 = arith.constant 0 : index
    %c0_24 = arith.constant 0 : index
    %18 = vector.load %arg1[%c0_21, %c0_22, %c0_23, %c0_24] : memref<1x4x19x128xbf16, #tpu.memory_space<vmem>>, vector<1x1x16x128xbf16>
    %19 = vector.shape_cast %18 : vector<1x1x16x128xbf16> to vector<16x128xbf16>
    %c3_25 = arith.constant 3 : index
    %c0_26 = arith.constant 0 : index
    %c0_27 = arith.constant 0 : index
    %20 = vector.load %arg2[%c3_25, %c0_26, %c0_27] : memref<4x128x128xbf16, #tpu.memory_space<vmem>>, vector<1x128x128xbf16>
    %21 = vector.shape_cast %20 : vector<1x128x128xbf16> to vector<128x128xbf16>
    %cst_28 = arith.constant dense<0.000000e+00> : vector<16x128xf32>
    %22 = tpu.matmul %19, %21, %cst_28 {dimension_numbers = #tpu.dot_dimension_numbers<[1], [0], [0], [1], [0, 0, 1, 1], [], []>} : vector<16x128xbf16>, vector<128x128xbf16>, vector<16x128xf32> -> vector<16x128xf32>
    %23 = arith.addf %17, %22 : vector<16x128xf32>
    %24 = arith.mulf %23, %0 : vector<16x128xf32>
    %c0_29 = arith.constant 0 : index
    %c0_30 = arith.constant 0 : index
    %c0_31 = arith.constant 0 : index
    %c0_32 = arith.constant 0 : index
    %25 = vector.load %arg4[%c0_29, %c0_30, %c0_31, %c0_32] : memref<1x4x16x128xf32, #tpu.memory_space<vmem>>, vector<1x1x16x128xf32>
    %26 = vector.shape_cast %25 : vector<1x1x16x128xf32> to vector<16x128xf32>
    %27 = vector.shape_cast %24 : vector<16x128xf32> to vector<1x1x16x128xf32>
    tpu.vector_store %arg4[%c0_29, %c0_30, %c0_31, %c0_32], %27 {strides = array<i32>} : memref<1x4x16x128xf32, #tpu.memory_space<vmem>>, vector<1x1x16x128xf32>,
    %c0_33 = arith.constant 0 : index
    %c1_34 = arith.constant 1 : index
    %c3_35 = arith.constant 3 : index
    %c0_36 = arith.constant 0 : index
    %28 = vector.load %arg1[%c0_33, %c1_34, %c3_35, %c0_36] : memref<1x4x19x128xbf16, #tpu.memory_space<vmem>>, vector<1x1x16x128xbf16>
    %29 = vector.shape_cast %28 : vector<1x1x16x128xbf16> to vector<16x128xbf16>
    %c0_37 = arith.constant 0 : index
    %c0_38 = arith.constant 0 : index
    %c0_39 = arith.constant 0 : index
    %30 = vector.load %arg2[%c0_37, %c0_38, %c0_39] : memref<4x128x128xbf16, #tpu.memory_space<vmem>>, vector<1x128x128xbf16>
    %31 = vector.shape_cast %30 : vector<1x128x128xbf16> to vector<128x128xbf16>
    %cst_40 = arith.constant dense<0.000000e+00> : vector<16x128xf32>
    %32 = tpu.matmul %29, %31, %cst_40 {dimension_numbers = #tpu.dot_dimension_numbers<[1], [0], [0], [1], [0, 0, 1, 1], [], []>} : vector<16x128xbf16>, vector<128x128xbf16>, vector<16x128xf32> -> vector<16x128xf32>
    %c0_41 = arith.constant 0 : index
    %c1_42 = arith.constant 1 : index
    %c2_43 = arith.constant 2 : index
    %c0_44 = arith.constant 0 : index
    %33 = vector.load %arg1[%c0_41, %c1_42, %c2_43, %c0_44] : memref<1x4x19x128xbf16, #tpu.memory_space<vmem>>, vector<1x1x16x128xbf16>
    %34 = vector.shape_cast %33 : vector<1x1x16x128xbf16> to vector<16x128xbf16>
    %c1_45 = arith.constant 1 : index
    %c0_46 = arith.constant 0 : index
    %c0_47 = arith.constant 0 : index
    %35 = vector.load %arg2[%c1_45, %c0_46, %c0_47] : memref<4x128x128xbf16, #tpu.memory_space<vmem>>, vector<1x128x128xbf16>
    %36 = vector.shape_cast %35 : vector<1x128x128xbf16> to vector<128x128xbf16>
    %cst_48 = arith.constant dense<0.000000e+00> : vector<16x128xf32>
    %37 = tpu.matmul %34, %36, %cst_48 {dimension_numbers = #tpu.dot_dimension_numbers<[1], [0], [0], [1], [0, 0, 1, 1], [], []>} : vector<16x128xbf16>, vector<128x128xbf16>, vector<16x128xf32> -> vector<16x128xf32>
    %38 = arith.addf %32, %37 : vector<16x128xf32>
    %c0_49 = arith.constant 0 : index
    %c1_50 = arith.constant 1 : index
    %c1_51 = arith.constant 1 : index
    %c0_52 = arith.constant 0 : index
    %39 = vector.load %arg1[%c0_49, %c1_50, %c1_51, %c0_52] : memref<1x4x19x128xbf16, #tpu.memory_space<vmem>>, vector<1x1x16x128xbf16>
    %40 = vector.shape_cast %39 : vector<1x1x16x128xbf16> to vector<16x128xbf16>
    %c2_53 = arith.constant 2 : index
    %c0_54 = arith.constant 0 : index
    %c0_55 = arith.constant 0 : index
    %41 = vector.load %arg2[%c2_53, %c0_54, %c0_55] : memref<4x128x128xbf16, #tpu.memory_space<vmem>>, vector<1x128x128xbf16>
    %42 = vector.shape_cast %41 : vector<1x128x128xbf16> to vector<128x128xbf16>
    %cst_56 = arith.constant dense<0.000000e+00> : vector<16x128xf32>
    %43 = tpu.matmul %40, %42, %cst_56 {dimension_numbers = #tpu.dot_dimension_numbers<[1], [0], [0], [1], [0, 0, 1, 1], [], []>} : vector<16x128xbf16>, vector<128x128xbf16>, vector<16x128xf32> -> vector<16x128xf32>
    %44 = arith.addf %38, %43 : vector<16x128xf32>
    %c0_57 = arith.constant 0 : index
    %c1_58 = arith.constant 1 : index
    %c0_59 = arith.constant 0 : index
    %c0_60 = arith.constant 0 : index
    %45 = vector.load %arg1[%c0_57, %c1_58, %c0_59, %c0_60] : memref<1x4x19x128xbf16, #tpu.memory_space<vmem>>, vector<1x1x16x128xbf16>
    %46 = vector.shape_cast %45 : vector<1x1x16x128xbf16> to vector<16x128xbf16>
    %c3_61 = arith.constant 3 : index
    %c0_62 = arith.constant 0 : index
    %c0_63 = arith.constant 0 : index
    %47 = vector.load %arg2[%c3_61, %c0_62, %c0_63] : memref<4x128x128xbf16, #tpu.memory_space<vmem>>, vector<1x128x128xbf16>
    %48 = vector.shape_cast %47 : vector<1x128x128xbf16> to vector<128x128xbf16>
    %cst_64 = arith.constant dense<0.000000e+00> : vector<16x128xf32>
    %49 = tpu.matmul %46, %48, %cst_64 {dimension_numbers = #tpu.dot_dimension_numbers<[1], [0], [0], [1], [0, 0, 1, 1], [], []>} : vector<16x128xbf16>, vector<128x128xbf16>, vector<16x128xf32> -> vector<16x128xf32>
    %50 = arith.addf %44, %49 : vector<16x128xf32>
    %51 = arith.mulf %50, %0 : vector<16x128xf32>
    %c0_65 = arith.constant 0 : index
    %c1_66 = arith.constant 1 : index
    %c0_67 = arith.constant 0 : index
    %c0_68 = arith.constant 0 : index
    %52 = vector.load %arg4[%c0_65, %c1_66, %c0_67, %c0_68] : memref<1x4x16x128xf32, #tpu.memory_space<vmem>>, vector<1x1x16x128xf32>
    %53 = vector.shape_cast %52 : vector<1x1x16x128xf32> to vector<16x128xf32>
    %54 = vector.shape_cast %51 : vector<16x128xf32> to vector<1x1x16x128xf32>
    tpu.vector_store %arg4[%c0_65, %c1_66, %c0_67, %c0_68], %54 {strides = array<i32>} : memref<1x4x16x128xf32, #tpu.memory_space<vmem>>, vector<1x1x16x128xf32>,
    %c0_69 = arith.constant 0 : index
    %c2_70 = arith.constant 2 : index
    %c3_71 = arith.constant 3 : index
    %c0_72 = arith.constant 0 : index
    %55 = vector.load %arg1[%c0_69, %c2_70, %c3_71, %c0_72] : memref<1x4x19x128xbf16, #tpu.memory_space<vmem>>, vector<1x1x16x128xbf16>
    %56 = vector.shape_cast %55 : vector<1x1x16x128xbf16> to vector<16x128xbf16>
    %c0_73 = arith.constant 0 : index
    %c0_74 = arith.constant 0 : index
    %c0_75 = arith.constant 0 : index
    %57 = vector.load %arg2[%c0_73, %c0_74, %c0_75] : memref<4x128x128xbf16, #tpu.memory_space<vmem>>, vector<1x128x128xbf16>
    %58 = vector.shape_cast %57 : vector<1x128x128xbf16> to vector<128x128xbf16>
    %cst_76 = arith.constant dense<0.000000e+00> : vector<16x128xf32>
    %59 = tpu.matmul %56, %58, %cst_76 {dimension_numbers = #tpu.dot_dimension_numbers<[1], [0], [0], [1], [0, 0, 1, 1], [], []>} : vector<16x128xbf16>, vector<128x128xbf16>, vector<16x128xf32> -> vector<16x128xf32>
    %c0_77 = arith.constant 0 : index
    %c2_78 = arith.constant 2 : index
    %c2_79 = arith.constant 2 : index
    %c0_80 = arith.constant 0 : index
    %60 = vector.load %arg1[%c0_77, %c2_78, %c2_79, %c0_80] : memref<1x4x19x128xbf16, #tpu.memory_space<vmem>>, vector<1x1x16x128xbf16>
    %61 = vector.shape_cast %60 : vector<1x1x16x128xbf16> to vector<16x128xbf16>
    %c1_81 = arith.constant 1 : index
    %c0_82 = arith.constant 0 : index
    %c0_83 = arith.constant 0 : index
    %62 = vector.load %arg2[%c1_81, %c0_82, %c0_83] : memref<4x128x128xbf16, #tpu.memory_space<vmem>>, vector<1x128x128xbf16>
    %63 = vector.shape_cast %62 : vector<1x128x128xbf16> to vector<128x128xbf16>
    %cst_84 = arith.constant dense<0.000000e+00> : vector<16x128xf32>
    %64 = tpu.matmul %61, %63, %cst_84 {dimension_numbers = #tpu.dot_dimension_numbers<[1], [0], [0], [1], [0, 0, 1, 1], [], []>} : vector<16x128xbf16>, vector<128x128xbf16>, vector<16x128xf32> -> vector<16x128xf32>
    %65 = arith.addf %59, %64 : vector<16x128xf32>
    %c0_85 = arith.constant 0 : index
    %c2_86 = arith.constant 2 : index
    %c1_87 = arith.constant 1 : index
    %c0_88 = arith.constant 0 : index
    %66 = vector.load %arg1[%c0_85, %c2_86, %c1_87, %c0_88] : memref<1x4x19x128xbf16, #tpu.memory_space<vmem>>, vector<1x1x16x128xbf16>
    %67 = vector.shape_cast %66 : vector<1x1x16x128xbf16> to vector<16x128xbf16>
    %c2_89 = arith.constant 2 : index
    %c0_90 = arith.constant 0 : index
    %c0_91 = arith.constant 0 : index
    %68 = vector.load %arg2[%c2_89, %c0_90, %c0_91] : memref<4x128x128xbf16, #tpu.memory_space<vmem>>, vector<1x128x128xbf16>
    %69 = vector.shape_cast %68 : vector<1x128x128xbf16> to vector<128x128xbf16>
    %cst_92 = arith.constant dense<0.000000e+00> : vector<16x128xf32>
    %70 = tpu.matmul %67, %69, %cst_92 {dimension_numbers = #tpu.dot_dimension_numbers<[1], [0], [0], [1], [0, 0, 1, 1], [], []>} : vector<16x128xbf16>, vector<128x128xbf16>, vector<16x128xf32> -> vector<16x128xf32>
    %71 = arith.addf %65, %70 : vector<16x128xf32>
    %c0_93 = arith.constant 0 : index
    %c2_94 = arith.constant 2 : index
    %c0_95 = arith.constant 0 : index
    %c0_96 = arith.constant 0 : index
    %72 = vector.load %arg1[%c0_93, %c2_94, %c0_95, %c0_96] : memref<1x4x19x128xbf16, #tpu.memory_space<vmem>>, vector<1x1x16x128xbf16>
    %73 = vector.shape_cast %72 : vector<1x1x16x128xbf16> to vector<16x128xbf16>
    %c3_97 = arith.constant 3 : index
    %c0_98 = arith.constant 0 : index
    %c0_99 = arith.constant 0 : index
    %74 = vector.load %arg2[%c3_97, %c0_98, %c0_99] : memref<4x128x128xbf16, #tpu.memory_space<vmem>>, vector<1x128x128xbf16>
    %75 = vector.shape_cast %74 : vector<1x128x128xbf16> to vector<128x128xbf16>
    %cst_100 = arith.constant dense<0.000000e+00> : vector<16x128xf32>
    %76 = tpu.matmul %73, %75, %cst_100 {dimension_numbers = #tpu.dot_dimension_numbers<[1], [0], [0], [1], [0, 0, 1, 1], [], []>} : vector<16x128xbf16>, vector<128x128xbf16>, vector<16x128xf32> -> vector<16x128xf32>
    %77 = arith.addf %71, %76 : vector<16x128xf32>
    %78 = arith.mulf %77, %0 : vector<16x128xf32>
    %c0_101 = arith.constant 0 : index
    %c2_102 = arith.constant 2 : index
    %c0_103 = arith.constant 0 : index
    %c0_104 = arith.constant 0 : index
    %79 = vector.load %arg4[%c0_101, %c2_102, %c0_103, %c0_104] : memref<1x4x16x128xf32, #tpu.memory_space<vmem>>, vector<1x1x16x128xf32>
    %80 = vector.shape_cast %79 : vector<1x1x16x128xf32> to vector<16x128xf32>
    %81 = vector.shape_cast %78 : vector<16x128xf32> to vector<1x1x16x128xf32>
    tpu.vector_store %arg4[%c0_101, %c2_102, %c0_103, %c0_104], %81 {strides = array<i32>} : memref<1x4x16x128xf32, #tpu.memory_space<vmem>>, vector<1x1x16x128xf32>,
    %c0_105 = arith.constant 0 : index
    %c3_106 = arith.constant 3 : index
    %c3_107 = arith.constant 3 : index
    %c0_108 = arith.constant 0 : index
    %82 = vector.load %arg1[%c0_105, %c3_106, %c3_107, %c0_108] : memref<1x4x19x128xbf16, #tpu.memory_space<vmem>>, vector<1x1x16x128xbf16>
    %83 = vector.shape_cast %82 : vector<1x1x16x128xbf16> to vector<16x128xbf16>
    %c0_109 = arith.constant 0 : index
    %c0_110 = arith.constant 0 : index
    %c0_111 = arith.constant 0 : index
    %84 = vector.load %arg2[%c0_109, %c0_110, %c0_111] : memref<4x128x128xbf16, #tpu.memory_space<vmem>>, vector<1x128x128xbf16>
    %85 = vector.shape_cast %84 : vector<1x128x128xbf16> to vector<128x128xbf16>
    %cst_112 = arith.constant dense<0.000000e+00> : vector<16x128xf32>
    %86 = tpu.matmul %83, %85, %cst_112 {dimension_numbers = #tpu.dot_dimension_numbers<[1], [0], [0], [1], [0, 0, 1, 1], [], []>} : vector<16x128xbf16>, vector<128x128xbf16>, vector<16x128xf32> -> vector<16x128xf32>
    %c0_113 = arith.constant 0 : index
    %c3_114 = arith.constant 3 : index
    %c2_115 = arith.constant 2 : index
    %c0_116 = arith.constant 0 : index
    %87 = vector.load %arg1[%c0_113, %c3_114, %c2_115, %c0_116] : memref<1x4x19x128xbf16, #tpu.memory_space<vmem>>, vector<1x1x16x128xbf16>
    %88 = vector.shape_cast %87 : vector<1x1x16x128xbf16> to vector<16x128xbf16>
    %c1_117 = arith.constant 1 : index
    %c0_118 = arith.constant 0 : index
    %c0_119 = arith.constant 0 : index
    %89 = vector.load %arg2[%c1_117, %c0_118, %c0_119] : memref<4x128x128xbf16, #tpu.memory_space<vmem>>, vector<1x128x128xbf16>
    %90 = vector.shape_cast %89 : vector<1x128x128xbf16> to vector<128x128xbf16>
    %cst_120 = arith.constant dense<0.000000e+00> : vector<16x128xf32>
    %91 = tpu.matmul %88, %90, %cst_120 {dimension_numbers = #tpu.dot_dimension_numbers<[1], [0], [0], [1], [0, 0, 1, 1], [], []>} : vector<16x128xbf16>, vector<128x128xbf16>, vector<16x128xf32> -> vector<16x128xf32>
    %92 = arith.addf %86, %91 : vector<16x128xf32>
    %c0_121 = arith.constant 0 : index
    %c3_122 = arith.constant 3 : index
    %c1_123 = arith.constant 1 : index
    %c0_124 = arith.constant 0 : index
    %93 = vector.load %arg1[%c0_121, %c3_122, %c1_123, %c0_124] : memref<1x4x19x128xbf16, #tpu.memory_space<vmem>>, vector<1x1x16x128xbf16>
    %94 = vector.shape_cast %93 : vector<1x1x16x128xbf16> to vector<16x128xbf16>
    %c2_125 = arith.constant 2 : index
    %c0_126 = arith.constant 0 : index
    %c0_127 = arith.constant 0 : index
    %95 = vector.load %arg2[%c2_125, %c0_126, %c0_127] : memref<4x128x128xbf16, #tpu.memory_space<vmem>>, vector<1x128x128xbf16>
    %96 = vector.shape_cast %95 : vector<1x128x128xbf16> to vector<128x128xbf16>
    %cst_128 = arith.constant dense<0.000000e+00> : vector<16x128xf32>
    %97 = tpu.matmul %94, %96, %cst_128 {dimension_numbers = #tpu.dot_dimension_numbers<[1], [0], [0], [1], [0, 0, 1, 1], [], []>} : vector<16x128xbf16>, vector<128x128xbf16>, vector<16x128xf32> -> vector<16x128xf32>
    %98 = arith.addf %92, %97 : vector<16x128xf32>
    %c0_129 = arith.constant 0 : index
    %c3_130 = arith.constant 3 : index
    %c0_131 = arith.constant 0 : index
    %c0_132 = arith.constant 0 : index
    %99 = vector.load %arg1[%c0_129, %c3_130, %c0_131, %c0_132] : memref<1x4x19x128xbf16, #tpu.memory_space<vmem>>, vector<1x1x16x128xbf16>
    %100 = vector.shape_cast %99 : vector<1x1x16x128xbf16> to vector<16x128xbf16>
    %c3_133 = arith.constant 3 : index
    %c0_134 = arith.constant 0 : index
    %c0_135 = arith.constant 0 : index
    %101 = vector.load %arg2[%c3_133, %c0_134, %c0_135] : memref<4x128x128xbf16, #tpu.memory_space<vmem>>, vector<1x128x128xbf16>
    %102 = vector.shape_cast %101 : vector<1x128x128xbf16> to vector<128x128xbf16>
    %cst_136 = arith.constant dense<0.000000e+00> : vector<16x128xf32>
    %103 = tpu.matmul %100, %102, %cst_136 {dimension_numbers = #tpu.dot_dimension_numbers<[1], [0], [0], [1], [0, 0, 1, 1], [], []>} : vector<16x128xbf16>, vector<128x128xbf16>, vector<16x128xf32> -> vector<16x128xf32>
    %104 = arith.addf %98, %103 : vector<16x128xf32>
    %105 = arith.mulf %104, %0 : vector<16x128xf32>
    %c0_137 = arith.constant 0 : index
    %c3_138 = arith.constant 3 : index
    %c0_139 = arith.constant 0 : index
    %c0_140 = arith.constant 0 : index
    %106 = vector.load %arg4[%c0_137, %c3_138, %c0_139, %c0_140] : memref<1x4x16x128xf32, #tpu.memory_space<vmem>>, vector<1x1x16x128xf32>
    %107 = vector.shape_cast %106 : vector<1x1x16x128xf32> to vector<16x128xf32>
    %108 = vector.shape_cast %105 : vector<16x128xf32> to vector<1x1x16x128xf32>
    tpu.vector_store %arg4[%c0_137, %c3_138, %c0_139, %c0_140], %108 {strides = array<i32>} : memref<1x4x16x128xf32, #tpu.memory_space<vmem>>, vector<1x1x16x128xf32>,
    return
  }
  func.func @transform_0(%arg0: i32) -> (i32, i32, i32, i32) {
    %c0_i32 = arith.constant 0 : i32
    %c0_i32_0 = arith.constant 0 : i32
    %c0_i32_1 = arith.constant 0 : i32
    %c0_i32_2 = arith.constant 0 : i32
    return %arg0, %c0_i32, %c0_i32_0, %c0_i32_1 : i32, i32, i32, i32
  }
  func.func @transform_1(%arg0: i32) -> (i32, i32, i32) {
    %c0_i32 = arith.constant 0 : i32
    %c0_i32_0 = arith.constant 0 : i32
    %c0_i32_1 = arith.constant 0 : i32
    %c0_i32_2 = arith.constant 0 : i32
    return %c0_i32, %c0_i32_0, %c0_i32_1 : i32, i32, i32
  }
  func.func @transform_2(%arg0: i32) -> (i32, i32) {
    %c0_i32 = arith.constant 0 : i32
    %c0_i32_0 = arith.constant 0 : i32
    %c0_i32_1 = arith.constant 0 : i32
    return %c0_i32, %c0_i32_0 : i32, i32
  }
  func.func @transform_3(%arg0: i32) -> (i32, i32, i32, i32) {
    %c0_i32 = arith.constant 0 : i32
    %c0_i32_0 = arith.constant 0 : i32
    %c0_i32_1 = arith.constant 0 : i32
    %c0_i32_2 = arith.constant 0 : i32
    return %arg0, %c0_i32, %c0_i32_0, %c0_i32_1 : i32, i32, i32, i32
  }
}

module attributes {stable_mosaic.version = 11 : i64} {
  func.func @_istft_kernel(%arg0: i32, %arg1: memref<1x4x19x128xbf16, #tpu.memory_space<vmem>>, %arg2: memref<4x128x128xbf16, #tpu.memory_space<vmem>>, %arg3: memref<16x128xf32, #tpu.memory_space<vmem>>, %arg4: memref<1x4x16x128xf32, #tpu.memory_space<vmem>>) attributes {dimension_semantics = [#tpu.dimension_semantics<parallel>], iteration_bounds = array<i64: 2>, scalar_prefetch = 0 : i64, scratch_operands = 0 : i64, tpu.core_type = #tpu.core_type<tc>, window_params = [{transform_indices = @transform_0, window_bounds = array<i64: 1, 4, 19, 128>}, {pipeline_mode = #tpu.pipeline_mode<synchronous>, transform_indices = @transform_1, window_bounds = array<i64: 4, 128, 128>}, {pipeline_mode = #tpu.pipeline_mode<synchronous>, transform_indices = @transform_2, window_bounds = array<i64: 16, 128>}, {transform_indices = @transform_3, window_bounds = array<i64: 1, 4, 16, 128>}]} {
    %c0 = arith.constant 0 : index
    %c0_0 = arith.constant 0 : index
    %0 = vector.load %arg3[%c0, %c0_0] : memref<16x128xf32, #tpu.memory_space<vmem>>, vector<16x128xf32>
    %c0_1 = arith.constant 0 : index
    %c0_2 = arith.constant 0 : index
    %c3 = arith.constant 3 : index
    %c0_3 = arith.constant 0 : index
    %1 = vector.load %arg1[%c0_1, %c0_2, %c3, %c0_3] : memref<1x4x19x128xbf16, #tpu.memory_space<vmem>>, vector<1x1x16x128xbf16>
    %2 = vector.shape_cast %1 : vector<1x1x16x128xbf16> to vector<16x128xbf16>
    %c0_4 = arith.constant 0 : index
    %c0_5 = arith.constant 0 : index
    %c0_6 = arith.constant 0 : index
    %3 = vector.load %arg2[%c0_4, %c0_5, %c0_6] : memref<4x128x128xbf16, #tpu.memory_space<vmem>>, vector<1x128x128xbf16>
    %4 = vector.shape_cast %3 : vector<1x128x128xbf16> to vector<128x128xbf16>
    %cst = arith.constant dense<0.000000e+00> : vector<16x128xf32>
    %5 = tpu.matmul %2, %4, %cst {dimension_numbers = #tpu.dot_dimension_numbers<[1], [0], [0], [1], [0, 0, 1, 1], [], []>} : vector<16x128xbf16>, vector<128x128xbf16>, vector<16x128xf32> -> vector<16x128xf32>
    %c0_7 = arith.constant 0 : index
    %c0_8 = arith.constant 0 : index
    %c2 = arith.constant 2 : index
    %c0_9 = arith.constant 0 : index
    %6 = vector.load %arg1[%c0_7, %c0_8, %c2, %c0_9] : memref<1x4x19x128xbf16, #tpu.memory_space<vmem>>, vector<1x1x16x128xbf16>
    %7 = vector.shape_cast %6 : vector<1x1x16x128xbf16> to vector<16x128xbf16>
    %c1 = arith.constant 1 : index
    %c0_10 = arith.constant 0 : index
    %c0_11 = arith.constant 0 : index
    %8 = vector.load %arg2[%c1, %c0_10, %c0_11] : memref<4x128x128xbf16, #tpu.memory_space<vmem>>, vector<1x128x128xbf16>
    %9 = vector.shape_cast %8 : vector<1x128x128xbf16> to vector<128x128xbf16>
    %cst_12 = arith.constant dense<0.000000e+00> : vector<16x128xf32>
    %10 = tpu.matmul %7, %9, %cst_12 {dimension_numbers = #tpu.dot_dimension_numbers<[1], [0], [0], [1], [0, 0, 1, 1], [], []>} : vector<16x128xbf16>, vector<128x128xbf16>, vector<16x128xf32> -> vector<16x128xf32>
    %11 = arith.addf %5, %10 : vector<16x128xf32>
    %c0_13 = arith.constant 0 : index
    %c0_14 = arith.constant 0 : index
    %c1_15 = arith.constant 1 : index
    %c0_16 = arith.constant 0 : index
    %12 = vector.load %arg1[%c0_13, %c0_14, %c1_15, %c0_16] : memref<1x4x19x128xbf16, #tpu.memory_space<vmem>>, vector<1x1x16x128xbf16>
    %13 = vector.shape_cast %12 : vector<1x1x16x128xbf16> to vector<16x128xbf16>
    %c2_17 = arith.constant 2 : index
    %c0_18 = arith.constant 0 : index
    %c0_19 = arith.constant 0 : index
    %14 = vector.load %arg2[%c2_17, %c0_18, %c0_19] : memref<4x128x128xbf16, #tpu.memory_space<vmem>>, vector<1x128x128xbf16>
    %15 = vector.shape_cast %14 : vector<1x128x128xbf16> to vector<128x128xbf16>
    %cst_20 = arith.constant dense<0.000000e+00> : vector<16x128xf32>
    %16 = tpu.matmul %13, %15, %cst_20 {dimension_numbers = #tpu.dot_dimension_numbers<[1], [0], [0], [1], [0, 0, 1, 1], [], []>} : vector<16x128xbf16>, vector<128x128xbf16>, vector<16x128xf32> -> vector<16x128xf32>
    %17 = arith.addf %11, %16 : vector<16x128xf32>
    %c0_21 = arith.constant 0 : index
    %c0_22 = arith.constant 0 : index
    %c0_23 = arith.constant 0 : index
    %c0_24 = arith.constant 0 : index
    %18 = vector.load %arg1[%c0_21, %c0_22, %c0_23, %c0_24] : memref<1x4x19x128xbf16, #tpu.memory_space<vmem>>, vector<1x1x16x128xbf16>
    %19 = vector.shape_cast %18 : vector<1x1x16x128xbf16> to vector<16x128xbf16>
    %c3_25 = arith.constant 3 : index
    %c0_26 = arith.constant 0 : index
    %c0_27 = arith.constant 0 : index
    %20 = vector.load %arg2[%c3_25, %c0_26, %c0_27] : memref<4x128x128xbf16, #tpu.memory_space<vmem>>, vector<1x128x128xbf16>
    %21 = vector.shape_cast %20 : vector<1x128x128xbf16> to vector<128x128xbf16>
    %cst_28 = arith.constant dense<0.000000e+00> : vector<16x128xf32>
    %22 = tpu.matmul %19, %21, %cst_28 {dimension_numbers = #tpu.dot_dimension_numbers<[1], [0], [0], [1], [0, 0, 1, 1], [], []>} : vector<16x128xbf16>, vector<128x128xbf16>, vector<16x128xf32> -> vector<16x128xf32>
    %23 = arith.addf %17, %22 : vector<16x128xf32>
    %24 = arith.mulf %23, %0 : vector<16x128xf32>
    %c0_29 = arith.constant 0 : index
    %c0_30 = arith.constant 0 : index
    %c0_31 = arith.constant 0 : index
    %c0_32 = arith.constant 0 : index
    %25 = vector.load %arg4[%c0_29, %c0_30, %c0_31, %c0_32] : memref<1x4x16x128xf32, #tpu.memory_space<vmem>>, vector<1x1x16x128xf32>
    %26 = vector.shape_cast %25 : vector<1x1x16x128xf32> to vector<16x128xf32>
    %27 = vector.shape_cast %24 : vector<16x128xf32> to vector<1x1x16x128xf32>
    tpu.vector_store %arg4[%c0_29, %c0_30, %c0_31, %c0_32], %27 {strides = array<i32>} : memref<1x4x16x128xf32, #tpu.memory_space<vmem>>, vector<1x1x16x128xf32>,
    %c0_33 = arith.constant 0 : index
    %c1_34 = arith.constant 1 : index
    %c3_35 = arith.constant 3 : index
    %c0_36 = arith.constant 0 : index
    %28 = vector.load %arg1[%c0_33, %c1_34, %c3_35, %c0_36] : memref<1x4x19x128xbf16, #tpu.memory_space<vmem>>, vector<1x1x16x128xbf16>
    %29 = vector.shape_cast %28 : vector<1x1x16x128xbf16> to vector<16x128xbf16>
    %c0_37 = arith.constant 0 : index
    %c0_38 = arith.constant 0 : index
    %c0_39 = arith.constant 0 : index
    %30 = vector.load %arg2[%c0_37, %c0_38, %c0_39] : memref<4x128x128xbf16, #tpu.memory_space<vmem>>, vector<1x128x128xbf16>
    %31 = vector.shape_cast %30 : vector<1x128x128xbf16> to vector<128x128xbf16>
    %cst_40 = arith.constant dense<0.000000e+00> : vector<16x128xf32>
    %32 = tpu.matmul %29, %31, %cst_40 {dimension_numbers = #tpu.dot_dimension_numbers<[1], [0], [0], [1], [0, 0, 1, 1], [], []>} : vector<16x128xbf16>, vector<128x128xbf16>, vector<16x128xf32> -> vector<16x128xf32>
    %c0_41 = arith.constant 0 : index
    %c1_42 = arith.constant 1 : index
    %c2_43 = arith.constant 2 : index
    %c0_44 = arith.constant 0 : index
    %33 = vector.load %arg1[%c0_41, %c1_42, %c2_43, %c0_44] : memref<1x4x19x128xbf16, #tpu.memory_space<vmem>>, vector<1x1x16x128xbf16>
    %34 = vector.shape_cast %33 : vector<1x1x16x128xbf16> to vector<16x128xbf16>
    %c1_45 = arith.constant 1 : index
    %c0_46 = arith.constant 0 : index
    %c0_47 = arith.constant 0 : index
    %35 = vector.load %arg2[%c1_45, %c0_46, %c0_47] : memref<4x128x128xbf16, #tpu.memory_space<vmem>>, vector<1x128x128xbf16>
    %36 = vector.shape_cast %35 : vector<1x128x128xbf16> to vector<128x128xbf16>
    %cst_48 = arith.constant dense<0.000000e+00> : vector<16x128xf32>
    %37 = tpu.matmul %34, %36, %cst_48 {dimension_numbers = #tpu.dot_dimension_numbers<[1], [0], [0], [1], [0, 0, 1, 1], [], []>} : vector<16x128xbf16>, vector<128x128xbf16>, vector<16x128xf32> -> vector<16x128xf32>
    %38 = arith.addf %32, %37 : vector<16x128xf32>
    %c0_49 = arith.constant 0 : index
    %c1_50 = arith.constant 1 : index
    %c1_51 = arith.constant 1 : index
    %c0_52 = arith.constant 0 : index
    %39 = vector.load %arg1[%c0_49, %c1_50, %c1_51, %c0_52] : memref<1x4x19x128xbf16, #tpu.memory_space<vmem>>, vector<1x1x16x128xbf16>
    %40 = vector.shape_cast %39 : vector<1x1x16x128xbf16> to vector<16x128xbf16>
    %c2_53 = arith.constant 2 : index
    %c0_54 = arith.constant 0 : index
    %c0_55 = arith.constant 0 : index
    %41 = vector.load %arg2[%c2_53, %c0_54, %c0_55] : memref<4x128x128xbf16, #tpu.memory_space<vmem>>, vector<1x128x128xbf16>
    %42 = vector.shape_cast %41 : vector<1x128x128xbf16> to vector<128x128xbf16>
    %cst_56 = arith.constant dense<0.000000e+00> : vector<16x128xf32>
    %43 = tpu.matmul %40, %42, %cst_56 {dimension_numbers = #tpu.dot_dimension_numbers<[1], [0], [0], [1], [0, 0, 1, 1], [], []>} : vector<16x128xbf16>, vector<128x128xbf16>, vector<16x128xf32> -> vector<16x128xf32>
    %44 = arith.addf %38, %43 : vector<16x128xf32>
    %c0_57 = arith.constant 0 : index
    %c1_58 = arith.constant 1 : index
    %c0_59 = arith.constant 0 : index
    %c0_60 = arith.constant 0 : index
    %45 = vector.load %arg1[%c0_57, %c1_58, %c0_59, %c0_60] : memref<1x4x19x128xbf16, #tpu.memory_space<vmem>>, vector<1x1x16x128xbf16>
    %46 = vector.shape_cast %45 : vector<1x1x16x128xbf16> to vector<16x128xbf16>
    %c3_61 = arith.constant 3 : index
    %c0_62 = arith.constant 0 : index
    %c0_63 = arith.constant 0 : index
    %47 = vector.load %arg2[%c3_61, %c0_62, %c0_63] : memref<4x128x128xbf16, #tpu.memory_space<vmem>>, vector<1x128x128xbf16>
    %48 = vector.shape_cast %47 : vector<1x128x128xbf16> to vector<128x128xbf16>
    %cst_64 = arith.constant dense<0.000000e+00> : vector<16x128xf32>
    %49 = tpu.matmul %46, %48, %cst_64 {dimension_numbers = #tpu.dot_dimension_numbers<[1], [0], [0], [1], [0, 0, 1, 1], [], []>} : vector<16x128xbf16>, vector<128x128xbf16>, vector<16x128xf32> -> vector<16x128xf32>
    %50 = arith.addf %44, %49 : vector<16x128xf32>
    %51 = arith.mulf %50, %0 : vector<16x128xf32>
    %c0_65 = arith.constant 0 : index
    %c1_66 = arith.constant 1 : index
    %c0_67 = arith.constant 0 : index
    %c0_68 = arith.constant 0 : index
    %52 = vector.load %arg4[%c0_65, %c1_66, %c0_67, %c0_68] : memref<1x4x16x128xf32, #tpu.memory_space<vmem>>, vector<1x1x16x128xf32>
    %53 = vector.shape_cast %52 : vector<1x1x16x128xf32> to vector<16x128xf32>
    %54 = vector.shape_cast %51 : vector<16x128xf32> to vector<1x1x16x128xf32>
    tpu.vector_store %arg4[%c0_65, %c1_66, %c0_67, %c0_68], %54 {strides = array<i32>} : memref<1x4x16x128xf32, #tpu.memory_space<vmem>>, vector<1x1x16x128xf32>,
    %c0_69 = arith.constant 0 : index
    %c2_70 = arith.constant 2 : index
    %c3_71 = arith.constant 3 : index
    %c0_72 = arith.constant 0 : index
    %55 = vector.load %arg1[%c0_69, %c2_70, %c3_71, %c0_72] : memref<1x4x19x128xbf16, #tpu.memory_space<vmem>>, vector<1x1x16x128xbf16>
    %56 = vector.shape_cast %55 : vector<1x1x16x128xbf16> to vector<16x128xbf16>
    %c0_73 = arith.constant 0 : index
    %c0_74 = arith.constant 0 : index
    %c0_75 = arith.constant 0 : index
    %57 = vector.load %arg2[%c0_73, %c0_74, %c0_75] : memref<4x128x128xbf16, #tpu.memory_space<vmem>>, vector<1x128x128xbf16>
    %58 = vector.shape_cast %57 : vector<1x128x128xbf16> to vector<128x128xbf16>
    %cst_76 = arith.constant dense<0.000000e+00> : vector<16x128xf32>
    %59 = tpu.matmul %56, %58, %cst_76 {dimension_numbers = #tpu.dot_dimension_numbers<[1], [0], [0], [1], [0, 0, 1, 1], [], []>} : vector<16x128xbf16>, vector<128x128xbf16>, vector<16x128xf32> -> vector<16x128xf32>
    %c0_77 = arith.constant 0 : index
    %c2_78 = arith.constant 2 : index
    %c2_79 = arith.constant 2 : index
    %c0_80 = arith.constant 0 : index
    %60 = vector.load %arg1[%c0_77, %c2_78, %c2_79, %c0_80] : memref<1x4x19x128xbf16, #tpu.memory_space<vmem>>, vector<1x1x16x128xbf16>
    %61 = vector.shape_cast %60 : vector<1x1x16x128xbf16> to vector<16x128xbf16>
    %c1_81 = arith.constant 1 : index
    %c0_82 = arith.constant 0 : index
    %c0_83 = arith.constant 0 : index
    %62 = vector.load %arg2[%c1_81, %c0_82, %c0_83] : memref<4x128x128xbf16, #tpu.memory_space<vmem>>, vector<1x128x128xbf16>
    %63 = vector.shape_cast %62 : vector<1x128x128xbf16> to vector<128x128xbf16>
    %cst_84 = arith.constant dense<0.000000e+00> : vector<16x128xf32>
    %64 = tpu.matmul %61, %63, %cst_84 {dimension_numbers = #tpu.dot_dimension_numbers<[1], [0], [0], [1], [0, 0, 1, 1], [], []>} : vector<16x128xbf16>, vector<128x128xbf16>, vector<16x128xf32> -> vector<16x128xf32>
    %65 = arith.addf %59, %64 : vector<16x128xf32>
    %c0_85 = arith.constant 0 : index
    %c2_86 = arith.constant 2 : index
    %c1_87 = arith.constant 1 : index
    %c0_88 = arith.constant 0 : index
    %66 = vector.load %arg1[%c0_85, %c2_86, %c1_87, %c0_88] : memref<1x4x19x128xbf16, #tpu.memory_space<vmem>>, vector<1x1x16x128xbf16>
    %67 = vector.shape_cast %66 : vector<1x1x16x128xbf16> to vector<16x128xbf16>
    %c2_89 = arith.constant 2 : index
    %c0_90 = arith.constant 0 : index
    %c0_91 = arith.constant 0 : index
    %68 = vector.load %arg2[%c2_89, %c0_90, %c0_91] : memref<4x128x128xbf16, #tpu.memory_space<vmem>>, vector<1x128x128xbf16>
    %69 = vector.shape_cast %68 : vector<1x128x128xbf16> to vector<128x128xbf16>
    %cst_92 = arith.constant dense<0.000000e+00> : vector<16x128xf32>
    %70 = tpu.matmul %67, %69, %cst_92 {dimension_numbers = #tpu.dot_dimension_numbers<[1], [0], [0], [1], [0, 0, 1, 1], [], []>} : vector<16x128xbf16>, vector<128x128xbf16>, vector<16x128xf32> -> vector<16x128xf32>
    %71 = arith.addf %65, %70 : vector<16x128xf32>
    %c0_93 = arith.constant 0 : index
    %c2_94 = arith.constant 2 : index
    %c0_95 = arith.constant 0 : index
    %c0_96 = arith.constant 0 : index
    %72 = vector.load %arg1[%c0_93, %c2_94, %c0_95, %c0_96] : memref<1x4x19x128xbf16, #tpu.memory_space<vmem>>, vector<1x1x16x128xbf16>
    %73 = vector.shape_cast %72 : vector<1x1x16x128xbf16> to vector<16x128xbf16>
    %c3_97 = arith.constant 3 : index
    %c0_98 = arith.constant 0 : index
    %c0_99 = arith.constant 0 : index
    %74 = vector.load %arg2[%c3_97, %c0_98, %c0_99] : memref<4x128x128xbf16, #tpu.memory_space<vmem>>, vector<1x128x128xbf16>
    %75 = vector.shape_cast %74 : vector<1x128x128xbf16> to vector<128x128xbf16>
    %cst_100 = arith.constant dense<0.000000e+00> : vector<16x128xf32>
    %76 = tpu.matmul %73, %75, %cst_100 {dimension_numbers = #tpu.dot_dimension_numbers<[1], [0], [0], [1], [0, 0, 1, 1], [], []>} : vector<16x128xbf16>, vector<128x128xbf16>, vector<16x128xf32> -> vector<16x128xf32>
    %77 = arith.addf %71, %76 : vector<16x128xf32>
    %78 = arith.mulf %77, %0 : vector<16x128xf32>
    %c0_101 = arith.constant 0 : index
    %c2_102 = arith.constant 2 : index
    %c0_103 = arith.constant 0 : index
    %c0_104 = arith.constant 0 : index
    %79 = vector.load %arg4[%c0_101, %c2_102, %c0_103, %c0_104] : memref<1x4x16x128xf32, #tpu.memory_space<vmem>>, vector<1x1x16x128xf32>
    %80 = vector.shape_cast %79 : vector<1x1x16x128xf32> to vector<16x128xf32>
    %81 = vector.shape_cast %78 : vector<16x128xf32> to vector<1x1x16x128xf32>
    tpu.vector_store %arg4[%c0_101, %c2_102, %c0_103, %c0_104], %81 {strides = array<i32>} : memref<1x4x16x128xf32, #tpu.memory_space<vmem>>, vector<1x1x16x128xf32>,
    %c0_105 = arith.constant 0 : index
    %c3_106 = arith.constant 3 : index
    %c3_107 = arith.constant 3 : index
    %c0_108 = arith.constant 0 : index
    %82 = vector.load %arg1[%c0_105, %c3_106, %c3_107, %c0_108] : memref<1x4x19x128xbf16, #tpu.memory_space<vmem>>, vector<1x1x16x128xbf16>
    %83 = vector.shape_cast %82 : vector<1x1x16x128xbf16> to vector<16x128xbf16>
    %c0_109 = arith.constant 0 : index
    %c0_110 = arith.constant 0 : index
    %c0_111 = arith.constant 0 : index
    %84 = vector.load %arg2[%c0_109, %c0_110, %c0_111] : memref<4x128x128xbf16, #tpu.memory_space<vmem>>, vector<1x128x128xbf16>
    %85 = vector.shape_cast %84 : vector<1x128x128xbf16> to vector<128x128xbf16>
    %cst_112 = arith.constant dense<0.000000e+00> : vector<16x128xf32>
    %86 = tpu.matmul %83, %85, %cst_112 {dimension_numbers = #tpu.dot_dimension_numbers<[1], [0], [0], [1], [0, 0, 1, 1], [], []>} : vector<16x128xbf16>, vector<128x128xbf16>, vector<16x128xf32> -> vector<16x128xf32>
    %c0_113 = arith.constant 0 : index
    %c3_114 = arith.constant 3 : index
    %c2_115 = arith.constant 2 : index
    %c0_116 = arith.constant 0 : index
    %87 = vector.load %arg1[%c0_113, %c3_114, %c2_115, %c0_116] : memref<1x4x19x128xbf16, #tpu.memory_space<vmem>>, vector<1x1x16x128xbf16>
    %88 = vector.shape_cast %87 : vector<1x1x16x128xbf16> to vector<16x128xbf16>
    %c1_117 = arith.constant 1 : index
    %c0_118 = arith.constant 0 : index
    %c0_119 = arith.constant 0 : index
    %89 = vector.load %arg2[%c1_117, %c0_118, %c0_119] : memref<4x128x128xbf16, #tpu.memory_space<vmem>>, vector<1x128x128xbf16>
    %90 = vector.shape_cast %89 : vector<1x128x128xbf16> to vector<128x128xbf16>
    %cst_120 = arith.constant dense<0.000000e+00> : vector<16x128xf32>
    %91 = tpu.matmul %88, %90, %cst_120 {dimension_numbers = #tpu.dot_dimension_numbers<[1], [0], [0], [1], [0, 0, 1, 1], [], []>} : vector<16x128xbf16>, vector<128x128xbf16>, vector<16x128xf32> -> vector<16x128xf32>
    %92 = arith.addf %86, %91 : vector<16x128xf32>
    %c0_121 = arith.constant 0 : index
    %c3_122 = arith.constant 3 : index
    %c1_123 = arith.constant 1 : index
    %c0_124 = arith.constant 0 : index
    %93 = vector.load %arg1[%c0_121, %c3_122, %c1_123, %c0_124] : memref<1x4x19x128xbf16, #tpu.memory_space<vmem>>, vector<1x1x16x128xbf16>
    %94 = vector.shape_cast %93 : vector<1x1x16x128xbf16> to vector<16x128xbf16>
    %c2_125 = arith.constant 2 : index
    %c0_126 = arith.constant 0 : index
    %c0_127 = arith.constant 0 : index
    %95 = vector.load %arg2[%c2_125, %c0_126, %c0_127] : memref<4x128x128xbf16, #tpu.memory_space<vmem>>, vector<1x128x128xbf16>
    %96 = vector.shape_cast %95 : vector<1x128x128xbf16> to vector<128x128xbf16>
    %cst_128 = arith.constant dense<0.000000e+00> : vector<16x128xf32>
    %97 = tpu.matmul %94, %96, %cst_128 {dimension_numbers = #tpu.dot_dimension_numbers<[1], [0], [0], [1], [0, 0, 1, 1], [], []>} : vector<16x128xbf16>, vector<128x128xbf16>, vector<16x128xf32> -> vector<16x128xf32>
    %98 = arith.addf %92, %97 : vector<16x128xf32>
    %c0_129 = arith.constant 0 : index
    %c3_130 = arith.constant 3 : index
    %c0_131 = arith.constant 0 : index
    %c0_132 = arith.constant 0 : index
    %99 = vector.load %arg1[%c0_129, %c3_130, %c0_131, %c0_132] : memref<1x4x19x128xbf16, #tpu.memory_space<vmem>>, vector<1x1x16x128xbf16>
    %100 = vector.shape_cast %99 : vector<1x1x16x128xbf16> to vector<16x128xbf16>
    %c3_133 = arith.constant 3 : index
    %c0_134 = arith.constant 0 : index
    %c0_135 = arith.constant 0 : index
    %101 = vector.load %arg2[%c3_133, %c0_134, %c0_135] : memref<4x128x128xbf16, #tpu.memory_space<vmem>>, vector<1x128x128xbf16>
    %102 = vector.shape_cast %101 : vector<1x128x128xbf16> to vector<128x128xbf16>
    %cst_136 = arith.constant dense<0.000000e+00> : vector<16x128xf32>
    %103 = tpu.matmul %100, %102, %cst_136 {dimension_numbers = #tpu.dot_dimension_numbers<[1], [0], [0], [1], [0, 0, 1, 1], [], []>} : vector<16x128xbf16>, vector<128x128xbf16>, vector<16x128xf32> -> vector<16x128xf32>
    %104 = arith.addf %98, %103 : vector<16x128xf32>
    %105 = arith.mulf %104, %0 : vector<16x128xf32>
    %c0_137 = arith.constant 0 : index
    %c3_138 = arith.constant 3 : index
    %c0_139 = arith.constant 0 : index
    %c0_140 = arith.constant 0 : index
    %106 = vector.load %arg4[%c0_137, %c3_138, %c0_139, %c0_140] : memref<1x4x16x128xf32, #tpu.memory_space<vmem>>, vector<1x1x16x128xf32>
    %107 = vector.shape_cast %106 : vector<1x1x16x128xf32> to vector<16x128xf32>
    %108 = vector.shape_cast %105 : vector<16x128xf32> to vector<1x1x16x128xf32>
    tpu.vector_store %arg4[%c0_137, %c3_138, %c0_139, %c0_140], %108 {strides = array<i32>} : memref<1x4x16x128xf32, #tpu.memory_space<vmem>>, vector<1x1x16x128xf32>,
    return
  }
  func.func @transform_0(%arg0: i32) -> (i32, i32, i32, i32) {
    %c0_i32 = arith.constant 0 : i32
    %c0_i32_0 = arith.constant 0 : i32
    %c0_i32_1 = arith.constant 0 : i32
    %c0_i32_2 = arith.constant 0 : i32
    return %arg0, %c0_i32, %c0_i32_0, %c0_i32_1 : i32, i32, i32, i32
  }
  func.func @transform_1(%arg0: i32) -> (i32, i32, i32) {
    %c0_i32 = arith.constant 0 : i32
    %c0_i32_0 = arith.constant 0 : i32
    %c0_i32_1 = arith.constant 0 : i32
    %c0_i32_2 = arith.constant 0 : i32
    return %c0_i32, %c0_i32_0, %c0_i32_1 : i32, i32, i32
  }
  func.func @transform_2(%arg0: i32) -> (i32, i32) {
    %c0_i32 = arith.constant 0 : i32
    %c0_i32_0 = arith.constant 0 : i32
    %c0_i32_1 = arith.constant 0 : i32
    return %c0_i32, %c0_i32_0 : i32, i32
  }
  func.func @transform_3(%arg0: i32) -> (i32, i32, i32, i32) {
    %c0_i32 = arith.constant 0 : i32
    %c0_i32_0 = arith.constant 0 : i32
    %c0_i32_1 = arith.constant 0 : i32
    %c0_i32_2 = arith.constant 0 : i32
    return %arg0, %c0_i32, %c0_i32_0, %c0_i32_1 : i32, i32, i32, i32
  }
}

</mosaic_0001>

<bundles_post_ra>
// kernel: tpu_custom_call.1
= control target key start
LH: loop header
LB: loop body
LE: loop exit
PB: predicated region body
PF: predicated region fallthrough
CT: control target
= control target key end

     0   :  { %8 = vsyncpa [#allocation3], 0  ;;  %s3617_s0 = inlined_call_operand.vmem [shape: bf16[2,4,19,128], index: 0, kind: input, shape index: {}]   ;;  %s3618_s1 = inlined_call_operand.hbm [shape: bf16[4,128,128], index: 1, kind: input, shape index: {}]   ;;  %s3619_s2 = inlined_call_operand.vmem [shape: f32[16,128], index: 2, kind: input, shape index: {}]   ;;  %s3620_s3 = inlined_call_operand.hbm [shape: f32[2,4,16,128], index: 3, kind: output, shape index: {}]  }
   0x1   :  { %9 = vsyncpa [#allocation4], 0 }
   0x2   :  { %11 = vsyncpa [#allocation4 + $0x1], 0  ;;  %s3225_s12 = smov 0   ;;  %s3227_s13 = smov 0  }
   0x3   :  { %s3229_s14 = smov 0   ;;  %s3231_s15 = smov 0  }
   0x4 LB: > { %s3246_s16 = sadd.s32 4294967295, %s3195_s15   ;;  %s2247_s17 = sadd.s32 4294967294, %s3195_s15   ;;  %s3195_s15 = sphi %s3231_s15, %s3628_s15   ;;  %s3191_s14 = sphi %s3229_s14, %s3627_s14   ;;  %s3187_s13 = sphi %s3227_s13, %s3626_s13   ;;  %s3183_s12 = sphi %s3225_s12, %s3625_s12  }
   0x5   : > { %s3250_s18 = sadd.s32 1, %s3195_s15   ;;  %s92_s19 = sadd.s32 1, %s3191_s14 }
   0x6   : > { %s89_s20 = ssub.s32 %s3195_s15, %s3250_s18  ;;  %p102_p0 = scmp.ne.s32.totalorder %s3191_s14, %s3187_s13 }
   0x7   : > { %p90_p1 = scmp.eq.s32.totalorder %s89_s20, 0  ;;  %p103_p2 = scmp.eq.s32.totalorder %s3246_s16, 1 }
   0x8   : > { %p108_p3 = scmp.ne.s32.totalorder %s3187_s13, %s3183_s12  ;;  %p109_p4 = scmp.eq.s32.totalorder %s2247_s17, 1 }
   0x9   : > { %s3261_s21 = scalar_select %p90_p1, %s3191_s14, %s92_s19  }
   0xa   : > { %p3263_p5 = por %p103_p2, %p102_p0  ;;  %p3267_p6 = por %p109_p4, %p108_p3 }
   0xb   : > { %p2248_p7 = scmp.ge.s32.totalorder %s3195_s15, 1  ;;  %p116_p8 = scmp.lt.s32.totalorder %s3195_s15, 3 }
   0xc   : > { %s3622_s23 = scalar_select %p3267_p6, 1, 0 }
   0xd   : > { %p2915_p9 = scmp.eq.s32.totalorder %s3246_s16, 0  ;;  %p3274_p10 = pnand %p2248_p7, %p116_p8 }
   0xe   : > { %s3197_s25 = smov [#allocation2]  }
   0xf   : > { %s128_s26 = sshll.u32 %s3197_s25, 4  ;;  %p2907_p11 = pneg %p3274_p10  ;;  %s129_s26 = int_to_ptr.vmem [resolvable:$true] %s128_s26 }
  0x10   : > { %s3116_s27 = scalar_lea.vmem %s129_s26, 4096  ;;  %p3124_p3 = scmp.lt.s32.totalorder %s129_s26, %s129_s26 }
  0x11   : > { %p2908_p12 = pnand %p2915_p9, %p2907_p11  ;;  %p3117_p0 = scmp.ne.s32.totalorder %s129_s26, %s3116_s27 }
  0x12   : > { %p3125_p4 = scmp.lt.s32.totalorder %s3116_s27, %s3116_s27 }
  0x13   : > { %p3107_p13 = pneg %p2908_p12 }
  0x14   : > { %p3126_p6 = por %p3125_p4, %p3124_p3 }
  0x15   : > { %p3119_p1 = pnand %p3117_p0, %p3107_p13 }
  0x17   : > { %p3120_p2 = pneg %p3119_p1 }
  0x19   : > { %p3127_p7 = pnand %p3126_p6, %p3120_p2 }
  0x1b   : > { %3130 = shalt.err (!%p3127_p7)
}
  0x1c   : > { %s3198_s28 = smov 64   ;;  %s3199_s29 = smov 4  }
  0x1d   : > { %2910 = dma.hbm_to_vmem [thread:$0]  (!%p2908_p12), %s3618_s1, 4096, %s129_s26, [#allocation3], %s3198_s28, %s3198_s28, %s3199_s29  }
  0x1e   : > { %155 = sbr.rel (%p3274_p10) target bundleno = 511 (0x1ff), region = 32 }
  0x23   : > { %3174 = dma.done.wait (%p2915_p9), [#allocation3], 4096  }
  0x24   : > { %3176 = vsyncadd (%p2915_p9), [#allocation3], 4294963200  ;;  %v3200_v0 = vmov 0.0   ;;  %vm3201_vm0 = vmmov 0   ;;  %v2957_v1 = vld [vmem:[#allocation2 + $0x78] sm:$0xff]   ;;  %p179_p6 = scmp.lt.s32.totalorder %s3246_s16, 1 }
  0x25   : > { %2580 = vmatprep.subr.bf16.mxu0 %v3200_v0  ;;  %2600 = vmatprep.subr.bf16.mxu1 %v3200_v0  ;;  %v2958_v2 = vld [vmem:[#allocation2 + $0x38] sm:$0xff]   ;;  %v2959_v3 = vld [vmem:[#allocation2 + $0x70] sm:$0xff]   ;;  %v2961_v5 = vld [vmem:[#allocation2 + $0x68] sm:$0xff]   ;;  %vm232_vm1 = vcmask 1046528   ;;  %vm329_vm2 = vsmask.f32 6400 }
  0x26   : > { %2596 = vmatprep.mubr.msk.bf16.mxu0 %vm3201_vm0, %v3200_v0  ;;  %2616 = vmatprep.mubr.msk.bf16.mxu1 %vm3201_vm0, %v3200_v0  ;;  %v2960_v4 = vld [vmem:[#allocation2 + $0x30] sm:$0xff]   ;;  %s180_s5 = scalar_select %p179_p6, %s3246_s16, 1  ;;  %v2962_v6 = vld [vmem:[#allocation2 + $0x28] sm:$0xff]   ;;  %v2963_v7 = vld [vmem:[#allocation2 + $0x60] sm:$0xff]   ;;  %vm458_vm3 = vsmask.f32 7424 }
  0x27   : > { %2581 = vmatpush3.bf16.msra.mxu0 %v2957_v1  ;;  %2601 = vmatpush3.bf16.msra.mxu1 %v2958_v2  ;;  %v2964_v8 = vld [vmem:[#allocation2 + $0x20] sm:$0xff]   ;;  %v2965_v9 = vld [vmem:[#allocation2 + $0x58] sm:$0xff]   ;;  %v2967_v14 = vld [vmem:[#allocation2 + $0x50] sm:$0xff]   ;;  %s176_s10 = sand.u32 1, %s3187_s13   ;;  %s2435_s27 = sshll.u32 %s3246_s16, 10 }
  0x28   : > { %2582 = vmatprep.subr.bf16.mxu0 %v3200_v0  ;;  %2602 = vmatprep.subr.bf16.mxu1 %v3200_v0  ;;  %s2900_s6 = smul.u32 48, %s180_s5  ;;  %v2966_v10 = vld [vmem:[#allocation2 + $0x18] sm:$0xff]   ;;  %v2968_v16 = vld [vmem:[#allocation2 + $0x10] sm:$0xff]   ;;  %v2969_v19 = vld [vmem:[#allocation2 + $0x48] sm:$0xff]   ;;  %s2253_s11 = sshll.u32 %s176_s10, 6 }
  0x29   : > { %v2970_v23 = vld [vmem:[#allocation2 + $0x8] sm:$0xff]   ;;  %v2971_v28 = vld [vmem:[#allocation2 + $0x40] sm:$0xff]   ;;  %v2976_v35 = vld [vmem:[#allocation2 + $0xb8] sm:$0xff]   ;;  %s3549_s25 = scalar_lea.vmem [#allocation5], %s2253_s11  ;;  %s3572_s30 = scalar_lea.hbm %s3620_s3, %s2435_s27 }
  0x2a   : > { %s3308_s9 = scalar_lea.vmem %s3617_s0, %s2900_s6  ;;  %v2972_v31 = vld [vmem:[#allocation2] sm:$0xff]   ;;  %v2977_v37 = vld [vmem:[#allocation2 + $0xf8] sm:$0xff]   ;;  %v2978_v38 = vld [vmem:[#allocation2 + $0xb0] sm:$0xff]   ;;  %s2173_s26 = sshll.u32 %s3549_s25, 4  ;;  %s3566_s26 = int_to_ptr.vmem [resolvable:$true] %s2173_s26 }
  0x2b   : > { %2583 = vmatpush3.bf16.msra.mxu0 %v2959_v3  ;;  %2603 = vmatpush3.bf16.msra.mxu1 %v2960_v4  ;;  %v187_v11 = vld [vmem:[%s3308_s9] sm:$0xe]  ;;  %v3314_v12 = vld [vmem:[%s3308_s9 + $0x4] sm:$0xf]  ;;  %v2979_v39 = vld [vmem:[#allocation2 + $0xf0] sm:$0xff]   ;;  %s3577_s4 = scalar_lea.sflag [#allocation4], %s176_s10 }
  0x2c   : > { %2584 = vmatprep.subr.bf16.mxu0 %v3200_v0  ;;  %2604 = vmatprep.subr.bf16.mxu1 %v3200_v0  ;;  %v2255_v13 = vcombine.low %v187_v11, %v3314_v12  ;;  %v2975_v15 = vld [vmem:[%s3308_s9 + $0x8] ss:$0 sps:$4 sm:$0x33]   ;;  %v2982_v42 = vld [vmem:[#allocation2 + $0xa0] sm:$0xff]   ;;  %v2984_v45 = vld [vmem:[#allocation2 + $0x98] sm:$0xff]   ;;  %s3131_s16 = scalar_lea.vmem %s3566_s26, 1024 }
  0x2d   : > { %v3321_v20 = vld [vmem:[%s3308_s9 + $0x8] ss:$0 sps:$4 sm:$0x11]   ;;  %v339_v21 = vshrl.u32 %v2975_v15, 16  ;;  %v342_v22 = vshll.u32 %v2975_v15, 16  ;;  %v2983_v43 = vld [vmem:[#allocation2 + $0xe0] sm:$0xff]   ;;  %p3132_p8 = scmp.ne.s32.totalorder %s3566_s26, %s3131_s16 }
  0x2e   : > { %v331_v17 = vshrl.u32 %v2255_v13, 16  ;;  %v334_v18 = vshll.u32 %v2255_v13, 16  ;;  %v233_v29 = vrot.slane %v2255_v13, 1  ;;  %v234_v30 = vrot.slane %v3321_v20, 1  ;;  %v2980_v40 = vld [vmem:[#allocation2 + $0xa8] sm:$0xff]   ;;  %v2985_v47 = vld [vmem:[#allocation2 + $0xd8] sm:$0xff]  }
  0x2f   : > { %2585 = vmatpush3.bf16.msra.mxu0 %v2961_v5  ;;  %2605 = vmatpush3.bf16.msra.mxu1 %v2962_v6  ;;  %v341_v26 = vrot.slane %v339_v21, 1  ;;  %v344_v27 = vrot.slane %v342_v22, 2  ;;  %v2981_v41 = vld [vmem:[#allocation2 + $0xe8] sm:$0xff]   ;;  %v437_v44 = vld [vmem:[%s3308_s9] sm:$0xf]  ;;  %v2986_v48 = vld [vmem:[#allocation2 + $0x90] sm:$0xff]   ;;  %p3133_p9 = pnand %p3132_p8, %p3263_p5 }
  0x30   : > { %2586 = vmatprep.subr.bf16.mxu0 %v3200_v0  ;;  %2606 = vmatprep.subr.bf16.mxu1 %v3200_v0  ;;  %v333_v24 = vrot.slane %v331_v17, 1  ;;  %v336_v25 = vrot.slane %v334_v18, 2  ;;  %v235_v34 = vsel %vm232_vm1, %v233_v29, %v234_v30  ;;  %v2274_v46 = vcombine.low %v437_v44, %v3314_v12  ;;  %v2987_v50 = vld [vmem:[#allocation2 + $0xd0] sm:$0xff]   ;;  %v2988_v51 = vld [vmem:[#allocation2 + $0x88] sm:$0xff]   ;;  %v2990_v56 = vld [vmem:[#allocation2 + $0x80] sm:$0xff]   ;;  %s3202_s5 = smov [#allocation5]  }
  0x31   : > { %v345_v33 = vor.u32 %v344_v27, %v341_v26  ;;  %v467_v54 = vshll.u32 %v3321_v20, 16  ;;  %v2989_v55 = vld [vmem:[#allocation2 + $0xc8] sm:$0xff]   ;;  %v2991_v59 = vld [vmem:[#allocation2 + $0xc0] sm:$0xff]   ;;  %v2994_v62 = vld [vmem:[#allocation2 + $0x78] sm:$0xff]   ;;  %p3134_p10 = pneg %p3133_p9  ;;  %s3135_s6 = sshll.u32 %s3202_s5, 4  ;;  %s3136_s6 = int_to_ptr.vmem [resolvable:$false] %s3135_s6 }
  0x32   : > { %v337_v32 = vor.u32 %v336_v25, %v333_v24  ;;  %v462_v49 = vshll.u32 %v2274_v46, 16  ;;  %v460_v52 = vshrl.u32 %v2274_v46, 16  ;;  %v2993_v60 = vld [vmem:[%s3308_s9] sm:$0xff]   ;;  %v2995_v63 = vld [vmem:[#allocation2 + $0x38] sm:$0xff]   ;;  %v2996_v1 = vld [vmem:[#allocation2 + $0x70] sm:$0xff]   ;;  %s3137_s7 = scalar_lea.vmem %s3136_s6, 2048  ;;  %p3138_p11 = scmp.lt.s32.totalorder %s3566_s26, %s3136_s6 }
  0x33   : > { %2587 = vmatpush3.bf16.msra.mxu0 %v2963_v7  ;;  %2607 = vmatpush3.bf16.msra.mxu1 %v2964_v8  ;;  %v469_v58 = vrot.slane %v467_v54, 1  ;;  %v2997_v2 = vld [vmem:[#allocation2 + $0x30] sm:$0xff]   ;;  %v2998_v3 = vld [vmem:[#allocation2 + $0x68] sm:$0xff]   ;;  %v3000_v5 = vld [vmem:[#allocation2 + $0x60] sm:$0xff]   ;;  %p3139_p12 = scmp.lt.s32.totalorder %s3137_s7, %s3131_s16 }
  0x34   : > { %2588 = vmatprep.subr.bf16.mxu0 %v3200_v0  ;;  %2608 = vmatprep.subr.bf16.mxu1 %v3200_v0  ;;  %v346_v36 = vsel %vm329_vm2, %v337_v32, %v345_v33  ;;  %v464_v53 = vrot.slane %v462_v49, 1  ;;  %v2999_v4 = vld [vmem:[#allocation2 + $0x28] sm:$0xff]   ;;  %v3001_v6 = vld [vmem:[#allocation2 + $0x20] sm:$0xff]   ;;  %v3368_v8 = vld [vmem:[%s3308_s9 + $0x10] sm:$0xf] }
  0x35   : > { %v2292_v7 = vld [vmem:[%s3308_s9 + $0xc] sm:$0xe]  ;;  %v3003_v12 = vld [vmem:[#allocation2 + $0x18] sm:$0xff]   ;;  %v3004_v13 = vld [vmem:[#allocation2 + $0x50] sm:$0xff]   ;;  %p3140_p13 = por %p3139_p12, %p3138_p11 }
  0x36   : > { %v465_v57 = vor.u32 %v464_v53, %v460_v52  ;;  %v2296_v11 = vcombine.low %v2292_v7, %v3368_v8  ;;  %v3378_v20 = vld [vmem:[%s3308_s9 + $0x14] ss:$0 sps:$4 sm:$0x11]   ;;  %v3007_v21 = vld [vmem:[#allocation2 + $0x8] sm:$0xff]   ;;  %v3008_v26 = vld [vmem:[#allocation2 + $0x40] sm:$0xff]  }
  0x37   : > { %2589 = vmatpush3.bf16.msra.mxu0 %v2965_v9  ;;  %2609 = vmatpush3.bf16.msra.mxu1 %v2966_v10  ;;  %v3012_v9 = vld [vmem:[%s3308_s9 + $0x14] ss:$0 sps:$4 sm:$0x33]   ;;  %v3002_v10 = vld [vmem:[#allocation2 + $0x58] sm:$0xff]   ;;  %v3009_v29 = vld [vmem:[#allocation2] sm:$0xff]   ;;  %p3141_p0 = pnand %p3140_p13, %p3134_p10 }
  0x38   : > { %2590 = vmatprep.subr.bf16.mxu0 %v3200_v0  ;;  %2610 = vmatprep.subr.bf16.mxu1 %v3200_v0  ;;  %v470_v61 = vsel %vm458_vm3, %v465_v57, %v469_v58  ;;  %v825_v15 = vshrl.u32 %v2296_v11, 16  ;;  %v833_v17 = vshrl.u32 %v3012_v9, 16  ;;  %v836_v18 = vshll.u32 %v3012_v9, 16  ;;  %v3013_v33 = vld [vmem:[#allocation2 + $0xb8] sm:$0xff]   ;;  %v3023_v46 = vld [vmem:[#allocation2 + $0x90] sm:$0xff]   ;;  %v3025_v49 = vld [vmem:[#allocation2 + $0x88] sm:$0xff]  }
  0x39   : > { %v728_v27 = vrot.slane %v2296_v11, 1  ;;  %v3026_v53 = vld [vmem:[#allocation2 + $0xc8] sm:$0xff]   ;;  %v3027_v54 = vld [vmem:[#allocation2 + $0x80] sm:$0xff]  }
  0x3a   : > { %v827_v22 = vrot.slane %v825_v15, 1  ;;  %v835_v24 = vrot.slane %v833_v17, 1  ;;  %v838_v25 = vrot.slane %v836_v18, 2  ;;  %v3028_v57 = vld [vmem:[#allocation2 + $0xc0] sm:$0xff]   ;;  %v3043_v17 = vld [vmem:[#allocation2 + $0x48] sm:$0xff]  }
  0x3b   : > { %2591 = vmatpush3.bf16.msra.mxu0 %v2967_v14  ;;  %2611 = vmatpush3.bf16.msra.mxu1 %v2968_v16  ;;  %v3005_v14 = vld [vmem:[#allocation2 + $0x10] sm:$0xff]   ;;  %v828_v16 = vshll.u32 %v2296_v11, 16  ;;  %v3049_v7 = vld [vmem:[%s3308_s9 + $0x20] ss:$0 sps:$4 sm:$0x33]  }
  0x3c   : > { %2592 = vmatprep.subr.bf16.mxu0 %v3200_v0  ;;  %2612 = vmatprep.subr.bf16.mxu1 %v3200_v0  ;;  %v3041_v11 = vld [vmem:[#allocation2 + $0x50] sm:$0xff]   ;;  %v1325_v15 = vshrl.u32 %v3049_v7, 16  ;;  %v3435_v18 = vld [vmem:[%s3308_s9 + $0x20] ss:$0 sps:$4 sm:$0x11]  }
  0x3f   : > { %2593 = vmatpush3.bf16.msra.mxu0 %v2969_v19  ;;  %2613 = vmatpush3.bf16.msra.mxu1 %v2970_v23  ;;  %v3006_v19 = vld [vmem:[#allocation2 + $0x48] sm:$0xff]   ;;  %v830_v23 = vrot.slane %v828_v16, 2  ;;  %v1328_v16 = vshll.u32 %v3049_v7, 16 }
  0x40   : > { %2594 = vmatprep.subr.bf16.mxu0 %v3200_v0  ;;  %2614 = vmatprep.subr.bf16.mxu1 %v3200_v0 }
  0x41   : > { %v831_v30 = vor.u32 %v830_v23, %v827_v22  ;;  %v1327_v22 = vrot.slane %v1325_v15, 1  ;;  %v1330_v23 = vrot.slane %v1328_v16, 2  ;;  %v3080_v15 = vld [vmem:[#allocation2 + $0x48] sm:$0xff]  }
  0x42   : > { %v3492_v16 = vld [vmem:[%s3308_s9 + $0x2c] ss:$0 sps:$4 sm:$0x11]  }
  0x43   : > { %2595 = vmatpush3.bf16.msra.mxu0 %v2971_v28  ;;  %2615 = vmatpush3.bf16.msra.mxu1 %v2972_v31  ;;  %v729_v28 = vrot.slane %v3378_v20, 1  ;;  %v839_v31 = vor.u32 %v838_v25, %v835_v24  ;;  %v3045_v24 = vld [vmem:[#allocation2 + $0x40] sm:$0xff]  }
  0x44   : > { %2620 = vmatprep.subr.bf16.mxu0 %v3200_v0  ;;  %2640 = vmatprep.subr.bf16.mxu1 %v3200_v0 }
  0x45   : > { %v730_v32 = vsel %vm232_vm1, %v728_v27, %v729_v28  ;;  %v3046_v27 = vld [vmem:[#allocation2] sm:$0xff]  }
  0x46   : > { %2597 = vmatmul.mubr.bf16.vlgmr.msra.gmra.mxu0 %v235_v34  ;;  %2617 = vmatmul.mubr.bf16.vlgmr.msra.gmra.mxu1 %v346_v36  ;;  %v840_v34 = vsel %vm329_vm2, %v831_v30, %v839_v31  ;;  %v3015_v36 = vld [vmem:[#allocation2 + $0xb0] sm:$0xff]   ;;  %v3050_v31 = vld [vmem:[#allocation2 + $0xb8] sm:$0xff]  }
  0x47   : > { %2621 = vmatpush3.bf16.msra.mxu0 %v2976_v35  ;;  %2641 = vmatpush3.bf16.msra.mxu1 %v2977_v37  ;;  %v3014_v35 = vld [vmem:[#allocation2 + $0xf8] sm:$0xff]   ;;  %v3016_v37 = vld [vmem:[#allocation2 + $0xf0] sm:$0xff]  }
  0x48   : > { %2622 = vmatprep.subr.bf16.mxu0 %v3200_v0  ;;  %2642 = vmatprep.subr.bf16.mxu1 %v3200_v0 }
  0x49   : > { %2636 = vmatprep.mubr.msk.bf16.mxu0 %vm3201_vm0, %v3200_v0  ;;  %2656 = vmatprep.mubr.msk.bf16.mxu1 %vm3201_vm0, %v3200_v0 }
  0x4b   : > { %2623 = vmatpush3.bf16.msra.mxu0 %v2978_v38  ;;  %2643 = vmatpush3.bf16.msra.mxu1 %v2979_v39  ;;  %v3017_v38 = vld [vmem:[#allocation2 + $0xa8] sm:$0xff]  }
  0x4c   : > { %2624 = vmatprep.subr.bf16.mxu0 %v3200_v0  ;;  %2644 = vmatprep.subr.bf16.mxu1 %v3200_v0  ;;  %v3018_v39 = vld [vmem:[#allocation2 + $0xe8] sm:$0xff]  }
  0x4f   : > { %2625 = vmatpush3.bf16.msra.mxu0 %v2980_v40  ;;  %2645 = vmatpush3.bf16.msra.mxu1 %v2981_v41  ;;  %v3019_v40 = vld [vmem:[#allocation2 + $0xa0] sm:$0xff]  }
  0x50   : > { %2626 = vmatprep.subr.bf16.mxu0 %v3200_v0  ;;  %2646 = vmatprep.subr.bf16.mxu1 %v3200_v0  ;;  %v3020_v41 = vld [vmem:[#allocation2 + $0xe0] sm:$0xff]  }
  0x53   : > { %2627 = vmatpush3.bf16.msra.mxu0 %v2982_v42  ;;  %2647 = vmatpush3.bf16.msra.mxu1 %v2983_v43  ;;  %v2315_v42 = vld [vmem:[%s3308_s9 + $0xc] sm:$0xf]  ;;  %v3021_v43 = vld [vmem:[#allocation2 + $0x98] sm:$0xff]  }
  0x54   : > { %2628 = vmatprep.subr.bf16.mxu0 %v3200_v0  ;;  %2648 = vmatprep.subr.bf16.mxu1 %v3200_v0  ;;  %v2316_v44 = vcombine.low %v2315_v42, %v3368_v8  ;;  %v3039_v8 = vld [vmem:[#allocation2 + $0x58] sm:$0xff]  }
  0x57   : > { %2629 = vmatpush3.bf16.msra.mxu0 %v2984_v45  ;;  %2649 = vmatpush3.bf16.msra.mxu1 %v2985_v47  ;;  %v3022_v45 = vld [vmem:[#allocation2 + $0xd8] sm:$0xff]   ;;  %v954_v47 = vshll.u32 %v2316_v44, 16 }
  0x58   : > { %2630 = vmatprep.subr.bf16.mxu0 %v3200_v0  ;;  %2650 = vmatprep.subr.bf16.mxu1 %v3200_v0 }
  0x59   : > { %v956_v52 = vrot.slane %v954_v47, 1  ;;  %v3062_v47 = vld [vmem:[#allocation2 + $0x88] sm:$0xff]  }
  0x5b   : > { %2631 = vmatpush3.bf16.msra.mxu0 %v2986_v48  ;;  %2651 = vmatpush3.bf16.msra.mxu1 %v2987_v50  ;;  %v3024_v48 = vld [vmem:[#allocation2 + $0xd0] sm:$0xff]   ;;  %v959_v50 = vshll.u32 %v3378_v20, 16 }
  0x5c   : > { %2632 = vmatprep.subr.bf16.mxu0 %v3200_v0  ;;  %2652 = vmatprep.subr.bf16.mxu1 %v3200_v0 }
  0x5f   : > { %2633 = vmatpush3.bf16.msra.mxu0 %v2988_v51  ;;  %2653 = vmatpush3.bf16.msra.mxu1 %v2989_v55  ;;  %v952_v51 = vshrl.u32 %v2316_v44, 16  ;;  %v3060_v44 = vld [vmem:[#allocation2 + $0x90] sm:$0xff]  }
  0x60   : > { %2634 = vmatprep.subr.bf16.mxu0 %v3200_v0  ;;  %2654 = vmatprep.subr.bf16.mxu1 %v3200_v0 }
  0x61   : > { %v957_v55 = vor.u32 %v956_v52, %v952_v51  ;;  %v3063_v51 = vld [vmem:[#allocation2 + $0xc8] sm:$0xff]   ;;  %v3064_v52 = vld [vmem:[#allocation2 + $0x80] sm:$0xff]  }
  0x63   : > { %2635 = vmatpush3.bf16.msra.mxu0 %v2990_v56  ;;  %2655 = vmatpush3.bf16.msra.mxu1 %v2991_v59  ;;  %v961_v56 = vrot.slane %v959_v50, 1  ;;  %v3030_v59 = vld [vmem:[%s3308_s9 + $0xc] sm:$0xff]   ;;  %v1451_v50 = vshll.u32 %v3435_v18, 16 }
  0x64   : > { %2660 = vmatprep.subr.bf16.mxu0 %v3200_v0  ;;  %2680 = vmatprep.subr.bf16.mxu1 %v3200_v0 }
  0x65   : > { %v962_v58 = vsel %vm458_vm3, %v957_v55, %v961_v56  ;;  %v3065_v55 = vld [vmem:[#allocation2 + $0xc0] sm:$0xff]  }
  0x66   : > { %2637 = vmatmul.mubr.bf16.vlgmr.msra.gmra.mxu0 %v470_v61  ;;  %2657 = vmatmul.mubr.bf16.vlgmr.msra.gmra.mxu1 %v2993_v60  ;;  %v3031_v60 = vld [vmem:[#allocation2 + $0x78] sm:$0xff]  }
  0x67   : > { %2661 = vmatpush3.bf16.msra.mxu0 %v2994_v62  ;;  %2681 = vmatpush3.bf16.msra.mxu1 %v2995_v63  ;;  %v3032_v61 = vld [vmem:[#allocation2 + $0x38] sm:$0xff]   ;;  %v3033_v62 = vld [vmem:[#allocation2 + $0x70] sm:$0xff]  }
  0x68   : > { %2662 = vmatprep.subr.bf16.mxu0 %v3200_v0  ;;  %2682 = vmatprep.subr.bf16.mxu1 %v3200_v0  ;;  %v3034_v63 = vld [vmem:[#allocation2 + $0x30] sm:$0xff]  }
  0x69   : > { %2676 = vmatprep.mubr.msk.bf16.mxu0 %vm3201_vm0, %v3200_v0  ;;  %2696 = vmatprep.mubr.msk.bf16.mxu1 %vm3201_vm0, %v3200_v0 }
  0x6b   : > { %2663 = vmatpush3.bf16.msra.mxu0 %v2996_v1  ;;  %2683 = vmatpush3.bf16.msra.mxu1 %v2997_v2  ;;  %v3035_v1 = vld [vmem:[#allocation2 + $0x68] sm:$0xff]  }
  0x6c   : > { %2664 = vmatprep.subr.bf16.mxu0 %v3200_v0  ;;  %2684 = vmatprep.subr.bf16.mxu1 %v3200_v0  ;;  %v3036_v2 = vld [vmem:[#allocation2 + $0x28] sm:$0xff]  }
  0x6f   : > { %2665 = vmatpush3.bf16.msra.mxu0 %v2998_v3  ;;  %2685 = vmatpush3.bf16.msra.mxu1 %v2999_v4  ;;  %v3037_v3 = vld [vmem:[#allocation2 + $0x60] sm:$0xff]  }
  0x70   : > { %2666 = vmatprep.subr.bf16.mxu0 %v3200_v0  ;;  %2686 = vmatprep.subr.bf16.mxu1 %v3200_v0  ;;  %v3038_v4 = vld [vmem:[#allocation2 + $0x20] sm:$0xff]  }
  0x73   : > { %2667 = vmatpush3.bf16.msra.mxu0 %v3000_v5  ;;  %2687 = vmatpush3.bf16.msra.mxu1 %v3001_v6  ;;  %v2338_v5 = vld [vmem:[%s3308_s9 + $0x18] sm:$0xe]  ;;  %v3425_v6 = vld [vmem:[%s3308_s9 + $0x1c] sm:$0xf] }
  0x74   : > { %2668 = vmatprep.subr.bf16.mxu0 %v3200_v0  ;;  %2688 = vmatprep.subr.bf16.mxu1 %v3200_v0  ;;  %v2342_v9 = vcombine.low %v2338_v5, %v3425_v6  ;;  %v3076_v5 = vld [vmem:[#allocation2 + $0x58] sm:$0xff]  }
  0x76   : > { %v1220_v25 = vrot.slane %v2342_v9, 1 }
  0x77   : > { %2669 = vmatpush3.bf16.msra.mxu0 %v3002_v10  ;;  %2689 = vmatpush3.bf16.msra.mxu1 %v3003_v12  ;;  %v3040_v10 = vld [vmem:[#allocation2 + $0x18] sm:$0xff]   ;;  %v3042_v12 = vld [vmem:[#allocation2 + $0x10] sm:$0xff]  }
  0x78   : > { %2670 = vmatprep.subr.bf16.mxu0 %v3200_v0  ;;  %2690 = vmatprep.subr.bf16.mxu1 %v3200_v0 }
  0x7b   : > { %2671 = vmatpush3.bf16.msra.mxu0 %v3004_v13  ;;  %2691 = vmatpush3.bf16.msra.mxu1 %v3005_v14  ;;  %v1317_v13 = vshrl.u32 %v2342_v9, 16  ;;  %v1320_v14 = vshll.u32 %v2342_v9, 16  ;;  %v3078_v9 = vld [vmem:[#allocation2 + $0x50] sm:$0xff]  }
  0x7c   : > { %2672 = vmatprep.subr.bf16.mxu0 %v3200_v0  ;;  %2692 = vmatprep.subr.bf16.mxu1 %v3200_v0 }
  0x7d   : > { %v1319_v20 = vrot.slane %v1317_v13, 1 }
  0x7f   : > { %2673 = vmatpush3.bf16.msra.mxu0 %v3006_v19  ;;  %2693 = vmatpush3.bf16.msra.mxu1 %v3007_v21  ;;  %v3044_v19 = vld [vmem:[#allocation2 + $0x8] sm:$0xff]   ;;  %v1322_v21 = vrot.slane %v1320_v14, 2 }
  0x80   : > { %2674 = vmatprep.subr.bf16.mxu0 %v3200_v0  ;;  %2694 = vmatprep.subr.bf16.mxu1 %v3200_v0 }
  0x81   : > { %v1323_v28 = vor.u32 %v1322_v21, %v1319_v20 }
  0x83   : > { %2675 = vmatpush3.bf16.msra.mxu0 %v3008_v26  ;;  %2695 = vmatpush3.bf16.msra.mxu1 %v3009_v29  ;;  %v1221_v26 = vrot.slane %v3435_v18, 1  ;;  %v1331_v29 = vor.u32 %v1330_v23, %v1327_v22  ;;  %v3082_v22 = vld [vmem:[#allocation2 + $0x40] sm:$0xff]  }
  0x84   : > { %2700 = vmatprep.subr.bf16.mxu0 %v3200_v0  ;;  %2720 = vmatprep.subr.bf16.mxu1 %v3200_v0 }
  0x85   : > { %v1222_v30 = vsel %vm232_vm1, %v1220_v25, %v1221_v26  ;;  %v3083_v25 = vld [vmem:[#allocation2] sm:$0xff]  }
  0x86   : > { %2677 = vmatmul.mubr.bf16.vlgmr.msra.gmra.mxu0 %v730_v32  ;;  %2697 = vmatmul.mubr.bf16.vlgmr.msra.gmra.mxu1 %v840_v34  ;;  %v1332_v32 = vsel %vm329_vm2, %v1323_v28, %v1331_v29  ;;  %v3052_v34 = vld [vmem:[#allocation2 + $0xb0] sm:$0xff]   ;;  %v3087_v29 = vld [vmem:[#allocation2 + $0xb8] sm:$0xff]  }
  0x87   : > { %2701 = vmatpush3.bf16.msra.mxu0 %v3013_v33  ;;  %2721 = vmatpush3.bf16.msra.mxu1 %v3014_v35  ;;  %v3051_v33 = vld [vmem:[#allocation2 + $0xf8] sm:$0xff]   ;;  %v3053_v35 = vld [vmem:[#allocation2 + $0xf0] sm:$0xff]  }
  0x88   : > { %2702 = vmatprep.subr.bf16.mxu0 %v3200_v0  ;;  %2722 = vmatprep.subr.bf16.mxu1 %v3200_v0 }
  0x89   : > { %2716 = vmatprep.mubr.msk.bf16.mxu0 %vm3201_vm0, %v3200_v0  ;;  %2736 = vmatprep.mubr.msk.bf16.mxu1 %vm3201_vm0, %v3200_v0 }
  0x8b   : > { %2703 = vmatpush3.bf16.msra.mxu0 %v3015_v36  ;;  %2723 = vmatpush3.bf16.msra.mxu1 %v3016_v37  ;;  %v3054_v36 = vld [vmem:[#allocation2 + $0xa8] sm:$0xff]  }
  0x8c   : > { %2704 = vmatprep.subr.bf16.mxu0 %v3200_v0  ;;  %2724 = vmatprep.subr.bf16.mxu1 %v3200_v0  ;;  %v3055_v37 = vld [vmem:[#allocation2 + $0xe8] sm:$0xff]  }
  0x8f   : > { %2705 = vmatpush3.bf16.msra.mxu0 %v3017_v38  ;;  %2725 = vmatpush3.bf16.msra.mxu1 %v3018_v39  ;;  %v3056_v38 = vld [vmem:[#allocation2 + $0xa0] sm:$0xff]  }
  0x90   : > { %2706 = vmatprep.subr.bf16.mxu0 %v3200_v0  ;;  %2726 = vmatprep.subr.bf16.mxu1 %v3200_v0  ;;  %v3057_v39 = vld [vmem:[#allocation2 + $0xe0] sm:$0xff]  }
  0x93   : > { %2707 = vmatpush3.bf16.msra.mxu0 %v3019_v40  ;;  %2727 = vmatpush3.bf16.msra.mxu1 %v3020_v41  ;;  %v2361_v40 = vld [vmem:[%s3308_s9 + $0x18] sm:$0xf] }
  0x94   : > { %2708 = vmatprep.subr.bf16.mxu0 %v3200_v0  ;;  %2728 = vmatprep.subr.bf16.mxu1 %v3200_v0  ;;  %v3058_v41 = vld [vmem:[#allocation2 + $0x98] sm:$0xff]   ;;  %v2362_v42 = vcombine.low %v2361_v40, %v3425_v6  ;;  %v3091_v40 = vld [vmem:[#allocation2 + $0xa8] sm:$0xff]  }
  0x95   : > { %v3077_v6 = vld [vmem:[#allocation2 + $0x18] sm:$0xff]  }
  0x97   : > { %2709 = vmatpush3.bf16.msra.mxu0 %v3021_v43  ;;  %2729 = vmatpush3.bf16.msra.mxu1 %v3022_v45  ;;  %v3059_v43 = vld [vmem:[#allocation2 + $0xd8] sm:$0xff]   ;;  %v1446_v45 = vshll.u32 %v2362_v42, 16 }
  0x98   : > { %2710 = vmatprep.subr.bf16.mxu0 %v3200_v0  ;;  %2730 = vmatprep.subr.bf16.mxu1 %v3200_v0 }
  0x9b   : > { %2711 = vmatpush3.bf16.msra.mxu0 %v3023_v46  ;;  %2731 = vmatpush3.bf16.msra.mxu1 %v3024_v48  ;;  %v3061_v46 = vld [vmem:[#allocation2 + $0xd0] sm:$0xff]   ;;  %v1444_v48 = vshrl.u32 %v2362_v42, 16  ;;  %v3092_v42 = vld [vmem:[#allocation2 + $0xe8] sm:$0xff]  }
  0x9c   : > { %2712 = vmatprep.subr.bf16.mxu0 %v3200_v0  ;;  %2732 = vmatprep.subr.bf16.mxu1 %v3200_v0 }
  0x9f   : > { %2713 = vmatpush3.bf16.msra.mxu0 %v3025_v49  ;;  %2733 = vmatpush3.bf16.msra.mxu1 %v3026_v53  ;;  %v1448_v49 = vrot.slane %v1446_v45, 1  ;;  %v3094_v45 = vld [vmem:[#allocation2 + $0xe0] sm:$0xff]  }
  0xa0   : > { %2714 = vmatprep.subr.bf16.mxu0 %v3200_v0  ;;  %2734 = vmatprep.subr.bf16.mxu1 %v3200_v0 }
  0xa1   : > { %v1449_v53 = vor.u32 %v1448_v49, %v1444_v48  ;;  %v3096_v49 = vld [vmem:[#allocation2 + $0xd8] sm:$0xff]  }
  0xa3   : > { %2715 = vmatpush3.bf16.msra.mxu0 %v3027_v54  ;;  %2735 = vmatpush3.bf16.msra.mxu1 %v3028_v57  ;;  %v1453_v54 = vrot.slane %v1451_v50, 1  ;;  %v3067_v57 = vld [vmem:[%s3308_s9 + $0x18] sm:$0xff]   ;;  %v3097_v50 = vld [vmem:[#allocation2 + $0x90] sm:$0xff]  }
  0xa4   : > { %2740 = vmatprep.subr.bf16.mxu0 %v3200_v0  ;;  %2760 = vmatprep.subr.bf16.mxu1 %v3200_v0 }
  0xa5   : > { %v1454_v56 = vsel %vm458_vm3, %v1449_v53, %v1453_v54  ;;  %v3099_v53 = vld [vmem:[#allocation2 + $0x88] sm:$0xff]  }
  0xa6   : > { %2717 = vmatmul.mubr.bf16.vlgmr.msra.gmra.mxu0 %v962_v58  ;;  %2737 = vmatmul.mubr.bf16.vlgmr.msra.gmra.mxu1 %v3030_v59  ;;  %v3068_v58 = vld [vmem:[#allocation2 + $0x78] sm:$0xff]  }
  0xa7   : > { %2741 = vmatpush3.bf16.msra.mxu0 %v3031_v60  ;;  %2761 = vmatpush3.bf16.msra.mxu1 %v3032_v61  ;;  %v3069_v59 = vld [vmem:[#allocation2 + $0x38] sm:$0xff]   ;;  %v3070_v60 = vld [vmem:[#allocation2 + $0x70] sm:$0xff]  }
  0xa8   : > { %2742 = vmatprep.subr.bf16.mxu0 %v3200_v0  ;;  %2762 = vmatprep.subr.bf16.mxu1 %v3200_v0  ;;  %v3071_v61 = vld [vmem:[#allocation2 + $0x30] sm:$0xff]  }
  0xa9   : > { %2756 = vmatprep.mubr.msk.bf16.mxu0 %vm3201_vm0, %v3200_v0  ;;  %2776 = vmatprep.mubr.msk.bf16.mxu1 %vm3201_vm0, %v3200_v0 }
  0xab   : > { %2743 = vmatpush3.bf16.msra.mxu0 %v3033_v62  ;;  %2763 = vmatpush3.bf16.msra.mxu1 %v3034_v63  ;;  %v3072_v62 = vld [vmem:[#allocation2 + $0x68] sm:$0xff]  }
  0xac   : > { %2744 = vmatprep.subr.bf16.mxu0 %v3200_v0  ;;  %2764 = vmatprep.subr.bf16.mxu1 %v3200_v0  ;;  %v3073_v63 = vld [vmem:[#allocation2 + $0x28] sm:$0xff]  }
  0xaf   : > { %2745 = vmatpush3.bf16.msra.mxu0 %v3035_v1  ;;  %2765 = vmatpush3.bf16.msra.mxu1 %v3036_v2  ;;  %v3074_v1 = vld [vmem:[#allocation2 + $0x60] sm:$0xff]  }
  0xb0   : > { %2746 = vmatprep.subr.bf16.mxu0 %v3200_v0  ;;  %2766 = vmatprep.subr.bf16.mxu1 %v3200_v0  ;;  %v3075_v2 = vld [vmem:[#allocation2 + $0x20] sm:$0xff]  }
  0xb3   : > { %2747 = vmatpush3.bf16.msra.mxu0 %v3037_v3  ;;  %2767 = vmatpush3.bf16.msra.mxu1 %v3038_v4  ;;  %v2384_v3 = vld [vmem:[%s3308_s9 + $0x24] sm:$0xe]  ;;  %v3483_v4 = vld [vmem:[%s3308_s9 + $0x28] sm:$0xf] }
  0xb4   : > { %2748 = vmatprep.subr.bf16.mxu0 %v3200_v0  ;;  %2768 = vmatprep.subr.bf16.mxu1 %v3200_v0  ;;  %v2388_v7 = vcombine.low %v2384_v3, %v3483_v4 }
  0xb6   : > { %v1712_v23 = vrot.slane %v2388_v7, 1 }
  0xb7   : > { %2749 = vmatpush3.bf16.msra.mxu0 %v3039_v8  ;;  %2769 = vmatpush3.bf16.msra.mxu1 %v3040_v10  ;;  %v3086_v8 = vld [vmem:[%s3308_s9 + $0x2c] ss:$0 sps:$4 sm:$0x33]   ;;  %v3079_v10 = vld [vmem:[#allocation2 + $0x10] sm:$0xff]  }
  0xb8   : > { %2750 = vmatprep.subr.bf16.mxu0 %v3200_v0  ;;  %2770 = vmatprep.subr.bf16.mxu1 %v3200_v0  ;;  %v1817_v13 = vshrl.u32 %v3086_v8, 16  ;;  %v1820_v14 = vshll.u32 %v3086_v8, 16 }
  0xba   : > { %v1819_v20 = vrot.slane %v1817_v13, 1  ;;  %v1822_v21 = vrot.slane %v1820_v14, 2  ;;  %v3547_v13 = vld [vmem:[%s3619_s2 + $0x8] sm:$0xff] }
  0xbb   : > { %2751 = vmatpush3.bf16.msra.mxu0 %v3041_v11  ;;  %2771 = vmatpush3.bf16.msra.mxu1 %v3042_v12  ;;  %v1809_v11 = vshrl.u32 %v2388_v7, 16  ;;  %v1812_v12 = vshll.u32 %v2388_v7, 16 }
  0xbc   : > { %2752 = vmatprep.subr.bf16.mxu0 %v3200_v0  ;;  %2772 = vmatprep.subr.bf16.mxu1 %v3200_v0 }
  0xbd   : > { %v1811_v18 = vrot.slane %v1809_v11, 1 }
  0xbf   : > { %2753 = vmatpush3.bf16.msra.mxu0 %v3043_v17  ;;  %2773 = vmatpush3.bf16.msra.mxu1 %v3044_v19  ;;  %v3081_v17 = vld [vmem:[#allocation2 + $0x8] sm:$0xff]   ;;  %v1814_v19 = vrot.slane %v1812_v12, 2 }
  0xc0   : > { %2754 = vmatprep.subr.bf16.mxu0 %v3200_v0  ;;  %2774 = vmatprep.subr.bf16.mxu1 %v3200_v0 }
  0xc1   : > { %v1815_v26 = vor.u32 %v1814_v19, %v1811_v18 }
  0xc3   : > { %2755 = vmatpush3.bf16.msra.mxu0 %v3045_v24  ;;  %2775 = vmatpush3.bf16.msra.mxu1 %v3046_v27  ;;  %v1713_v24 = vrot.slane %v3492_v16, 1  ;;  %v1823_v27 = vor.u32 %v1822_v21, %v1819_v20 }
  0xc4   : > { %2780 = vmatprep.subr.bf16.mxu0 %v3200_v0  ;;  %2800 = vmatprep.subr.bf16.mxu1 %v3200_v0 }
  0xc5   : > { %v1714_v28 = vsel %vm232_vm1, %v1712_v23, %v1713_v24 }
  0xc6   : > { %2757 = vmatmul.mubr.bf16.vlgmr.msra.gmra.mxu0 %v1222_v30  ;;  %2777 = vmatmul.mubr.bf16.vlgmr.msra.gmra.mxu1 %v1332_v32  ;;  %v1824_v30 = vsel %vm329_vm2, %v1815_v26, %v1823_v27 }
  0xc7   : > { %2781 = vmatpush3.bf16.msra.mxu0 %v3050_v31  ;;  %2801 = vmatpush3.bf16.msra.mxu1 %v3051_v33  ;;  %v3088_v31 = vld [vmem:[#allocation2 + $0xf8] sm:$0xff]  }
  0xc8   : > { %2782 = vmatprep.subr.bf16.mxu0 %v3200_v0  ;;  %2802 = vmatprep.subr.bf16.mxu1 %v3200_v0 }
  0xc9   : > { %2796 = vmatprep.mubr.msk.bf16.mxu0 %vm3201_vm0, %v3200_v0  ;;  %2816 = vmatprep.mubr.msk.bf16.mxu1 %vm3201_vm0, %v3200_v0 }
  0xcb   : > { %2783 = vmatpush3.bf16.msra.mxu0 %v3052_v34  ;;  %2803 = vmatpush3.bf16.msra.mxu1 %v3053_v35  ;;  %v3089_v34 = vld [vmem:[#allocation2 + $0xb0] sm:$0xff]  }
  0xcc   : > { %2784 = vmatprep.subr.bf16.mxu0 %v3200_v0  ;;  %2804 = vmatprep.subr.bf16.mxu1 %v3200_v0 }
  0xcf   : > { %2785 = vmatpush3.bf16.msra.mxu0 %v3054_v36  ;;  %2805 = vmatpush3.bf16.msra.mxu1 %v3055_v37  ;;  %v3090_v36 = vld [vmem:[#allocation2 + $0xf0] sm:$0xff]  }
  0xd0   : > { %2786 = vmatprep.subr.bf16.mxu0 %v3200_v0  ;;  %2806 = vmatprep.subr.bf16.mxu1 %v3200_v0 }
  0xd3   : > { %2787 = vmatpush3.bf16.msra.mxu0 %v3056_v38  ;;  %2807 = vmatpush3.bf16.msra.mxu1 %v3057_v39 }
  0xd4   : > { %2788 = vmatprep.subr.bf16.mxu0 %v3200_v0  ;;  %2808 = vmatprep.subr.bf16.mxu1 %v3200_v0 }
  0xd7   : > { %2789 = vmatpush3.bf16.msra.mxu0 %v3058_v41  ;;  %2809 = vmatpush3.bf16.msra.mxu1 %v3059_v43 }
  0xd8   : > { %2790 = vmatprep.subr.bf16.mxu0 %v3200_v0  ;;  %2810 = vmatprep.subr.bf16.mxu1 %v3200_v0 }
  0xdb   : > { %2791 = vmatpush3.bf16.msra.mxu0 %v3060_v44  ;;  %2811 = vmatpush3.bf16.msra.mxu1 %v3061_v46  ;;  %v3093_v44 = vld [vmem:[#allocation2 + $0xa0] sm:$0xff]  }
  0xdc   : > { %2792 = vmatprep.subr.bf16.mxu0 %v3200_v0  ;;  %2812 = vmatprep.subr.bf16.mxu1 %v3200_v0  ;;  %v2407_v46 = vld [vmem:[%s3308_s9 + $0x24] sm:$0xf] }
  0xdd   : > { %v2408_v48 = vcombine.low %v2407_v46, %v3483_v4 }
  0xdf   : > { %2793 = vmatpush3.bf16.msra.mxu0 %v3062_v47  ;;  %2813 = vmatpush3.bf16.msra.mxu1 %v3063_v51  ;;  %v3095_v47 = vld [vmem:[#allocation2 + $0x98] sm:$0xff]   ;;  %v1938_v51 = vshll.u32 %v2408_v48, 16  ;;  %v1936_v54 = vshrl.u32 %v2408_v48, 16 }
  0xe0   : > { %2794 = vmatprep.subr.bf16.mxu0 %v3200_v0  ;;  %2814 = vmatprep.subr.bf16.mxu1 %v3200_v0 }
  0xe3   : > { %2795 = vmatpush3.bf16.msra.mxu0 %v3064_v52  ;;  %2815 = vmatpush3.bf16.msra.mxu1 %v3065_v55  ;;  %v3098_v52 = vld [vmem:[#allocation2 + $0xd0] sm:$0xff]   ;;  %v1940_v55 = vrot.slane %v1938_v51, 1 }
  0xe4   : > { %2820 = vmatprep.subr.bf16.mxu0 %v3200_v0  ;;  %2840 = vmatprep.subr.bf16.mxu1 %v3200_v0 }
  0xe6   : > { %2797 = vmatmul.mubr.bf16.vlgmr.msra.gmra.mxu0 %v1454_v56  ;;  %2817 = vmatmul.mubr.bf16.vlgmr.msra.gmra.mxu1 %v3067_v57  ;;  %v1943_v56 = vshll.u32 %v3492_v16, 16  ;;  %v3100_v57 = vld [vmem:[#allocation2 + $0xc8] sm:$0xff]  }
  0xe7   : > { %2821 = vmatpush3.bf16.msra.mxu0 %v3068_v58  ;;  %2841 = vmatpush3.bf16.msra.mxu1 %v3069_v59  ;;  %v3101_v58 = vld [vmem:[#allocation2 + $0x80] sm:$0xff]   ;;  %v1941_v59 = vor.u32 %v1940_v55, %v1936_v54 }
  0xe8   : > { %2822 = vmatprep.subr.bf16.mxu0 %v3200_v0  ;;  %2842 = vmatprep.subr.bf16.mxu1 %v3200_v0 }
  0xe9   : > { %2836 = vmatprep.mubr.msk.bf16.mxu0 %vm3201_vm0, %v3200_v0  ;;  %2856 = vmatprep.mubr.msk.bf16.mxu1 %vm3201_vm0, %v3200_v0 }
  0xeb   : > { %2823 = vmatpush3.bf16.msra.mxu0 %v3070_v60  ;;  %2843 = vmatpush3.bf16.msra.mxu1 %v3071_v61  ;;  %v1945_v60 = vrot.slane %v1943_v56, 1  ;;  %v3102_v61 = vld [vmem:[#allocation2 + $0xc0] sm:$0xff]  }
  0xec   : > { %2824 = vmatprep.subr.bf16.mxu0 %v3200_v0  ;;  %2844 = vmatprep.subr.bf16.mxu1 %v3200_v0 }
  0xef   : > { %2825 = vmatpush3.bf16.msra.mxu0 %v3072_v62  ;;  %2845 = vmatpush3.bf16.msra.mxu1 %v3073_v63  ;;  %v1946_v62 = vsel %vm458_vm3, %v1941_v59, %v1945_v60  ;;  %v3104_v63 = vld [vmem:[%s3308_s9 + $0x24] sm:$0xff]  }
  0xf0   : > { %2826 = vmatprep.subr.bf16.mxu0 %v3200_v0  ;;  %2846 = vmatprep.subr.bf16.mxu1 %v3200_v0 }
  0xf3   : > { %2827 = vmatpush3.bf16.msra.mxu0 %v3074_v1  ;;  %2847 = vmatpush3.bf16.msra.mxu1 %v3075_v2 }
  0xf4   : > { %2828 = vmatprep.subr.bf16.mxu0 %v3200_v0  ;;  %2848 = vmatprep.subr.bf16.mxu1 %v3200_v0 }
  0xf7   : > { %2829 = vmatpush3.bf16.msra.mxu0 %v3076_v5  ;;  %2849 = vmatpush3.bf16.msra.mxu1 %v3077_v6 }
  0xf8   : > { %2830 = vmatprep.subr.bf16.mxu0 %v3200_v0  ;;  %2850 = vmatprep.subr.bf16.mxu1 %v3200_v0 }
  0xfb   : > { %2831 = vmatpush3.bf16.msra.mxu0 %v3078_v9  ;;  %2851 = vmatpush3.bf16.msra.mxu1 %v3079_v10 }
  0xfc   : > { %2832 = vmatprep.subr.bf16.mxu0 %v3200_v0  ;;  %2852 = vmatprep.subr.bf16.mxu1 %v3200_v0 }
  0xff   : > { %2833 = vmatpush3.bf16.msra.mxu0 %v3080_v15  ;;  %2853 = vmatpush3.bf16.msra.mxu1 %v3081_v17 }
 0x100   : > { %2834 = vmatprep.subr.bf16.mxu0 %v3200_v0  ;;  %2854 = vmatprep.subr.bf16.mxu1 %v3200_v0 }
 0x103   : > { %2835 = vmatpush3.bf16.msra.mxu0 %v3082_v22  ;;  %2855 = vmatpush3.bf16.msra.mxu1 %v3083_v25 }
 0x104   : > { %2860 = vmatprep.subr.bf16.mxu0 %v3200_v0  ;;  %2880 = vmatprep.subr.bf16.mxu1 %v3200_v0 }
 0x106   : > { %v3503_v32 = vpop.f32.mrf.mxu0  ;;  %2837 = vmatmul.mubr.bf16.vlgmr.msra.gmra.mxu0 %v1714_v28  ;;  %v3505_v33 = vpop.f32.mrf.mxu1  ;;  %2857 = vmatmul.mubr.bf16.vlgmr.msra.gmra.mxu1 %v1824_v30 }
 0x107   : > { %2861 = vmatpush3.bf16.msra.mxu0 %v3087_v29  ;;  %2881 = vmatpush3.bf16.msra.mxu1 %v3088_v31  ;;  %v431_v1 = vadd.f32 %v3505_v33, %v3503_v32 }
 0x108   : > { %v2598_v35 = vpop.f32.mrf.mxu0  ;;  %2862 = vmatprep.subr.bf16.mxu0 %v3200_v0  ;;  %v2618_v37 = vpop.f32.mrf.mxu1  ;;  %2882 = vmatprep.subr.bf16.mxu1 %v3200_v0 }
 0x109   : > { %2876 = vmatprep.mubr.msk.bf16.mxu0 %vm3201_vm0, %v3200_v0  ;;  %2896 = vmatprep.mubr.msk.bf16.mxu1 %vm3201_vm0, %v3200_v0 }
 0x10a   : > { %v3511_v38 = vpop.f32.mrf.mxu0  ;;  %v433_v39 = vpop.f32.mrf.mxu1 }
 0x10b   : > { %2863 = vmatpush3.bf16.msra.mxu0 %v3089_v34  ;;  %2883 = vmatpush3.bf16.msra.mxu1 %v3090_v36  ;;  %v434_v6 = vadd.f32 %v433_v39, %v3511_v38 }
 0x10c   : > { %v2599_v41 = vpop.f32.mrf.mxu0  ;;  %2864 = vmatprep.subr.bf16.mxu0 %v3200_v0  ;;  %v2619_v43 = vpop.f32.mrf.mxu1  ;;  %2884 = vmatprep.subr.bf16.mxu1 %v3200_v0 }
 0x10f   : > { %2865 = vmatpush3.bf16.msra.mxu0 %v3091_v40  ;;  %2885 = vmatpush3.bf16.msra.mxu1 %v3092_v42 }
 0x110   : > { %2866 = vmatprep.subr.bf16.mxu0 %v3200_v0  ;;  %2886 = vmatprep.subr.bf16.mxu1 %v3200_v0 }
 0x113   : > { %2867 = vmatpush3.bf16.msra.mxu0 %v3093_v44  ;;  %2887 = vmatpush3.bf16.msra.mxu1 %v3094_v45 }
 0x114   : > { %2868 = vmatprep.subr.bf16.mxu0 %v3200_v0  ;;  %2888 = vmatprep.subr.bf16.mxu1 %v3200_v0 }
 0x117   : > { %2869 = vmatpush3.bf16.msra.mxu0 %v3095_v47  ;;  %2889 = vmatpush3.bf16.msra.mxu1 %v3096_v49 }
 0x118   : > { %2870 = vmatprep.subr.bf16.mxu0 %v3200_v0  ;;  %2890 = vmatprep.subr.bf16.mxu1 %v3200_v0 }
 0x11b   : > { %2871 = vmatpush3.bf16.msra.mxu0 %v3097_v50  ;;  %2891 = vmatpush3.bf16.msra.mxu1 %v3098_v52 }
 0x11c   : > { %2872 = vmatprep.subr.bf16.mxu0 %v3200_v0  ;;  %2892 = vmatprep.subr.bf16.mxu1 %v3200_v0 }
 0x11f   : > { %2873 = vmatpush3.bf16.msra.mxu0 %v3099_v53  ;;  %2893 = vmatpush3.bf16.msra.mxu1 %v3100_v57 }
 0x120   : > { %2874 = vmatprep.subr.bf16.mxu0 %v3200_v0  ;;  %2894 = vmatprep.subr.bf16.mxu1 %v3200_v0  ;;  %v3540_v0 = vld [vmem:[%s3619_s2] sm:$0xff] }
 0x123   : > { %2875 = vmatpush3.bf16.msra.mxu0 %v3101_v58  ;;  %2895 = vmatpush3.bf16.msra.mxu1 %v3102_v61 }
 0x126   : > { %v554_v2 = vpop.f32.mrf.mxu0  ;;  %2877 = vmatmul.mubr.bf16.vlgmr.msra.gmra.mxu0 %v1946_v62  ;;  %v670_v4 = vpop.f32.mrf.mxu1  ;;  %2897 = vmatmul.mubr.bf16.vlgmr.msra.gmra.mxu1 %v3104_v63 }
 0x127   : > { %v561_v3 = vadd.f32 %v554_v2, %v431_v1 }
 0x128   : > { %v2638_v5 = vpop.f32.mrf.mxu0  ;;  %v2658_v8 = vpop.f32.mrf.mxu1 }
 0x129   : > { %v677_v7 = vadd.f32 %v670_v4, %v561_v3 }
 0x12a   : > { %v557_v9 = vpop.f32.mrf.mxu0  ;;  %v673_v12 = vpop.f32.mrf.mxu1 }
 0x12b   : > { %v679_v10 = vmul.f32 %v677_v7, %v3540_v0  ;;  %v562_v11 = vadd.f32 %v557_v9, %v434_v6 }
 0x12c   : > { %v2639_v14 = vpop.f32.mrf.mxu0  ;;  %v2659_v16 = vpop.f32.mrf.mxu1 }
 0x12d   : > { %681 = vst [vmem:[%s3549_s25] sm:$0xff] %v679_v10  ;;  %v678_v15 = vadd.f32 %v673_v12, %v562_v11 }
 0x12f   : > { %v680_v17 = vmul.f32 %v678_v15, %v3547_v13 }
 0x131   : > { %682 = vst [vmem:[%s3549_s25 + $0x8] sm:$0xff] %v680_v17 }
 0x146   : > { %v814_v18 = vpop.f32.mrf.mxu0  ;;  %v924_v19 = vpop.f32.mrf.mxu1 }
 0x147   : > { %v925_v26 = vadd.f32 %v924_v19, %v814_v18 }
 0x148   : > { %v2678_v20 = vpop.f32.mrf.mxu0  ;;  %v2698_v21 = vpop.f32.mrf.mxu1 }
 0x14a   : > { %v817_v22 = vpop.f32.mrf.mxu0  ;;  %v927_v23 = vpop.f32.mrf.mxu1 }
 0x14b   : > { %v928_v31 = vadd.f32 %v927_v23, %v817_v22 }
 0x14c   : > { %v2679_v24 = vpop.f32.mrf.mxu0  ;;  %v2699_v25 = vpop.f32.mrf.mxu1 }
 0x166   : > { %v1046_v27 = vpop.f32.mrf.mxu0  ;;  %v1161_v29 = vpop.f32.mrf.mxu1 }
 0x167   : > { %v1053_v28 = vadd.f32 %v1046_v27, %v925_v26 }
 0x168   : > { %v2718_v30 = vpop.f32.mrf.mxu0  ;;  %v2738_v33 = vpop.f32.mrf.mxu1 }
 0x169   : > { %v1168_v32 = vadd.f32 %v1161_v29, %v1053_v28 }
 0x16a   : > { %v1049_v34 = vpop.f32.mrf.mxu0  ;;  %v1164_v37 = vpop.f32.mrf.mxu1 }
 0x16b   : > { %v1170_v35 = vmul.f32 %v1168_v32, %v3540_v0  ;;  %v1054_v36 = vadd.f32 %v1049_v34, %v928_v31 }
 0x16c   : > { %v2719_v38 = vpop.f32.mrf.mxu0  ;;  %v2739_v40 = vpop.f32.mrf.mxu1 }
 0x16d   : > { %2336 = vst [vmem:[%s3549_s25 + $0x10] sm:$0xff] %v1170_v35  ;;  %v1169_v39 = vadd.f32 %v1164_v37, %v1054_v36 }
 0x16f   : > { %v1171_v41 = vmul.f32 %v1169_v39, %v3547_v13 }
 0x171   : > { %2337 = vst [vmem:[%s3549_s25 + $0x18] sm:$0xff] %v1171_v41 }
 0x186   : > { %v1306_v42 = vpop.f32.mrf.mxu0  ;;  %v1416_v43 = vpop.f32.mrf.mxu1 }
 0x187   : > { %v1417_v50 = vadd.f32 %v1416_v43, %v1306_v42 }
 0x188   : > { %v2758_v44 = vpop.f32.mrf.mxu0  ;;  %v2778_v45 = vpop.f32.mrf.mxu1 }
 0x18a   : > { %v1309_v46 = vpop.f32.mrf.mxu0  ;;  %v1419_v47 = vpop.f32.mrf.mxu1 }
 0x18b   : > { %v1420_v55 = vadd.f32 %v1419_v47, %v1309_v46 }
 0x18c   : > { %v2759_v48 = vpop.f32.mrf.mxu0  ;;  %v2779_v49 = vpop.f32.mrf.mxu1 }
 0x1a6   : > { %v1538_v51 = vpop.f32.mrf.mxu0  ;;  %v1653_v53 = vpop.f32.mrf.mxu1 }
 0x1a7   : > { %v1545_v52 = vadd.f32 %v1538_v51, %v1417_v50 }
 0x1a8   : > { %v2798_v54 = vpop.f32.mrf.mxu0  ;;  %v2818_v57 = vpop.f32.mrf.mxu1 }
 0x1a9   : > { %v1660_v56 = vadd.f32 %v1653_v53, %v1545_v52 }
 0x1aa   : > { %v1541_v58 = vpop.f32.mrf.mxu0  ;;  %v1656_v61 = vpop.f32.mrf.mxu1 }
 0x1ab   : > { %v1662_v59 = vmul.f32 %v1660_v56, %v3540_v0  ;;  %v1546_v60 = vadd.f32 %v1541_v58, %v1420_v55 }
 0x1ac   : > { %v2799_v62 = vpop.f32.mrf.mxu0  ;;  %v2819_v1 = vpop.f32.mrf.mxu1 }
 0x1ad   : > { %2382 = vst [vmem:[%s3549_s25 + $0x20] sm:$0xff] %v1662_v59  ;;  %v1661_v63 = vadd.f32 %v1656_v61, %v1546_v60 }
 0x1af   : > { %v1663_v2 = vmul.f32 %v1661_v63, %v3547_v13 }
 0x1b1   : > { %2383 = vst [vmem:[%s3549_s25 + $0x28] sm:$0xff] %v1663_v2 }
 0x1c6   : > { %v1798_v3 = vpop.f32.mrf.mxu0  ;;  %v1908_v4 = vpop.f32.mrf.mxu1 }
 0x1c7   : > { %v1909_v11 = vadd.f32 %v1908_v4, %v1798_v3 }
 0x1c8   : > { %v2838_v5 = vpop.f32.mrf.mxu0  ;;  %v2858_v6 = vpop.f32.mrf.mxu1 }
 0x1ca   : > { %v1801_v7 = vpop.f32.mrf.mxu0  ;;  %v1911_v8 = vpop.f32.mrf.mxu1 }
 0x1cb   : > { %v1912_v17 = vadd.f32 %v1911_v8, %v1801_v7 }
 0x1cc   : > { %v2839_v9 = vpop.f32.mrf.mxu0  ;;  %v2859_v10 = vpop.f32.mrf.mxu1 }
 0x1e6   : > { %v2030_v12 = vpop.f32.mrf.mxu0  ;;  %v2145_v15 = vpop.f32.mrf.mxu1 }
 0x1e7   : > { %v2037_v14 = vadd.f32 %v2030_v12, %v1909_v11 }
 0x1e8   : > { %v2878_v16 = vpop.f32.mrf.mxu0  ;;  %v2898_v19 = vpop.f32.mrf.mxu1 }
 0x1e9   : > { %v2152_v18 = vadd.f32 %v2145_v15, %v2037_v14 }
 0x1ea   : > { %v2033_v20 = vpop.f32.mrf.mxu0  ;;  %v2148_v23 = vpop.f32.mrf.mxu1 }
 0x1eb   : > { %v2154_v21 = vmul.f32 %v2152_v18, %v3540_v0  ;;  %v2038_v22 = vadd.f32 %v2033_v20, %v1912_v17 }
 0x1ec   : > { %v2879_v24 = vpop.f32.mrf.mxu0  ;;  %v2899_v26 = vpop.f32.mrf.mxu1 }
 0x1ed   : > { %2428 = vst [vmem:[%s3549_s25 + $0x30] sm:$0xff] %v2154_v21  ;;  %v2153_v25 = vadd.f32 %v2148_v23, %v2038_v22 }
 0x1ef   : > { %v2155_v27 = vmul.f32 %v2153_v25, %v3547_v13 }
 0x1f1   : > { %2429 = vst [vmem:[%s3549_s25 + $0x38] sm:$0xff] %v2155_v27 }
 0x1f2   : > { %3144 = shalt.err (!%p3141_p0)
}
 0x1f3   : > { %s3145_s8 = scalar_lea.hbm %s3572_s30, 1024  ;;  %s3149_s11 = scalar_lea.hbm %s3620_s3, 2048 }
 0x1f4   : > { %p3146_p1 = scmp.ne.s32.totalorder %s3572_s30, %s3145_s8  ;;  %p3150_p4 = scmp.lt.s32.totalorder %s3572_s30, %s3620_s3 }
 0x1f5   : > { %p3151_p7 = scmp.lt.s32.totalorder %s3149_s11, %s3145_s8 }
 0x1f6   : > { %p3147_p2 = pnand %p3146_p1, %p3263_p5 }
 0x1f7   : > { %p3152_p6 = por %p3151_p7, %p3150_p4 }
 0x1f8   : > { %p3148_p3 = pneg %p3147_p2 }
 0x1fa   : > { %p3153_p8 = pnand %p3152_p6, %p3148_p3 }
 0x1fc   : > { %3156 = shalt.err (!%p3153_p8)
}
 0x1fd   : > { %s3203_s20 = smov 128   ;;  %s3204_s24 = smov 8  }
 0x1fe   : > { %2905 = dma.vmem_to_hbm [thread:$0]  (%p3263_p5), %s3566_s26, 1024, %s3572_s30, %s3577_s4, %s3203_s20, %s3203_s20, %s3204_s24  }
 0x1ff PF: > { %p2917_p9 = scmp.ge.s32.totalorder %s3195_s15, 2  ;;  %s2188_s25 = sand.u32 1, %s3183_s12  }
 0x200   : > { %p3624_p10 = scmp.ne.s32.totalorder %s3622_s23, 0  ;;  %s2189_s27 = scalar_lea.sflag [#allocation4], %s2188_s25 }
 0x202   : > { %p2912_p11 = pnand %p2917_p9, %p3624_p10 }
 0x204   : > { %p2913_p12 = pneg %p2912_p11 }
 0x206   : > { %3178 = dma.done.wait (%p2913_p12), %s2189_s27, 1024  }
 0x207   : > { %3180 = vsyncadd (%p2913_p12), %s2189_s27, 4294966272  ;;  %p14_p13 = scmp.ge.s32.totalorder %s3250_s18, 4   ;;  %s3625_s12 = smov %s3187_s13 }
 0x208   : > { %s3626_s13 = smov %s3191_s14  ;;  %s3627_s14 = smov %s3261_s21 }
 0x209   : > { %s3628_s15 = smov %s3250_s18  ;;  %16 = sbr.rel (!%p14_p13) target bundleno = 4 (0x4), region = 81 }
 0x20e   :  { %2194 = vsyncpa [#allocation3], 1 }
 0x20f   :  { %2196 = vsyncpa [#allocation3 + $0x1], 1 }
 0x210   :  { %2197 = vsyncpa [#allocation4], 1 }
 0x211   :  { %2199 = vsyncpa [#allocation4 + $0x1], 1 }

// kernel: tpu_custom_call.1
= control target key start
LH: loop header
LB: loop body
LE: loop exit
PB: predicated region body
PF: predicated region fallthrough
CT: control target
= control target key end

     0   :  { %8 = vsyncpa [#allocation3], 0  ;;  %s3617_s0 = inlined_call_operand.vmem [shape: bf16[2,4,19,128], index: 0, kind: input, shape index: {}]   ;;  %s3618_s1 = inlined_call_operand.hbm [shape: bf16[4,128,128], index: 1, kind: input, shape index: {}]   ;;  %s3619_s2 = inlined_call_operand.vmem [shape: f32[16,128], index: 2, kind: input, shape index: {}]   ;;  %s3620_s3 = inlined_call_operand.hbm [shape: f32[2,4,16,128], index: 3, kind: output, shape index: {}]  }
   0x1   :  { %9 = vsyncpa [#allocation4], 0 }
   0x2   :  { %11 = vsyncpa [#allocation4 + $0x1], 0  ;;  %s3225_s12 = smov 0   ;;  %s3227_s13 = smov 0  }
   0x3   :  { %s3229_s14 = smov 0   ;;  %s3231_s15 = smov 0  }
   0x4 LB: > { %s3246_s16 = sadd.s32 4294967295, %s3195_s15   ;;  %s2247_s17 = sadd.s32 4294967294, %s3195_s15   ;;  %s3195_s15 = sphi %s3231_s15, %s3628_s15   ;;  %s3191_s14 = sphi %s3229_s14, %s3627_s14   ;;  %s3187_s13 = sphi %s3227_s13, %s3626_s13   ;;  %s3183_s12 = sphi %s3225_s12, %s3625_s12  }
   0x5   : > { %s3250_s18 = sadd.s32 1, %s3195_s15   ;;  %s92_s19 = sadd.s32 1, %s3191_s14 }
   0x6   : > { %s89_s20 = ssub.s32 %s3195_s15, %s3250_s18  ;;  %p102_p0 = scmp.ne.s32.totalorder %s3191_s14, %s3187_s13 }
   0x7   : > { %p90_p1 = scmp.eq.s32.totalorder %s89_s20, 0  ;;  %p103_p2 = scmp.eq.s32.totalorder %s3246_s16, 1 }
   0x8   : > { %p108_p3 = scmp.ne.s32.totalorder %s3187_s13, %s3183_s12  ;;  %p109_p4 = scmp.eq.s32.totalorder %s2247_s17, 1 }
   0x9   : > { %s3261_s21 = scalar_select %p90_p1, %s3191_s14, %s92_s19  }
   0xa   : > { %p3263_p5 = por %p103_p2, %p102_p0  ;;  %p3267_p6 = por %p109_p4, %p108_p3 }
   0xb   : > { %p2248_p7 = scmp.ge.s32.totalorder %s3195_s15, 1  ;;  %p116_p8 = scmp.lt.s32.totalorder %s3195_s15, 3 }
   0xc   : > { %s3622_s23 = scalar_select %p3267_p6, 1, 0 }
   0xd   : > { %p2915_p9 = scmp.eq.s32.totalorder %s3246_s16, 0  ;;  %p3274_p10 = pnand %p2248_p7, %p116_p8 }
   0xe   : > { %s3197_s25 = smov [#allocation2]  }
   0xf   : > { %s128_s26 = sshll.u32 %s3197_s25, 4  ;;  %p2907_p11 = pneg %p3274_p10  ;;  %s129_s26 = int_to_ptr.vmem [resolvable:$true] %s128_s26 }
  0x10   : > { %s3116_s27 = scalar_lea.vmem %s129_s26, 4096  ;;  %p3124_p3 = scmp.lt.s32.totalorder %s129_s26, %s129_s26 }
  0x11   : > { %p2908_p12 = pnand %p2915_p9, %p2907_p11  ;;  %p3117_p0 = scmp.ne.s32.totalorder %s129_s26, %s3116_s27 }
  0x12   : > { %p3125_p4 = scmp.lt.s32.totalorder %s3116_s27, %s3116_s27 }
  0x13   : > { %p3107_p13 = pneg %p2908_p12 }
  0x14   : > { %p3126_p6 = por %p3125_p4, %p3124_p3 }
  0x15   : > { %p3119_p1 = pnand %p3117_p0, %p3107_p13 }
  0x17   : > { %p3120_p2 = pneg %p3119_p1 }
  0x19   : > { %p3127_p7 = pnand %p3126_p6, %p3120_p2 }
  0x1b   : > { %3130 = shalt.err (!%p3127_p7)
}
  0x1c   : > { %s3198_s28 = smov 64   ;;  %s3199_s29 = smov 4  }
  0x1d   : > { %2910 = dma.hbm_to_vmem [thread:$0]  (!%p2908_p12), %s3618_s1, 4096, %s129_s26, [#allocation3], %s3198_s28, %s3198_s28, %s3199_s29  }
  0x1e   : > { %155 = sbr.rel (%p3274_p10) target bundleno = 511 (0x1ff), region = 32 }
  0x23   : > { %3174 = dma.done.wait (%p2915_p9), [#allocation3], 4096  }
  0x24   : > { %3176 = vsyncadd (%p2915_p9), [#allocation3], 4294963200  ;;  %v3200_v0 = vmov 0.0   ;;  %vm3201_vm0 = vmmov 0   ;;  %v2957_v1 = vld [vmem:[#allocation2 + $0x78] sm:$0xff]   ;;  %p179_p6 = scmp.lt.s32.totalorder %s3246_s16, 1 }
  0x25   : > { %2580 = vmatprep.subr.bf16.mxu0 %v3200_v0  ;;  %2600 = vmatprep.subr.bf16.mxu1 %v3200_v0  ;;  %v2958_v2 = vld [vmem:[#allocation2 + $0x38] sm:$0xff]   ;;  %v2959_v3 = vld [vmem:[#allocation2 + $0x70] sm:$0xff]   ;;  %v2961_v5 = vld [vmem:[#allocation2 + $0x68] sm:$0xff]   ;;  %vm232_vm1 = vcmask 1046528   ;;  %vm329_vm2 = vsmask.f32 6400 }
  0x26   : > { %2596 = vmatprep.mubr.msk.bf16.mxu0 %vm3201_vm0, %v3200_v0  ;;  %2616 = vmatprep.mubr.msk.bf16.mxu1 %vm3201_vm0, %v3200_v0  ;;  %v2960_v4 = vld [vmem:[#allocation2 + $0x30] sm:$0xff]   ;;  %s180_s5 = scalar_select %p179_p6, %s3246_s16, 1  ;;  %v2962_v6 = vld [vmem:[#allocation2 + $0x28] sm:$0xff]   ;;  %v2963_v7 = vld [vmem:[#allocation2 + $0x60] sm:$0xff]   ;;  %vm458_vm3 = vsmask.f32 7424 }
  0x27   : > { %2581 = vmatpush3.bf16.msra.mxu0 %v2957_v1  ;;  %2601 = vmatpush3.bf16.msra.mxu1 %v2958_v2  ;;  %v2964_v8 = vld [vmem:[#allocation2 + $0x20] sm:$0xff]   ;;  %v2965_v9 = vld [vmem:[#allocation2 + $0x58] sm:$0xff]   ;;  %v2967_v14 = vld [vmem:[#allocation2 + $0x50] sm:$0xff]   ;;  %s176_s10 = sand.u32 1, %s3187_s13   ;;  %s2435_s27 = sshll.u32 %s3246_s16, 10 }
  0x28   : > { %2582 = vmatprep.subr.bf16.mxu0 %v3200_v0  ;;  %2602 = vmatprep.subr.bf16.mxu1 %v3200_v0  ;;  %s2900_s6 = smul.u32 48, %s180_s5  ;;  %v2966_v10 = vld [vmem:[#allocation2 + $0x18] sm:$0xff]   ;;  %v2968_v16 = vld [vmem:[#allocation2 + $0x10] sm:$0xff]   ;;  %v2969_v19 = vld [vmem:[#allocation2 + $0x48] sm:$0xff]   ;;  %s2253_s11 = sshll.u32 %s176_s10, 6 }
  0x29   : > { %v2970_v23 = vld [vmem:[#allocation2 + $0x8] sm:$0xff]   ;;  %v2971_v28 = vld [vmem:[#allocation2 + $0x40] sm:$0xff]   ;;  %v2976_v35 = vld [vmem:[#allocation2 + $0xb8] sm:$0xff]   ;;  %s3549_s25 = scalar_lea.vmem [#allocation5], %s2253_s11  ;;  %s3572_s30 = scalar_lea.hbm %s3620_s3, %s2435_s27 }
  0x2a   : > { %s3308_s9 = scalar_lea.vmem %s3617_s0, %s2900_s6  ;;  %v2972_v31 = vld [vmem:[#allocation2] sm:$0xff]   ;;  %v2977_v37 = vld [vmem:[#allocation2 + $0xf8] sm:$0xff]   ;;  %v2978_v38 = vld [vmem:[#allocation2 + $0xb0] sm:$0xff]   ;;  %s2173_s26 = sshll.u32 %s3549_s25, 4  ;;  %s3566_s26 = int_to_ptr.vmem [resolvable:$true] %s2173_s26 }
  0x2b   : > { %2583 = vmatpush3.bf16.msra.mxu0 %v2959_v3  ;;  %2603 = vmatpush3.bf16.msra.mxu1 %v2960_v4  ;;  %v187_v11 = vld [vmem:[%s3308_s9] sm:$0xe]  ;;  %v3314_v12 = vld [vmem:[%s3308_s9 + $0x4] sm:$0xf]  ;;  %v2979_v39 = vld [vmem:[#allocation2 + $0xf0] sm:$0xff]   ;;  %s3577_s4 = scalar_lea.sflag [#allocation4], %s176_s10 }
  0x2c   : > { %2584 = vmatprep.subr.bf16.mxu0 %v3200_v0  ;;  %2604 = vmatprep.subr.bf16.mxu1 %v3200_v0  ;;  %v2255_v13 = vcombine.low %v187_v11, %v3314_v12  ;;  %v2975_v15 = vld [vmem:[%s3308_s9 + $0x8] ss:$0 sps:$4 sm:$0x33]   ;;  %v2982_v42 = vld [vmem:[#allocation2 + $0xa0] sm:$0xff]   ;;  %v2984_v45 = vld [vmem:[#allocation2 + $0x98] sm:$0xff]   ;;  %s3131_s16 = scalar_lea.vmem %s3566_s26, 1024 }
  0x2d   : > { %v3321_v20 = vld [vmem:[%s3308_s9 + $0x8] ss:$0 sps:$4 sm:$0x11]   ;;  %v339_v21 = vshrl.u32 %v2975_v15, 16  ;;  %v342_v22 = vshll.u32 %v2975_v15, 16  ;;  %v2983_v43 = vld [vmem:[#allocation2 + $0xe0] sm:$0xff]   ;;  %p3132_p8 = scmp.ne.s32.totalorder %s3566_s26, %s3131_s16 }
  0x2e   : > { %v331_v17 = vshrl.u32 %v2255_v13, 16  ;;  %v334_v18 = vshll.u32 %v2255_v13, 16  ;;  %v233_v29 = vrot.slane %v2255_v13, 1  ;;  %v234_v30 = vrot.slane %v3321_v20, 1  ;;  %v2980_v40 = vld [vmem:[#allocation2 + $0xa8] sm:$0xff]   ;;  %v2985_v47 = vld [vmem:[#allocation2 + $0xd8] sm:$0xff]  }
  0x2f   : > { %2585 = vmatpush3.bf16.msra.mxu0 %v2961_v5  ;;  %2605 = vmatpush3.bf16.msra.mxu1 %v2962_v6  ;;  %v341_v26 = vrot.slane %v339_v21, 1  ;;  %v344_v27 = vrot.slane %v342_v22, 2  ;;  %v2981_v41 = vld [vmem:[#allocation2 + $0xe8] sm:$0xff]   ;;  %v437_v44 = vld [vmem:[%s3308_s9] sm:$0xf]  ;;  %v2986_v48 = vld [vmem:[#allocation2 + $0x90] sm:$0xff]   ;;  %p3133_p9 = pnand %p3132_p8, %p3263_p5 }
  0x30   : > { %2586 = vmatprep.subr.bf16.mxu0 %v3200_v0  ;;  %2606 = vmatprep.subr.bf16.mxu1 %v3200_v0  ;;  %v333_v24 = vrot.slane %v331_v17, 1  ;;  %v336_v25 = vrot.slane %v334_v18, 2  ;;  %v235_v34 = vsel %vm232_vm1, %v233_v29, %v234_v30  ;;  %v2274_v46 = vcombine.low %v437_v44, %v3314_v12  ;;  %v2987_v50 = vld [vmem:[#allocation2 + $0xd0] sm:$0xff]   ;;  %v2988_v51 = vld [vmem:[#allocation2 + $0x88] sm:$0xff]   ;;  %v2990_v56 = vld [vmem:[#allocation2 + $0x80] sm:$0xff]   ;;  %s3202_s5 = smov [#allocation5]  }
  0x31   : > { %v345_v33 = vor.u32 %v344_v27, %v341_v26  ;;  %v467_v54 = vshll.u32 %v3321_v20, 16  ;;  %v2989_v55 = vld [vmem:[#allocation2 + $0xc8] sm:$0xff]   ;;  %v2991_v59 = vld [vmem:[#allocation2 + $0xc0] sm:$0xff]   ;;  %v2994_v62 = vld [vmem:[#allocation2 + $0x78] sm:$0xff]   ;;  %p3134_p10 = pneg %p3133_p9  ;;  %s3135_s6 = sshll.u32 %s3202_s5, 4  ;;  %s3136_s6 = int_to_ptr.vmem [resolvable:$false] %s3135_s6 }
  0x32   : > { %v337_v32 = vor.u32 %v336_v25, %v333_v24  ;;  %v462_v49 = vshll.u32 %v2274_v46, 16  ;;  %v460_v52 = vshrl.u32 %v2274_v46, 16  ;;  %v2993_v60 = vld [vmem:[%s3308_s9] sm:$0xff]   ;;  %v2995_v63 = vld [vmem:[#allocation2 + $0x38] sm:$0xff]   ;;  %v2996_v1 = vld [vmem:[#allocation2 + $0x70] sm:$0xff]   ;;  %s3137_s7 = scalar_lea.vmem %s3136_s6, 2048  ;;  %p3138_p11 = scmp.lt.s32.totalorder %s3566_s26, %s3136_s6 }
  0x33   : > { %2587 = vmatpush3.bf16.msra.mxu0 %v2963_v7  ;;  %2607 = vmatpush3.bf16.msra.mxu1 %v2964_v8  ;;  %v469_v58 = vrot.slane %v467_v54, 1  ;;  %v2997_v2 = vld [vmem:[#allocation2 + $0x30] sm:$0xff]   ;;  %v2998_v3 = vld [vmem:[#allocation2 + $0x68] sm:$0xff]   ;;  %v3000_v5 = vld [vmem:[#allocation2 + $0x60] sm:$0xff]   ;;  %p3139_p12 = scmp.lt.s32.totalorder %s3137_s7, %s3131_s16 }
  0x34   : > { %2588 = vmatprep.subr.bf16.mxu0 %v3200_v0  ;;  %2608 = vmatprep.subr.bf16.mxu1 %v3200_v0  ;;  %v346_v36 = vsel %vm329_vm2, %v337_v32, %v345_v33  ;;  %v464_v53 = vrot.slane %v462_v49, 1  ;;  %v2999_v4 = vld [vmem:[#allocation2 + $0x28] sm:$0xff]   ;;  %v3001_v6 = vld [vmem:[#allocation2 + $0x20] sm:$0xff]   ;;  %v3368_v8 = vld [vmem:[%s3308_s9 + $0x10] sm:$0xf] }
  0x35   : > { %v2292_v7 = vld [vmem:[%s3308_s9 + $0xc] sm:$0xe]  ;;  %v3003_v12 = vld [vmem:[#allocation2 + $0x18] sm:$0xff]   ;;  %v3004_v13 = vld [vmem:[#allocation2 + $0x50] sm:$0xff]   ;;  %p3140_p13 = por %p3139_p12, %p3138_p11 }
  0x36   : > { %v465_v57 = vor.u32 %v464_v53, %v460_v52  ;;  %v2296_v11 = vcombine.low %v2292_v7, %v3368_v8  ;;  %v3378_v20 = vld [vmem:[%s3308_s9 + $0x14] ss:$0 sps:$4 sm:$0x11]   ;;  %v3007_v21 = vld [vmem:[#allocation2 + $0x8] sm:$0xff]   ;;  %v3008_v26 = vld [vmem:[#allocation2 + $0x40] sm:$0xff]  }
  0x37   : > { %2589 = vmatpush3.bf16.msra.mxu0 %v2965_v9  ;;  %2609 = vmatpush3.bf16.msra.mxu1 %v2966_v10  ;;  %v3012_v9 = vld [vmem:[%s3308_s9 + $0x14] ss:$0 sps:$4 sm:$0x33]   ;;  %v3002_v10 = vld [vmem:[#allocation2 + $0x58] sm:$0xff]   ;;  %v3009_v29 = vld [vmem:[#allocation2] sm:$0xff]   ;;  %p3141_p0 = pnand %p3140_p13, %p3134_p10 }
  0x38   : > { %2590 = vmatprep.subr.bf16.mxu0 %v3200_v0  ;;  %2610 = vmatprep.subr.bf16.mxu1 %v3200_v0  ;;  %v470_v61 = vsel %vm458_vm3, %v465_v57, %v469_v58  ;;  %v825_v15 = vshrl.u32 %v2296_v11, 16  ;;  %v833_v17 = vshrl.u32 %v3012_v9, 16  ;;  %v836_v18 = vshll.u32 %v3012_v9, 16  ;;  %v3013_v33 = vld [vmem:[#allocation2 + $0xb8] sm:$0xff]   ;;  %v3023_v46 = vld [vmem:[#allocation2 + $0x90] sm:$0xff]   ;;  %v3025_v49 = vld [vmem:[#allocation2 + $0x88] sm:$0xff]  }
  0x39   : > { %v728_v27 = vrot.slane %v2296_v11, 1  ;;  %v3026_v53 = vld [vmem:[#allocation2 + $0xc8] sm:$0xff]   ;;  %v3027_v54 = vld [vmem:[#allocation2 + $0x80] sm:$0xff]  }
  0x3a   : > { %v827_v22 = vrot.slane %v825_v15, 1  ;;  %v835_v24 = vrot.slane %v833_v17, 1  ;;  %v838_v25 = vrot.slane %v836_v18, 2  ;;  %v3028_v57 = vld [vmem:[#allocation2 + $0xc0] sm:$0xff]   ;;  %v3043_v17 = vld [vmem:[#allocation2 + $0x48] sm:$0xff]  }
  0x3b   : > { %2591 = vmatpush3.bf16.msra.mxu0 %v2967_v14  ;;  %2611 = vmatpush3.bf16.msra.mxu1 %v2968_v16  ;;  %v3005_v14 = vld [vmem:[#allocation2 + $0x10] sm:$0xff]   ;;  %v828_v16 = vshll.u32 %v2296_v11, 16  ;;  %v3049_v7 = vld [vmem:[%s3308_s9 + $0x20] ss:$0 sps:$4 sm:$0x33]  }
  0x3c   : > { %2592 = vmatprep.subr.bf16.mxu0 %v3200_v0  ;;  %2612 = vmatprep.subr.bf16.mxu1 %v3200_v0  ;;  %v3041_v11 = vld [vmem:[#allocation2 + $0x50] sm:$0xff]   ;;  %v1325_v15 = vshrl.u32 %v3049_v7, 16  ;;  %v3435_v18 = vld [vmem:[%s3308_s9 + $0x20] ss:$0 sps:$4 sm:$0x11]  }
  0x3f   : > { %2593 = vmatpush3.bf16.msra.mxu0 %v2969_v19  ;;  %2613 = vmatpush3.bf16.msra.mxu1 %v2970_v23  ;;  %v3006_v19 = vld [vmem:[#allocation2 + $0x48] sm:$0xff]   ;;  %v830_v23 = vrot.slane %v828_v16, 2  ;;  %v1328_v16 = vshll.u32 %v3049_v7, 16 }
  0x40   : > { %2594 = vmatprep.subr.bf16.mxu0 %v3200_v0  ;;  %2614 = vmatprep.subr.bf16.mxu1 %v3200_v0 }
  0x41   : > { %v831_v30 = vor.u32 %v830_v23, %v827_v22  ;;  %v1327_v22 = vrot.slane %v1325_v15, 1  ;;  %v1330_v23 = vrot.slane %v1328_v16, 2  ;;  %v3080_v15 = vld [vmem:[#allocation2 + $0x48] sm:$0xff]  }
  0x42   : > { %v3492_v16 = vld [vmem:[%s3308_s9 + $0x2c] ss:$0 sps:$4 sm:$0x11]  }
  0x43   : > { %2595 = vmatpush3.bf16.msra.mxu0 %v2971_v28  ;;  %2615 = vmatpush3.bf16.msra.mxu1 %v2972_v31  ;;  %v729_v28 = vrot.slane %v3378_v20, 1  ;;  %v839_v31 = vor.u32 %v838_v25, %v835_v24  ;;  %v3045_v24 = vld [vmem:[#allocation2 + $0x40] sm:$0xff]  }
  0x44   : > { %2620 = vmatprep.subr.bf16.mxu0 %v3200_v0  ;;  %2640 = vmatprep.subr.bf16.mxu1 %v3200_v0 }
  0x45   : > { %v730_v32 = vsel %vm232_vm1, %v728_v27, %v729_v28  ;;  %v3046_v27 = vld [vmem:[#allocation2] sm:$0xff]  }
  0x46   : > { %2597 = vmatmul.mubr.bf16.vlgmr.msra.gmra.mxu0 %v235_v34  ;;  %2617 = vmatmul.mubr.bf16.vlgmr.msra.gmra.mxu1 %v346_v36  ;;  %v840_v34 = vsel %vm329_vm2, %v831_v30, %v839_v31  ;;  %v3015_v36 = vld [vmem:[#allocation2 + $0xb0] sm:$0xff]   ;;  %v3050_v31 = vld [vmem:[#allocation2 + $0xb8] sm:$0xff]  }
  0x47   : > { %2621 = vmatpush3.bf16.msra.mxu0 %v2976_v35  ;;  %2641 = vmatpush3.bf16.msra.mxu1 %v2977_v37  ;;  %v3014_v35 = vld [vmem:[#allocation2 + $0xf8] sm:$0xff]   ;;  %v3016_v37 = vld [vmem:[#allocation2 + $0xf0] sm:$0xff]  }
  0x48   : > { %2622 = vmatprep.subr.bf16.mxu0 %v3200_v0  ;;  %2642 = vmatprep.subr.bf16.mxu1 %v3200_v0 }
  0x49   : > { %2636 = vmatprep.mubr.msk.bf16.mxu0 %vm3201_vm0, %v3200_v0  ;;  %2656 = vmatprep.mubr.msk.bf16.mxu1 %vm3201_vm0, %v3200_v0 }
  0x4b   : > { %2623 = vmatpush3.bf16.msra.mxu0 %v2978_v38  ;;  %2643 = vmatpush3.bf16.msra.mxu1 %v2979_v39  ;;  %v3017_v38 = vld [vmem:[#allocation2 + $0xa8] sm:$0xff]  }
  0x4c   : > { %2624 = vmatprep.subr.bf16.mxu0 %v3200_v0  ;;  %2644 = vmatprep.subr.bf16.mxu1 %v3200_v0  ;;  %v3018_v39 = vld [vmem:[#allocation2 + $0xe8] sm:$0xff]  }
  0x4f   : > { %2625 = vmatpush3.bf16.msra.mxu0 %v2980_v40  ;;  %2645 = vmatpush3.bf16.msra.mxu1 %v2981_v41  ;;  %v3019_v40 = vld [vmem:[#allocation2 + $0xa0] sm:$0xff]  }
  0x50   : > { %2626 = vmatprep.subr.bf16.mxu0 %v3200_v0  ;;  %2646 = vmatprep.subr.bf16.mxu1 %v3200_v0  ;;  %v3020_v41 = vld [vmem:[#allocation2 + $0xe0] sm:$0xff]  }
  0x53   : > { %2627 = vmatpush3.bf16.msra.mxu0 %v2982_v42  ;;  %2647 = vmatpush3.bf16.msra.mxu1 %v2983_v43  ;;  %v2315_v42 = vld [vmem:[%s3308_s9 + $0xc] sm:$0xf]  ;;  %v3021_v43 = vld [vmem:[#allocation2 + $0x98] sm:$0xff]  }
  0x54   : > { %2628 = vmatprep.subr.bf16.mxu0 %v3200_v0  ;;  %2648 = vmatprep.subr.bf16.mxu1 %v3200_v0  ;;  %v2316_v44 = vcombine.low %v2315_v42, %v3368_v8  ;;  %v3039_v8 = vld [vmem:[#allocation2 + $0x58] sm:$0xff]  }
  0x57   : > { %2629 = vmatpush3.bf16.msra.mxu0 %v2984_v45  ;;  %2649 = vmatpush3.bf16.msra.mxu1 %v2985_v47  ;;  %v3022_v45 = vld [vmem:[#allocation2 + $0xd8] sm:$0xff]   ;;  %v954_v47 = vshll.u32 %v2316_v44, 16 }
  0x58   : > { %2630 = vmatprep.subr.bf16.mxu0 %v3200_v0  ;;  %2650 = vmatprep.subr.bf16.mxu1 %v3200_v0 }
  0x59   : > { %v956_v52 = vrot.slane %v954_v47, 1  ;;  %v3062_v47 = vld [vmem:[#allocation2 + $0x88] sm:$0xff]  }
  0x5b   : > { %2631 = vmatpush3.bf16.msra.mxu0 %v2986_v48  ;;  %2651 = vmatpush3.bf16.msra.mxu1 %v2987_v50  ;;  %v3024_v48 = vld [vmem:[#allocation2 + $0xd0] sm:$0xff]   ;;  %v959_v50 = vshll.u32 %v3378_v20, 16 }
  0x5c   : > { %2632 = vmatprep.subr.bf16.mxu0 %v3200_v0  ;;  %2652 = vmatprep.subr.bf16.mxu1 %v3200_v0 }
  0x5f   : > { %2633 = vmatpush3.bf16.msra.mxu0 %v2988_v51  ;;  %2653 = vmatpush3.bf16.msra.mxu1 %v2989_v55  ;;  %v952_v51 = vshrl.u32 %v2316_v44, 16  ;;  %v3060_v44 = vld [vmem:[#allocation2 + $0x90] sm:$0xff]  }
  0x60   : > { %2634 = vmatprep.subr.bf16.mxu0 %v3200_v0  ;;  %2654 = vmatprep.subr.bf16.mxu1 %v3200_v0 }
  0x61   : > { %v957_v55 = vor.u32 %v956_v52, %v952_v51  ;;  %v3063_v51 = vld [vmem:[#allocation2 + $0xc8] sm:$0xff]   ;;  %v3064_v52 = vld [vmem:[#allocation2 + $0x80] sm:$0xff]  }
  0x63   : > { %2635 = vmatpush3.bf16.msra.mxu0 %v2990_v56  ;;  %2655 = vmatpush3.bf16.msra.mxu1 %v2991_v59  ;;  %v961_v56 = vrot.slane %v959_v50, 1  ;;  %v3030_v59 = vld [vmem:[%s3308_s9 + $0xc] sm:$0xff]   ;;  %v1451_v50 = vshll.u32 %v3435_v18, 16 }
  0x64   : > { %2660 = vmatprep.subr.bf16.mxu0 %v3200_v0  ;;  %2680 = vmatprep.subr.bf16.mxu1 %v3200_v0 }
  0x65   : > { %v962_v58 = vsel %vm458_vm3, %v957_v55, %v961_v56  ;;  %v3065_v55 = vld [vmem:[#allocation2 + $0xc0] sm:$0xff]  }
  0x66   : > { %2637 = vmatmul.mubr.bf16.vlgmr.msra.gmra.mxu0 %v470_v61  ;;  %2657 = vmatmul.mubr.bf16.vlgmr.msra.gmra.mxu1 %v2993_v60  ;;  %v3031_v60 = vld [vmem:[#allocation2 + $0x78] sm:$0xff]  }
  0x67   : > { %2661 = vmatpush3.bf16.msra.mxu0 %v2994_v62  ;;  %2681 = vmatpush3.bf16.msra.mxu1 %v2995_v63  ;;  %v3032_v61 = vld [vmem:[#allocation2 + $0x38] sm:$0xff]   ;;  %v3033_v62 = vld [vmem:[#allocation2 + $0x70] sm:$0xff]  }
  0x68   : > { %2662 = vmatprep.subr.bf16.mxu0 %v3200_v0  ;;  %2682 = vmatprep.subr.bf16.mxu1 %v3200_v0  ;;  %v3034_v63 = vld [vmem:[#allocation2 + $0x30] sm:$0xff]  }
  0x69   : > { %2676 = vmatprep.mubr.msk.bf16.mxu0 %vm3201_vm0, %v3200_v0  ;;  %2696 = vmatprep.mubr.msk.bf16.mxu1 %vm3201_vm0, %v3200_v0 }
  0x6b   : > { %2663 = vmatpush3.bf16.msra.mxu0 %v2996_v1  ;;  %2683 = vmatpush3.bf16.msra.mxu1 %v2997_v2  ;;  %v3035_v1 = vld [vmem:[#allocation2 + $0x68] sm:$0xff]  }
  0x6c   : > { %2664 = vmatprep.subr.bf16.mxu0 %v3200_v0  ;;  %2684 = vmatprep.subr.bf16.mxu1 %v3200_v0  ;;  %v3036_v2 = vld [vmem:[#allocation2 + $0x28] sm:$0xff]  }
  0x6f   : > { %2665 = vmatpush3.bf16.msra.mxu0 %v2998_v3  ;;  %2685 = vmatpush3.bf16.msra.mxu1 %v2999_v4  ;;  %v3037_v3 = vld [vmem:[#allocation2 + $0x60] sm:$0xff]  }
  0x70   : > { %2666 = vmatprep.subr.bf16.mxu0 %v3200_v0  ;;  %2686 = vmatprep.subr.bf16.mxu1 %v3200_v0  ;;  %v3038_v4 = vld [vmem:[#allocation2 + $0x20] sm:$0xff]  }
  0x73   : > { %2667 = vmatpush3.bf16.msra.mxu0 %v3000_v5  ;;  %2687 = vmatpush3.bf16.msra.mxu1 %v3001_v6  ;;  %v2338_v5 = vld [vmem:[%s3308_s9 + $0x18] sm:$0xe]  ;;  %v3425_v6 = vld [vmem:[%s3308_s9 + $0x1c] sm:$0xf] }
  0x74   : > { %2668 = vmatprep.subr.bf16.mxu0 %v3200_v0  ;;  %2688 = vmatprep.subr.bf16.mxu1 %v3200_v0  ;;  %v2342_v9 = vcombine.low %v2338_v5, %v3425_v6  ;;  %v3076_v5 = vld [vmem:[#allocation2 + $0x58] sm:$0xff]  }
  0x76   : > { %v1220_v25 = vrot.slane %v2342_v9, 1 }
  0x77   : > { %2669 = vmatpush3.bf16.msra.mxu0 %v3002_v10  ;;  %2689 = vmatpush3.bf16.msra.mxu1 %v3003_v12  ;;  %v3040_v10 = vld [vmem:[#allocation2 + $0x18] sm:$0xff]   ;;  %v3042_v12 = vld [vmem:[#allocation2 + $0x10] sm:$0xff]  }
  0x78   : > { %2670 = vmatprep.subr.bf16.mxu0 %v3200_v0  ;;  %2690 = vmatprep.subr.bf16.mxu1 %v3200_v0 }
  0x7b   : > { %2671 = vmatpush3.bf16.msra.mxu0 %v3004_v13  ;;  %2691 = vmatpush3.bf16.msra.mxu1 %v3005_v14  ;;  %v1317_v13 = vshrl.u32 %v2342_v9, 16  ;;  %v1320_v14 = vshll.u32 %v2342_v9, 16  ;;  %v3078_v9 = vld [vmem:[#allocation2 + $0x50] sm:$0xff]  }
  0x7c   : > { %2672 = vmatprep.subr.bf16.mxu0 %v3200_v0  ;;  %2692 = vmatprep.subr.bf16.mxu1 %v3200_v0 }
  0x7d   : > { %v1319_v20 = vrot.slane %v1317_v13, 1 }
  0x7f   : > { %2673 = vmatpush3.bf16.msra.mxu0 %v3006_v19  ;;  %2693 = vmatpush3.bf16.msra.mxu1 %v3007_v21  ;;  %v3044_v19 = vld [vmem:[#allocation2 + $0x8] sm:$0xff]   ;;  %v1322_v21 = vrot.slane %v1320_v14, 2 }
  0x80   : > { %2674 = vmatprep.subr.bf16.mxu0 %v3200_v0  ;;  %2694 = vmatprep.subr.bf16.mxu1 %v3200_v0 }
  0x81   : > { %v1323_v28 = vor.u32 %v1322_v21, %v1319_v20 }
  0x83   : > { %2675 = vmatpush3.bf16.msra.mxu0 %v3008_v26  ;;  %2695 = vmatpush3.bf16.msra.mxu1 %v3009_v29  ;;  %v1221_v26 = vrot.slane %v3435_v18, 1  ;;  %v1331_v29 = vor.u32 %v1330_v23, %v1327_v22  ;;  %v3082_v22 = vld [vmem:[#allocation2 + $0x40] sm:$0xff]  }
  0x84   : > { %2700 = vmatprep.subr.bf16.mxu0 %v3200_v0  ;;  %2720 = vmatprep.subr.bf16.mxu1 %v3200_v0 }
  0x85   : > { %v1222_v30 = vsel %vm232_vm1, %v1220_v25, %v1221_v26  ;;  %v3083_v25 = vld [vmem:[#allocation2] sm:$0xff]  }
  0x86   : > { %2677 = vmatmul.mubr.bf16.vlgmr.msra.gmra.mxu0 %v730_v32  ;;  %2697 = vmatmul.mubr.bf16.vlgmr.msra.gmra.mxu1 %v840_v34  ;;  %v1332_v32 = vsel %vm329_vm2, %v1323_v28, %v1331_v29  ;;  %v3052_v34 = vld [vmem:[#allocation2 + $0xb0] sm:$0xff]   ;;  %v3087_v29 = vld [vmem:[#allocation2 + $0xb8] sm:$0xff]  }
  0x87   : > { %2701 = vmatpush3.bf16.msra.mxu0 %v3013_v33  ;;  %2721 = vmatpush3.bf16.msra.mxu1 %v3014_v35  ;;  %v3051_v33 = vld [vmem:[#allocation2 + $0xf8] sm:$0xff]   ;;  %v3053_v35 = vld [vmem:[#allocation2 + $0xf0] sm:$0xff]  }
  0x88   : > { %2702 = vmatprep.subr.bf16.mxu0 %v3200_v0  ;;  %2722 = vmatprep.subr.bf16.mxu1 %v3200_v0 }
  0x89   : > { %2716 = vmatprep.mubr.msk.bf16.mxu0 %vm3201_vm0, %v3200_v0  ;;  %2736 = vmatprep.mubr.msk.bf16.mxu1 %vm3201_vm0, %v3200_v0 }
  0x8b   : > { %2703 = vmatpush3.bf16.msra.mxu0 %v3015_v36  ;;  %2723 = vmatpush3.bf16.msra.mxu1 %v3016_v37  ;;  %v3054_v36 = vld [vmem:[#allocation2 + $0xa8] sm:$0xff]  }
  0x8c   : > { %2704 = vmatprep.subr.bf16.mxu0 %v3200_v0  ;;  %2724 = vmatprep.subr.bf16.mxu1 %v3200_v0  ;;  %v3055_v37 = vld [vmem:[#allocation2 + $0xe8] sm:$0xff]  }
  0x8f   : > { %2705 = vmatpush3.bf16.msra.mxu0 %v3017_v38  ;;  %2725 = vmatpush3.bf16.msra.mxu1 %v3018_v39  ;;  %v3056_v38 = vld [vmem:[#allocation2 + $0xa0] sm:$0xff]  }
  0x90   : > { %2706 = vmatprep.subr.bf16.mxu0 %v3200_v0  ;;  %2726 = vmatprep.subr.bf16.mxu1 %v3200_v0  ;;  %v3057_v39 = vld [vmem:[#allocation2 + $0xe0] sm:$0xff]  }
  0x93   : > { %2707 = vmatpush3.bf16.msra.mxu0 %v3019_v40  ;;  %2727 = vmatpush3.bf16.msra.mxu1 %v3020_v41  ;;  %v2361_v40 = vld [vmem:[%s3308_s9 + $0x18] sm:$0xf] }
  0x94   : > { %2708 = vmatprep.subr.bf16.mxu0 %v3200_v0  ;;  %2728 = vmatprep.subr.bf16.mxu1 %v3200_v0  ;;  %v3058_v41 = vld [vmem:[#allocation2 + $0x98] sm:$0xff]   ;;  %v2362_v42 = vcombine.low %v2361_v40, %v3425_v6  ;;  %v3091_v40 = vld [vmem:[#allocation2 + $0xa8] sm:$0xff]  }
  0x95   : > { %v3077_v6 = vld [vmem:[#allocation2 + $0x18] sm:$0xff]  }
  0x97   : > { %2709 = vmatpush3.bf16.msra.mxu0 %v3021_v43  ;;  %2729 = vmatpush3.bf16.msra.mxu1 %v3022_v45  ;;  %v3059_v43 = vld [vmem:[#allocation2 + $0xd8] sm:$0xff]   ;;  %v1446_v45 = vshll.u32 %v2362_v42, 16 }
  0x98   : > { %2710 = vmatprep.subr.bf16.mxu0 %v3200_v0  ;;  %2730 = vmatprep.subr.bf16.mxu1 %v3200_v0 }
  0x9b   : > { %2711 = vmatpush3.bf16.msra.mxu0 %v3023_v46  ;;  %2731 = vmatpush3.bf16.msra.mxu1 %v3024_v48  ;;  %v3061_v46 = vld [vmem:[#allocation2 + $0xd0] sm:$0xff]   ;;  %v1444_v48 = vshrl.u32 %v2362_v42, 16  ;;  %v3092_v42 = vld [vmem:[#allocation2 + $0xe8] sm:$0xff]  }
  0x9c   : > { %2712 = vmatprep.subr.bf16.mxu0 %v3200_v0  ;;  %2732 = vmatprep.subr.bf16.mxu1 %v3200_v0 }
  0x9f   : > { %2713 = vmatpush3.bf16.msra.mxu0 %v3025_v49  ;;  %2733 = vmatpush3.bf16.msra.mxu1 %v3026_v53  ;;  %v1448_v49 = vrot.slane %v1446_v45, 1  ;;  %v3094_v45 = vld [vmem:[#allocation2 + $0xe0] sm:$0xff]  }
  0xa0   : > { %2714 = vmatprep.subr.bf16.mxu0 %v3200_v0  ;;  %2734 = vmatprep.subr.bf16.mxu1 %v3200_v0 }
  0xa1   : > { %v1449_v53 = vor.u32 %v1448_v49, %v1444_v48  ;;  %v3096_v49 = vld [vmem:[#allocation2 + $0xd8] sm:$0xff]  }
  0xa3   : > { %2715 = vmatpush3.bf16.msra.mxu0 %v3027_v54  ;;  %2735 = vmatpush3.bf16.msra.mxu1 %v3028_v57  ;;  %v1453_v54 = vrot.slane %v1451_v50, 1  ;;  %v3067_v57 = vld [vmem:[%s3308_s9 + $0x18] sm:$0xff]   ;;  %v3097_v50 = vld [vmem:[#allocation2 + $0x90] sm:$0xff]  }
  0xa4   : > { %2740 = vmatprep.subr.bf16.mxu0 %v3200_v0  ;;  %2760 = vmatprep.subr.bf16.mxu1 %v3200_v0 }
  0xa5   : > { %v1454_v56 = vsel %vm458_vm3, %v1449_v53, %v1453_v54  ;;  %v3099_v53 = vld [vmem:[#allocation2 + $0x88] sm:$0xff]  }
  0xa6   : > { %2717 = vmatmul.mubr.bf16.vlgmr.msra.gmra.mxu0 %v962_v58  ;;  %2737 = vmatmul.mubr.bf16.vlgmr.msra.gmra.mxu1 %v3030_v59  ;;  %v3068_v58 = vld [vmem:[#allocation2 + $0x78] sm:$0xff]  }
  0xa7   : > { %2741 = vmatpush3.bf16.msra.mxu0 %v3031_v60  ;;  %2761 = vmatpush3.bf16.msra.mxu1 %v3032_v61  ;;  %v3069_v59 = vld [vmem:[#allocation2 + $0x38] sm:$0xff]   ;;  %v3070_v60 = vld [vmem:[#allocation2 + $0x70] sm:$0xff]  }
  0xa8   : > { %2742 = vmatprep.subr.bf16.mxu0 %v3200_v0  ;;  %2762 = vmatprep.subr.bf16.mxu1 %v3200_v0  ;;  %v3071_v61 = vld [vmem:[#allocation2 + $0x30] sm:$0xff]  }
  0xa9   : > { %2756 = vmatprep.mubr.msk.bf16.mxu0 %vm3201_vm0, %v3200_v0  ;;  %2776 = vmatprep.mubr.msk.bf16.mxu1 %vm3201_vm0, %v3200_v0 }
  0xab   : > { %2743 = vmatpush3.bf16.msra.mxu0 %v3033_v62  ;;  %2763 = vmatpush3.bf16.msra.mxu1 %v3034_v63  ;;  %v3072_v62 = vld [vmem:[#allocation2 + $0x68] sm:$0xff]  }
  0xac   : > { %2744 = vmatprep.subr.bf16.mxu0 %v3200_v0  ;;  %2764 = vmatprep.subr.bf16.mxu1 %v3200_v0  ;;  %v3073_v63 = vld [vmem:[#allocation2 + $0x28] sm:$0xff]  }
  0xaf   : > { %2745 = vmatpush3.bf16.msra.mxu0 %v3035_v1  ;;  %2765 = vmatpush3.bf16.msra.mxu1 %v3036_v2  ;;  %v3074_v1 = vld [vmem:[#allocation2 + $0x60] sm:$0xff]  }
  0xb0   : > { %2746 = vmatprep.subr.bf16.mxu0 %v3200_v0  ;;  %2766 = vmatprep.subr.bf16.mxu1 %v3200_v0  ;;  %v3075_v2 = vld [vmem:[#allocation2 + $0x20] sm:$0xff]  }
  0xb3   : > { %2747 = vmatpush3.bf16.msra.mxu0 %v3037_v3  ;;  %2767 = vmatpush3.bf16.msra.mxu1 %v3038_v4  ;;  %v2384_v3 = vld [vmem:[%s3308_s9 + $0x24] sm:$0xe]  ;;  %v3483_v4 = vld [vmem:[%s3308_s9 + $0x28] sm:$0xf] }
  0xb4   : > { %2748 = vmatprep.subr.bf16.mxu0 %v3200_v0  ;;  %2768 = vmatprep.subr.bf16.mxu1 %v3200_v0  ;;  %v2388_v7 = vcombine.low %v2384_v3, %v3483_v4 }
  0xb6   : > { %v1712_v23 = vrot.slane %v2388_v7, 1 }
  0xb7   : > { %2749 = vmatpush3.bf16.msra.mxu0 %v3039_v8  ;;  %2769 = vmatpush3.bf16.msra.mxu1 %v3040_v10  ;;  %v3086_v8 = vld [vmem:[%s3308_s9 + $0x2c] ss:$0 sps:$4 sm:$0x33]   ;;  %v3079_v10 = vld [vmem:[#allocation2 + $0x10] sm:$0xff]  }
  0xb8   : > { %2750 = vmatprep.subr.bf16.mxu0 %v3200_v0  ;;  %2770 = vmatprep.subr.bf16.mxu1 %v3200_v0  ;;  %v1817_v13 = vshrl.u32 %v3086_v8, 16  ;;  %v1820_v14 = vshll.u32 %v3086_v8, 16 }
  0xba   : > { %v1819_v20 = vrot.slane %v1817_v13, 1  ;;  %v1822_v21 = vrot.slane %v1820_v14, 2  ;;  %v3547_v13 = vld [vmem:[%s3619_s2 + $0x8] sm:$0xff] }
  0xbb   : > { %2751 = vmatpush3.bf16.msra.mxu0 %v3041_v11  ;;  %2771 = vmatpush3.bf16.msra.mxu1 %v3042_v12  ;;  %v1809_v11 = vshrl.u32 %v2388_v7, 16  ;;  %v1812_v12 = vshll.u32 %v2388_v7, 16 }
  0xbc   : > { %2752 = vmatprep.subr.bf16.mxu0 %v3200_v0  ;;  %2772 = vmatprep.subr.bf16.mxu1 %v3200_v0 }
  0xbd   : > { %v1811_v18 = vrot.slane %v1809_v11, 1 }
  0xbf   : > { %2753 = vmatpush3.bf16.msra.mxu0 %v3043_v17  ;;  %2773 = vmatpush3.bf16.msra.mxu1 %v3044_v19  ;;  %v3081_v17 = vld [vmem:[#allocation2 + $0x8] sm:$0xff]   ;;  %v1814_v19 = vrot.slane %v1812_v12, 2 }
  0xc0   : > { %2754 = vmatprep.subr.bf16.mxu0 %v3200_v0  ;;  %2774 = vmatprep.subr.bf16.mxu1 %v3200_v0 }
  0xc1   : > { %v1815_v26 = vor.u32 %v1814_v19, %v1811_v18 }
  0xc3   : > { %2755 = vmatpush3.bf16.msra.mxu0 %v3045_v24  ;;  %2775 = vmatpush3.bf16.msra.mxu1 %v3046_v27  ;;  %v1713_v24 = vrot.slane %v3492_v16, 1  ;;  %v1823_v27 = vor.u32 %v1822_v21, %v1819_v20 }
  0xc4   : > { %2780 = vmatprep.subr.bf16.mxu0 %v3200_v0  ;;  %2800 = vmatprep.subr.bf16.mxu1 %v3200_v0 }
  0xc5   : > { %v1714_v28 = vsel %vm232_vm1, %v1712_v23, %v1713_v24 }
  0xc6   : > { %2757 = vmatmul.mubr.bf16.vlgmr.msra.gmra.mxu0 %v1222_v30  ;;  %2777 = vmatmul.mubr.bf16.vlgmr.msra.gmra.mxu1 %v1332_v32  ;;  %v1824_v30 = vsel %vm329_vm2, %v1815_v26, %v1823_v27 }
  0xc7   : > { %2781 = vmatpush3.bf16.msra.mxu0 %v3050_v31  ;;  %2801 = vmatpush3.bf16.msra.mxu1 %v3051_v33  ;;  %v3088_v31 = vld [vmem:[#allocation2 + $0xf8] sm:$0xff]  }
  0xc8   : > { %2782 = vmatprep.subr.bf16.mxu0 %v3200_v0  ;;  %2802 = vmatprep.subr.bf16.mxu1 %v3200_v0 }
  0xc9   : > { %2796 = vmatprep.mubr.msk.bf16.mxu0 %vm3201_vm0, %v3200_v0  ;;  %2816 = vmatprep.mubr.msk.bf16.mxu1 %vm3201_vm0, %v3200_v0 }
  0xcb   : > { %2783 = vmatpush3.bf16.msra.mxu0 %v3052_v34  ;;  %2803 = vmatpush3.bf16.msra.mxu1 %v3053_v35  ;;  %v3089_v34 = vld [vmem:[#allocation2 + $0xb0] sm:$0xff]  }
  0xcc   : > { %2784 = vmatprep.subr.bf16.mxu0 %v3200_v0  ;;  %2804 = vmatprep.subr.bf16.mxu1 %v3200_v0 }
  0xcf   : > { %2785 = vmatpush3.bf16.msra.mxu0 %v3054_v36  ;;  %2805 = vmatpush3.bf16.msra.mxu1 %v3055_v37  ;;  %v3090_v36 = vld [vmem:[#allocation2 + $0xf0] sm:$0xff]  }
  0xd0   : > { %2786 = vmatprep.subr.bf16.mxu0 %v3200_v0  ;;  %2806 = vmatprep.subr.bf16.mxu1 %v3200_v0 }
  0xd3   : > { %2787 = vmatpush3.bf16.msra.mxu0 %v3056_v38  ;;  %2807 = vmatpush3.bf16.msra.mxu1 %v3057_v39 }
  0xd4   : > { %2788 = vmatprep.subr.bf16.mxu0 %v3200_v0  ;;  %2808 = vmatprep.subr.bf16.mxu1 %v3200_v0 }
  0xd7   : > { %2789 = vmatpush3.bf16.msra.mxu0 %v3058_v41  ;;  %2809 = vmatpush3.bf16.msra.mxu1 %v3059_v43 }
  0xd8   : > { %2790 = vmatprep.subr.bf16.mxu0 %v3200_v0  ;;  %2810 = vmatprep.subr.bf16.mxu1 %v3200_v0 }
  0xdb   : > { %2791 = vmatpush3.bf16.msra.mxu0 %v3060_v44  ;;  %2811 = vmatpush3.bf16.msra.mxu1 %v3061_v46  ;;  %v3093_v44 = vld [vmem:[#allocation2 + $0xa0] sm:$0xff]  }
  0xdc   : > { %2792 = vmatprep.subr.bf16.mxu0 %v3200_v0  ;;  %2812 = vmatprep.subr.bf16.mxu1 %v3200_v0  ;;  %v2407_v46 = vld [vmem:[%s3308_s9 + $0x24] sm:$0xf] }
  0xdd   : > { %v2408_v48 = vcombine.low %v2407_v46, %v3483_v4 }
  0xdf   : > { %2793 = vmatpush3.bf16.msra.mxu0 %v3062_v47  ;;  %2813 = vmatpush3.bf16.msra.mxu1 %v3063_v51  ;;  %v3095_v47 = vld [vmem:[#allocation2 + $0x98] sm:$0xff]   ;;  %v1938_v51 = vshll.u32 %v2408_v48, 16  ;;  %v1936_v54 = vshrl.u32 %v2408_v48, 16 }
  0xe0   : > { %2794 = vmatprep.subr.bf16.mxu0 %v3200_v0  ;;  %2814 = vmatprep.subr.bf16.mxu1 %v3200_v0 }
  0xe3   : > { %2795 = vmatpush3.bf16.msra.mxu0 %v3064_v52  ;;  %2815 = vmatpush3.bf16.msra.mxu1 %v3065_v55  ;;  %v3098_v52 = vld [vmem:[#allocation2 + $0xd0] sm:$0xff]   ;;  %v1940_v55 = vrot.slane %v1938_v51, 1 }
  0xe4   : > { %2820 = vmatprep.subr.bf16.mxu0 %v3200_v0  ;;  %2840 = vmatprep.subr.bf16.mxu1 %v3200_v0 }
  0xe6   : > { %2797 = vmatmul.mubr.bf16.vlgmr.msra.gmra.mxu0 %v1454_v56  ;;  %2817 = vmatmul.mubr.bf16.vlgmr.msra.gmra.mxu1 %v3067_v57  ;;  %v1943_v56 = vshll.u32 %v3492_v16, 16  ;;  %v3100_v57 = vld [vmem:[#allocation2 + $0xc8] sm:$0xff]  }
  0xe7   : > { %2821 = vmatpush3.bf16.msra.mxu0 %v3068_v58  ;;  %2841 = vmatpush3.bf16.msra.mxu1 %v3069_v59  ;;  %v3101_v58 = vld [vmem:[#allocation2 + $0x80] sm:$0xff]   ;;  %v1941_v59 = vor.u32 %v1940_v55, %v1936_v54 }
  0xe8   : > { %2822 = vmatprep.subr.bf16.mxu0 %v3200_v0  ;;  %2842 = vmatprep.subr.bf16.mxu1 %v3200_v0 }
  0xe9   : > { %2836 = vmatprep.mubr.msk.bf16.mxu0 %vm3201_vm0, %v3200_v0  ;;  %2856 = vmatprep.mubr.msk.bf16.mxu1 %vm3201_vm0, %v3200_v0 }
  0xeb   : > { %2823 = vmatpush3.bf16.msra.mxu0 %v3070_v60  ;;  %2843 = vmatpush3.bf16.msra.mxu1 %v3071_v61  ;;  %v1945_v60 = vrot.slane %v1943_v56, 1  ;;  %v3102_v61 = vld [vmem:[#allocation2 + $0xc0] sm:$0xff]  }
  0xec   : > { %2824 = vmatprep.subr.bf16.mxu0 %v3200_v0  ;;  %2844 = vmatprep.subr.bf16.mxu1 %v3200_v0 }
  0xef   : > { %2825 = vmatpush3.bf16.msra.mxu0 %v3072_v62  ;;  %2845 = vmatpush3.bf16.msra.mxu1 %v3073_v63  ;;  %v1946_v62 = vsel %vm458_vm3, %v1941_v59, %v1945_v60  ;;  %v3104_v63 = vld [vmem:[%s3308_s9 + $0x24] sm:$0xff]  }
  0xf0   : > { %2826 = vmatprep.subr.bf16.mxu0 %v3200_v0  ;;  %2846 = vmatprep.subr.bf16.mxu1 %v3200_v0 }
  0xf3   : > { %2827 = vmatpush3.bf16.msra.mxu0 %v3074_v1  ;;  %2847 = vmatpush3.bf16.msra.mxu1 %v3075_v2 }
  0xf4   : > { %2828 = vmatprep.subr.bf16.mxu0 %v3200_v0  ;;  %2848 = vmatprep.subr.bf16.mxu1 %v3200_v0 }
  0xf7   : > { %2829 = vmatpush3.bf16.msra.mxu0 %v3076_v5  ;;  %2849 = vmatpush3.bf16.msra.mxu1 %v3077_v6 }
  0xf8   : > { %2830 = vmatprep.subr.bf16.mxu0 %v3200_v0  ;;  %2850 = vmatprep.subr.bf16.mxu1 %v3200_v0 }
  0xfb   : > { %2831 = vmatpush3.bf16.msra.mxu0 %v3078_v9  ;;  %2851 = vmatpush3.bf16.msra.mxu1 %v3079_v10 }
  0xfc   : > { %2832 = vmatprep.subr.bf16.mxu0 %v3200_v0  ;;  %2852 = vmatprep.subr.bf16.mxu1 %v3200_v0 }
  0xff   : > { %2833 = vmatpush3.bf16.msra.mxu0 %v3080_v15  ;;  %2853 = vmatpush3.bf16.msra.mxu1 %v3081_v17 }
 0x100   : > { %2834 = vmatprep.subr.bf16.mxu0 %v3200_v0  ;;  %2854 = vmatprep.subr.bf16.mxu1 %v3200_v0 }
 0x103   : > { %2835 = vmatpush3.bf16.msra.mxu0 %v3082_v22  ;;  %2855 = vmatpush3.bf16.msra.mxu1 %v3083_v25 }
 0x104   : > { %2860 = vmatprep.subr.bf16.mxu0 %v3200_v0  ;;  %2880 = vmatprep.subr.bf16.mxu1 %v3200_v0 }
 0x106   : > { %v3503_v32 = vpop.f32.mrf.mxu0  ;;  %2837 = vmatmul.mubr.bf16.vlgmr.msra.gmra.mxu0 %v1714_v28  ;;  %v3505_v33 = vpop.f32.mrf.mxu1  ;;  %2857 = vmatmul.mubr.bf16.vlgmr.msra.gmra.mxu1 %v1824_v30 }
 0x107   : > { %2861 = vmatpush3.bf16.msra.mxu0 %v3087_v29  ;;  %2881 = vmatpush3.bf16.msra.mxu1 %v3088_v31  ;;  %v431_v1 = vadd.f32 %v3505_v33, %v3503_v32 }
 0x108   : > { %v2598_v35 = vpop.f32.mrf.mxu0  ;;  %2862 = vmatprep.subr.bf16.mxu0 %v3200_v0  ;;  %v2618_v37 = vpop.f32.mrf.mxu1  ;;  %2882 = vmatprep.subr.bf16.mxu1 %v3200_v0 }
 0x109   : > { %2876 = vmatprep.mubr.msk.bf16.mxu0 %vm3201_vm0, %v3200_v0  ;;  %2896 = vmatprep.mubr.msk.bf16.mxu1 %vm3201_vm0, %v3200_v0 }
 0x10a   : > { %v3511_v38 = vpop.f32.mrf.mxu0  ;;  %v433_v39 = vpop.f32.mrf.mxu1 }
 0x10b   : > { %2863 = vmatpush3.bf16.msra.mxu0 %v3089_v34  ;;  %2883 = vmatpush3.bf16.msra.mxu1 %v3090_v36  ;;  %v434_v6 = vadd.f32 %v433_v39, %v3511_v38 }
 0x10c   : > { %v2599_v41 = vpop.f32.mrf.mxu0  ;;  %2864 = vmatprep.subr.bf16.mxu0 %v3200_v0  ;;  %v2619_v43 = vpop.f32.mrf.mxu1  ;;  %2884 = vmatprep.subr.bf16.mxu1 %v3200_v0 }
 0x10f   : > { %2865 = vmatpush3.bf16.msra.mxu0 %v3091_v40  ;;  %2885 = vmatpush3.bf16.msra.mxu1 %v3092_v42 }
 0x110   : > { %2866 = vmatprep.subr.bf16.mxu0 %v3200_v0  ;;  %2886 = vmatprep.subr.bf16.mxu1 %v3200_v0 }
 0x113   : > { %2867 = vmatpush3.bf16.msra.mxu0 %v3093_v44  ;;  %2887 = vmatpush3.bf16.msra.mxu1 %v3094_v45 }
 0x114   : > { %2868 = vmatprep.subr.bf16.mxu0 %v3200_v0  ;;  %2888 = vmatprep.subr.bf16.mxu1 %v3200_v0 }
 0x117   : > { %2869 = vmatpush3.bf16.msra.mxu0 %v3095_v47  ;;  %2889 = vmatpush3.bf16.msra.mxu1 %v3096_v49 }
 0x118   : > { %2870 = vmatprep.subr.bf16.mxu0 %v3200_v0  ;;  %2890 = vmatprep.subr.bf16.mxu1 %v3200_v0 }
 0x11b   : > { %2871 = vmatpush3.bf16.msra.mxu0 %v3097_v50  ;;  %2891 = vmatpush3.bf16.msra.mxu1 %v3098_v52 }
 0x11c   : > { %2872 = vmatprep.subr.bf16.mxu0 %v3200_v0  ;;  %2892 = vmatprep.subr.bf16.mxu1 %v3200_v0 }
 0x11f   : > { %2873 = vmatpush3.bf16.msra.mxu0 %v3099_v53  ;;  %2893 = vmatpush3.bf16.msra.mxu1 %v3100_v57 }
 0x120   : > { %2874 = vmatprep.subr.bf16.mxu0 %v3200_v0  ;;  %2894 = vmatprep.subr.bf16.mxu1 %v3200_v0  ;;  %v3540_v0 = vld [vmem:[%s3619_s2] sm:$0xff] }
 0x123   : > { %2875 = vmatpush3.bf16.msra.mxu0 %v3101_v58  ;;  %2895 = vmatpush3.bf16.msra.mxu1 %v3102_v61 }
 0x126   : > { %v554_v2 = vpop.f32.mrf.mxu0  ;;  %2877 = vmatmul.mubr.bf16.vlgmr.msra.gmra.mxu0 %v1946_v62  ;;  %v670_v4 = vpop.f32.mrf.mxu1  ;;  %2897 = vmatmul.mubr.bf16.vlgmr.msra.gmra.mxu1 %v3104_v63 }
 0x127   : > { %v561_v3 = vadd.f32 %v554_v2, %v431_v1 }
 0x128   : > { %v2638_v5 = vpop.f32.mrf.mxu0  ;;  %v2658_v8 = vpop.f32.mrf.mxu1 }
 0x129   : > { %v677_v7 = vadd.f32 %v670_v4, %v561_v3 }
 0x12a   : > { %v557_v9 = vpop.f32.mrf.mxu0  ;;  %v673_v12 = vpop.f32.mrf.mxu1 }
 0x12b   : > { %v679_v10 = vmul.f32 %v677_v7, %v3540_v0  ;;  %v562_v11 = vadd.f32 %v557_v9, %v434_v6 }
 0x12c   : > { %v2639_v14 = vpop.f32.mrf.mxu0  ;;  %v2659_v16 = vpop.f32.mrf.mxu1 }
 0x12d   : > { %681 = vst [vmem:[%s3549_s25] sm:$0xff] %v679_v10  ;;  %v678_v15 = vadd.f32 %v673_v12, %v562_v11 }
 0x12f   : > { %v680_v17 = vmul.f32 %v678_v15, %v3547_v13 }
 0x131   : > { %682 = vst [vmem:[%s3549_s25 + $0x8] sm:$0xff] %v680_v17 }
 0x146   : > { %v814_v18 = vpop.f32.mrf.mxu0  ;;  %v924_v19 = vpop.f32.mrf.mxu1 }
 0x147   : > { %v925_v26 = vadd.f32 %v924_v19, %v814_v18 }
 0x148   : > { %v2678_v20 = vpop.f32.mrf.mxu0  ;;  %v2698_v21 = vpop.f32.mrf.mxu1 }
 0x14a   : > { %v817_v22 = vpop.f32.mrf.mxu0  ;;  %v927_v23 = vpop.f32.mrf.mxu1 }
 0x14b   : > { %v928_v31 = vadd.f32 %v927_v23, %v817_v22 }
 0x14c   : > { %v2679_v24 = vpop.f32.mrf.mxu0  ;;  %v2699_v25 = vpop.f32.mrf.mxu1 }
 0x166   : > { %v1046_v27 = vpop.f32.mrf.mxu0  ;;  %v1161_v29 = vpop.f32.mrf.mxu1 }
 0x167   : > { %v1053_v28 = vadd.f32 %v1046_v27, %v925_v26 }
 0x168   : > { %v2718_v30 = vpop.f32.mrf.mxu0  ;;  %v2738_v33 = vpop.f32.mrf.mxu1 }
 0x169   : > { %v1168_v32 = vadd.f32 %v1161_v29, %v1053_v28 }
 0x16a   : > { %v1049_v34 = vpop.f32.mrf.mxu0  ;;  %v1164_v37 = vpop.f32.mrf.mxu1 }
 0x16b   : > { %v1170_v35 = vmul.f32 %v1168_v32, %v3540_v0  ;;  %v1054_v36 = vadd.f32 %v1049_v34, %v928_v31 }
 0x16c   : > { %v2719_v38 = vpop.f32.mrf.mxu0  ;;  %v2739_v40 = vpop.f32.mrf.mxu1 }
 0x16d   : > { %2336 = vst [vmem:[%s3549_s25 + $0x10] sm:$0xff] %v1170_v35  ;;  %v1169_v39 = vadd.f32 %v1164_v37, %v1054_v36 }
 0x16f   : > { %v1171_v41 = vmul.f32 %v1169_v39, %v3547_v13 }
 0x171   : > { %2337 = vst [vmem:[%s3549_s25 + $0x18] sm:$0xff] %v1171_v41 }
 0x186   : > { %v1306_v42 = vpop.f32.mrf.mxu0  ;;  %v1416_v43 = vpop.f32.mrf.mxu1 }
 0x187   : > { %v1417_v50 = vadd.f32 %v1416_v43, %v1306_v42 }
 0x188   : > { %v2758_v44 = vpop.f32.mrf.mxu0  ;;  %v2778_v45 = vpop.f32.mrf.mxu1 }
 0x18a   : > { %v1309_v46 = vpop.f32.mrf.mxu0  ;;  %v1419_v47 = vpop.f32.mrf.mxu1 }
 0x18b   : > { %v1420_v55 = vadd.f32 %v1419_v47, %v1309_v46 }
 0x18c   : > { %v2759_v48 = vpop.f32.mrf.mxu0  ;;  %v2779_v49 = vpop.f32.mrf.mxu1 }
 0x1a6   : > { %v1538_v51 = vpop.f32.mrf.mxu0  ;;  %v1653_v53 = vpop.f32.mrf.mxu1 }
 0x1a7   : > { %v1545_v52 = vadd.f32 %v1538_v51, %v1417_v50 }
 0x1a8   : > { %v2798_v54 = vpop.f32.mrf.mxu0  ;;  %v2818_v57 = vpop.f32.mrf.mxu1 }
 0x1a9   : > { %v1660_v56 = vadd.f32 %v1653_v53, %v1545_v52 }
 0x1aa   : > { %v1541_v58 = vpop.f32.mrf.mxu0  ;;  %v1656_v61 = vpop.f32.mrf.mxu1 }
 0x1ab   : > { %v1662_v59 = vmul.f32 %v1660_v56, %v3540_v0  ;;  %v1546_v60 = vadd.f32 %v1541_v58, %v1420_v55 }
 0x1ac   : > { %v2799_v62 = vpop.f32.mrf.mxu0  ;;  %v2819_v1 = vpop.f32.mrf.mxu1 }
 0x1ad   : > { %2382 = vst [vmem:[%s3549_s25 + $0x20] sm:$0xff] %v1662_v59  ;;  %v1661_v63 = vadd.f32 %v1656_v61, %v1546_v60 }
 0x1af   : > { %v1663_v2 = vmul.f32 %v1661_v63, %v3547_v13 }
 0x1b1   : > { %2383 = vst [vmem:[%s3549_s25 + $0x28] sm:$0xff] %v1663_v2 }
 0x1c6   : > { %v1798_v3 = vpop.f32.mrf.mxu0  ;;  %v1908_v4 = vpop.f32.mrf.mxu1 }
 0x1c7   : > { %v1909_v11 = vadd.f32 %v1908_v4, %v1798_v3 }
 0x1c8   : > { %v2838_v5 = vpop.f32.mrf.mxu0  ;;  %v2858_v6 = vpop.f32.mrf.mxu1 }
 0x1ca   : > { %v1801_v7 = vpop.f32.mrf.mxu0  ;;  %v1911_v8 = vpop.f32.mrf.mxu1 }
 0x1cb   : > { %v1912_v17 = vadd.f32 %v1911_v8, %v1801_v7 }
 0x1cc   : > { %v2839_v9 = vpop.f32.mrf.mxu0  ;;  %v2859_v10 = vpop.f32.mrf.mxu1 }
 0x1e6   : > { %v2030_v12 = vpop.f32.mrf.mxu0  ;;  %v2145_v15 = vpop.f32.mrf.mxu1 }
 0x1e7   : > { %v2037_v14 = vadd.f32 %v2030_v12, %v1909_v11 }
 0x1e8   : > { %v2878_v16 = vpop.f32.mrf.mxu0  ;;  %v2898_v19 = vpop.f32.mrf.mxu1 }
 0x1e9   : > { %v2152_v18 = vadd.f32 %v2145_v15, %v2037_v14 }
 0x1ea   : > { %v2033_v20 = vpop.f32.mrf.mxu0  ;;  %v2148_v23 = vpop.f32.mrf.mxu1 }
 0x1eb   : > { %v2154_v21 = vmul.f32 %v2152_v18, %v3540_v0  ;;  %v2038_v22 = vadd.f32 %v2033_v20, %v1912_v17 }
 0x1ec   : > { %v2879_v24 = vpop.f32.mrf.mxu0  ;;  %v2899_v26 = vpop.f32.mrf.mxu1 }
 0x1ed   : > { %2428 = vst [vmem:[%s3549_s25 + $0x30] sm:$0xff] %v2154_v21  ;;  %v2153_v25 = vadd.f32 %v2148_v23, %v2038_v22 }
 0x1ef   : > { %v2155_v27 = vmul.f32 %v2153_v25, %v3547_v13 }
 0x1f1   : > { %2429 = vst [vmem:[%s3549_s25 + $0x38] sm:$0xff] %v2155_v27 }
 0x1f2   : > { %3144 = shalt.err (!%p3141_p0)
}
 0x1f3   : > { %s3145_s8 = scalar_lea.hbm %s3572_s30, 1024  ;;  %s3149_s11 = scalar_lea.hbm %s3620_s3, 2048 }
 0x1f4   : > { %p3146_p1 = scmp.ne.s32.totalorder %s3572_s30, %s3145_s8  ;;  %p3150_p4 = scmp.lt.s32.totalorder %s3572_s30, %s3620_s3 }
 0x1f5   : > { %p3151_p7 = scmp.lt.s32.totalorder %s3149_s11, %s3145_s8 }
 0x1f6   : > { %p3147_p2 = pnand %p3146_p1, %p3263_p5 }
 0x1f7   : > { %p3152_p6 = por %p3151_p7, %p3150_p4 }
 0x1f8   : > { %p3148_p3 = pneg %p3147_p2 }
 0x1fa   : > { %p3153_p8 = pnand %p3152_p6, %p3148_p3 }
 0x1fc   : > { %3156 = shalt.err (!%p3153_p8)
}
 0x1fd   : > { %s3203_s20 = smov 128   ;;  %s3204_s24 = smov 8  }
 0x1fe   : > { %2905 = dma.vmem_to_hbm [thread:$0]  (%p3263_p5), %s3566_s26, 1024, %s3572_s30, %s3577_s4, %s3203_s20, %s3203_s20, %s3204_s24  }
 0x1ff PF: > { %p2917_p9 = scmp.ge.s32.totalorder %s3195_s15, 2  ;;  %s2188_s25 = sand.u32 1, %s3183_s12  }
 0x200   : > { %p3624_p10 = scmp.ne.s32.totalorder %s3622_s23, 0  ;;  %s2189_s27 = scalar_lea.sflag [#allocation4], %s2188_s25 }
 0x202   : > { %p2912_p11 = pnand %p2917_p9, %p3624_p10 }
 0x204   : > { %p2913_p12 = pneg %p2912_p11 }
 0x206   : > { %3178 = dma.done.wait (%p2913_p12), %s2189_s27, 1024  }
 0x207   : > { %3180 = vsyncadd (%p2913_p12), %s2189_s27, 4294966272  ;;  %p14_p13 = scmp.ge.s32.totalorder %s3250_s18, 4   ;;  %s3625_s12 = smov %s3187_s13 }
 0x208   : > { %s3626_s13 = smov %s3191_s14  ;;  %s3627_s14 = smov %s3261_s21 }
 0x209   : > { %s3628_s15 = smov %s3250_s18  ;;  %16 = sbr.rel (!%p14_p13) target bundleno = 4 (0x4), region = 81 }
 0x20e   :  { %2194 = vsyncpa [#allocation3], 1 }
 0x20f   :  { %2196 = vsyncpa [#allocation3 + $0x1], 1 }
 0x210   :  { %2197 = vsyncpa [#allocation4], 1 }
 0x211   :  { %2199 = vsyncpa [#allocation4 + $0x1], 1 }

</bundles_post_ra>
